<compile_context>
chip_gen: v6e
topology: v6e:2x2x1
jax: 0.10.0
libtpu: 0.0.40
codegen_flags: <defaults>
</compile_context>

<pallas_src>
import jax
import jax.numpy as jnp
import numpy as np
from jax.experimental import pallas as pl
from jax.experimental.pallas import tpu as pltpu


def _wrnn_kernel(a_ref, x_ref, wt_ref, o_ref):
    """grid = (row tiles of A/output, contraction tiles over source nodes)."""
    k = pl.program_id(1)

    # Partial product for this (row-tile, k-tile): bf16 operands, f32 accumulation.
    partial = jnp.dot(a_ref[...], x_ref[...], preferred_element_type=jnp.float32)

    @pl.when(k == 0)
    def _first():
        o_ref[...] = partial           # no zero-fill + '+=' on the first step

    @pl.when(k > 0)
    def _accum():
        o_ref[...] += partial          # output block is resident across k (f32 accumulator)

    @pl.when(k == pl.num_programs(1) - 1)
    def _finalize():
        # Apply the Linear once per output row tile:  h = (A @ x) @ W^T  (bf16 MXU, f32 acc).
        o_ref[...] = jnp.dot(o_ref[...].astype(jnp.bfloat16), wt_ref[...],
                             preferred_element_type=jnp.float32)


def _round_up(v, m):
    return ((v + m - 1) // m) * m


def _select_tiles(n, f_pad, *, vmem_budget=40 * 1024 * 1024):
    """Pick (tm, tk, n_pad) with tm == tk, so n_pad (multiple of tm) tiles both grid axes."""
    n128 = _round_up(max(n, 1), 128)

    def footprint(tm, tk):
        # Conservative: count default double-buffering on every operand.
        return 2 * (tm * tk * 2            # A tile       (bf16)
                    + tk * f_pad * 2       # x tile       (bf16)
                    + f_pad * f_pad * 2    # W^T block    (bf16, constant index)
                    + tm * f_pad * 4)      # output block (f32, resident across k)

    # Small-problem fast path: single grid step, x is streamed exactly once.
    if footprint(n128, n128) <= vmem_budget:
        return n128, n128, n128

    # Largest square tile that fits; keep >= 2 row tiles (v7x megacore sharding).
    for t in (1024, 768, 512, 384, 256, 128):
        if 2 * t <= n128 and footprint(t, t) <= vmem_budget:
            return t, t, _round_up(n, t)
    return 128, 128, _round_up(n, 128)


def wrnn_forward(x, edge_index, weight):
    """WRNN forward.

    x:          (N, F) float32 node features
    edge_index: (2, E) int32, row 0 = source nodes, row 1 = destination nodes
    weight:     (F, F) float32 Linear weight (PyTorch convention: out x in)
    """
    n, f = x.shape
    f_pad = _round_up(f, 128)                       # lane-dense output / full-width MXU
    tm, tk, n_pad = _select_tiles(n, f_pad)

    src = edge_index[0]
    dst = edge_index[1]

    # Glue (plain JAX): dense adjacency A[dst, src] += 1, built directly in bf16
    # (edge multiplicities are exact in bf16 up to 256).
    adj = jnp.zeros((n_pad, n_pad), jnp.bfloat16).at[dst, src].add(1.0)
    xp = jnp.zeros((n_pad, f_pad), jnp.bfloat16).at[:n, :f].set(x.astype(jnp.bfloat16))
    wt = jnp.zeros((f_pad, f_pad), jnp.bfloat16).at[:f, :f].set(
        weight.T.astype(jnp.bfloat16))              # (F_in, F_out)

    m_tiles = n_pad // tm
    k_tiles = n_pad // tk

    flops = 2 * n_pad * n_pad * f_pad + 2 * n_pad * f_pad * f_pad
    bytes_accessed = (adj.size * 2                      # A streamed once
                      + m_tiles * xp.size * 2           # x re-streamed once per row tile
                      + wt.size * 2                     # W^T resident
                      + n_pad * f_pad * 4)              # f32 output
    cost = pl.CostEstimate(flops=flops, transcendentals=0,
                           bytes_accessed=bytes_accessed)

    out = pl.pallas_call(
        _wrnn_kernel,
        out_shape=jax.ShapeDtypeStruct((n_pad, f_pad), jnp.float32),
        grid_spec=pltpu.PrefetchScalarGridSpec(
            num_scalar_prefetch=0,
            grid=(m_tiles, k_tiles),
            in_specs=[
                pl.BlockSpec((tm, tk), lambda i, k: (i, k)),        # A tile
                pl.BlockSpec((tk, f_pad), lambda i, k: (k, 0)),     # x tile
                pl.BlockSpec((f_pad, f_pad), lambda i, k: (0, 0)),  # W^T (constant block)
            ],
            out_specs=pl.BlockSpec((tm, f_pad), lambda i, k: (i, 0)),
        ),
        compiler_params=pltpu.CompilerParams(
            dimension_semantics=("parallel", "arbitrary"),
            vmem_limit_bytes=48 * 1024 * 1024,
        ),
        cost_estimate=cost,
    )(adj, xp, wt)

    return out[:n, :f]


if __name__ == "__main__":
    # Shapes consistent with the module: x = eye(n), so N = F = input_size.
    n = 297
    num_edges = 1024

    # Deterministic parameter init matching GCNConv_nonorm.__init__:
    # lin.weight = eye(input_size), no bias.
    weight = jnp.eye(n, dtype=jnp.float32)
    x = jnp.eye(n, dtype=jnp.float32)

    key = jax.random.PRNGKey(0)
    k_src, k_dst = jax.random.split(key)
    src = jax.random.randint(k_src, (num_edges,), 0, n, dtype=jnp.int32)
    dst = jax.random.randint(k_dst, (num_edges,), 0, n, dtype=jnp.int32)
    edge_index = jnp.stack([src, dst], axis=0)  # (2, E)

    h = wrnn_forward(x, edge_index, weight)
    h = jax.block_until_ready(h)

    # Pure-JAX reference of the same semantics (scatter-add of (x W^T)[src] into dst).
    y_ref = x @ weight.T
    h_ref = jnp.zeros_like(y_ref).at[dst].add(y_ref[src])
    np.testing.assert_allclose(np.asarray(h), np.asarray(h_ref), rtol=1e-5, atol=1e-5)

    print("KERNEL_OK")
</pallas_src>

<mosaic_0001>
module attributes {stable_mosaic.version = 11 : i64} {
  func.func @_wrnn_kernel(%arg0: i32, %arg1: i32, %arg2: memref<384x384xbf16, #tpu.memory_space<vmem>>, %arg3: memref<384x384xbf16, #tpu.memory_space<vmem>>, %arg4: memref<384x384xbf16, #tpu.memory_space<vmem>>, %arg5: memref<384x384xf32, #tpu.memory_space<vmem>>) attributes {dimension_semantics = [#tpu.dimension_semantics<parallel>, #tpu.dimension_semantics<arbitrary>], iteration_bounds = array<i64: 1, 1>, scalar_prefetch = 0 : i64, scratch_operands = 0 : i64, tpu.core_type = #tpu.core_type<tc>, window_params = [{transform_indices = @transform_0, window_bounds = array<i64: 384, 384>}, {transform_indices = @transform_1, window_bounds = array<i64: 384, 384>}, {pipeline_mode = #tpu.pipeline_mode<synchronous>, transform_indices = @transform_2, window_bounds = array<i64: 384, 384>}, {transform_indices = @transform_3, window_bounds = array<i64: 384, 384>}]} {
    %c0 = arith.constant 0 : index
    %c0_0 = arith.constant 0 : index
    %0 = vector.load %arg2[%c0, %c0_0] : memref<384x384xbf16, #tpu.memory_space<vmem>>, vector<384x384xbf16>
    %c0_1 = arith.constant 0 : index
    %c0_2 = arith.constant 0 : index
    %1 = vector.load %arg3[%c0_1, %c0_2] : memref<384x384xbf16, #tpu.memory_space<vmem>>, vector<384x384xbf16>
    %cst = arith.constant dense<0.000000e+00> : vector<384x384xf32>
    %2 = tpu.matmul %0, %1, %cst {dimension_numbers = #tpu.dot_dimension_numbers<[1], [0], [0], [1], [0, 0, 1, 1], [], []>} : vector<384x384xbf16>, vector<384x384xbf16>, vector<384x384xf32> -> vector<384x384xf32>
    %c0_i32 = arith.constant 0 : i32
    %3 = arith.cmpi eq, %arg1, %c0_i32 : i32
    %4 = arith.extui %3 : i1 to i32
    %c0_i32_3 = arith.constant 0 : i32
    %5 = arith.cmpi ne, %4, %c0_i32_3 : i32
    scf.if %5 {
      %c0_8 = arith.constant 0 : index
      %c0_9 = arith.constant 0 : index
      %12 = vector.load %arg5[%c0_8, %c0_9] : memref<384x384xf32, #tpu.memory_space<vmem>>, vector<384x384xf32>
      tpu.vector_store %arg5[%c0_8, %c0_9], %2 {strides = array<i32>} : memref<384x384xf32, #tpu.memory_space<vmem>>, vector<384x384xf32>,
    } else {
    }
    %c0_i32_4 = arith.constant 0 : i32
    %6 = arith.cmpi sgt, %arg1, %c0_i32_4 : i32
    %7 = arith.extui %6 : i1 to i32
    %c0_i32_5 = arith.constant 0 : i32
    %8 = arith.cmpi ne, %7, %c0_i32_5 : i32
    scf.if %8 {
      %c0_8 = arith.constant 0 : index
      %c0_9 = arith.constant 0 : index
      %12 = vector.load %arg5[%c0_8, %c0_9] : memref<384x384xf32, #tpu.memory_space<vmem>>, vector<384x384xf32>
      %13 = arith.addf %12, %2 : vector<384x384xf32>
      %c0_10 = arith.constant 0 : index
      %c0_11 = arith.constant 0 : index
      %14 = vector.load %arg5[%c0_10, %c0_11] : memref<384x384xf32, #tpu.memory_space<vmem>>, vector<384x384xf32>
      tpu.vector_store %arg5[%c0_10, %c0_11], %13 {strides = array<i32>} : memref<384x384xf32, #tpu.memory_space<vmem>>, vector<384x384xf32>,
    } else {
    }
    %c0_i32_6 = arith.constant 0 : i32
    %9 = arith.cmpi eq, %arg1, %c0_i32_6 : i32
    %10 = arith.extui %9 : i1 to i32
    %c0_i32_7 = arith.constant 0 : i32
    %11 = arith.cmpi ne, %10, %c0_i32_7 : i32
    scf.if %11 {
      %c0_8 = arith.constant 0 : index
      %c0_9 = arith.constant 0 : index
      %12 = vector.load %arg5[%c0_8, %c0_9] : memref<384x384xf32, #tpu.memory_space<vmem>>, vector<384x384xf32>
      %13 = arith.truncf %12 : vector<384x384xf32> to vector<384x384xbf16>
      %c0_10 = arith.constant 0 : index
      %c0_11 = arith.constant 0 : index
      %14 = vector.load %arg4[%c0_10, %c0_11] : memref<384x384xbf16, #tpu.memory_space<vmem>>, vector<384x384xbf16>
      %cst_12 = arith.constant dense<0.000000e+00> : vector<384x384xf32>
      %15 = tpu.matmul %13, %14, %cst_12 {dimension_numbers = #tpu.dot_dimension_numbers<[1], [0], [0], [1], [0, 0, 1, 1], [], []>} : vector<384x384xbf16>, vector<384x384xbf16>, vector<384x384xf32> -> vector<384x384xf32>
      %c0_13 = arith.constant 0 : index
      %c0_14 = arith.constant 0 : index
      %16 = vector.load %arg5[%c0_13, %c0_14] : memref<384x384xf32, #tpu.memory_space<vmem>>, vector<384x384xf32>
      tpu.vector_store %arg5[%c0_13, %c0_14], %15 {strides = array<i32>} : memref<384x384xf32, #tpu.memory_space<vmem>>, vector<384x384xf32>,
    } else {
    }
    return
  }
  func.func @transform_0(%arg0: i32, %arg1: i32) -> (i32, i32) {
    %c0_i32 = arith.constant 0 : i32
    return %arg0, %arg1 : i32, i32
  }
  func.func @transform_1(%arg0: i32, %arg1: i32) -> (i32, i32) {
    %c0_i32 = arith.constant 0 : i32
    %c0_i32_0 = arith.constant 0 : i32
    return %arg1, %c0_i32 : i32, i32
  }
  func.func @transform_2(%arg0: i32, %arg1: i32) -> (i32, i32) {
    %c0_i32 = arith.constant 0 : i32
    %c0_i32_0 = arith.constant 0 : i32
    %c0_i32_1 = arith.constant 0 : i32
    return %c0_i32, %c0_i32_0 : i32, i32
  }
  func.func @transform_3(%arg0: i32, %arg1: i32) -> (i32, i32) {
    %c0_i32 = arith.constant 0 : i32
    %c0_i32_0 = arith.constant 0 : i32
    return %arg0, %c0_i32 : i32, i32
  }
}

</mosaic_0001>

<bundles_post_ra>
// kernel: tpu_custom_call.1
= control target key start
LH: loop header
LB: loop body
LE: loop exit
PB: predicated region body
PF: predicated region fallthrough
CT: control target
= control target key end

     0   :  { %8 = vsyncpa [#allocation3], 0  ;;  %s6816_s0 = inlined_call_operand.hbm [shape: bf16[384,384], index: 0, kind: input, shape index: {}]   ;;  %s6817_s1 = inlined_call_operand.hbm [shape: bf16[384,384], index: 1, kind: input, shape index: {}]   ;;  %s6818_s2 = inlined_call_operand.hbm [shape: bf16[384,384], index: 2, kind: input, shape index: {}]   ;;  %s6819_s3 = inlined_call_operand.hbm [shape: f32[384,384], index: 3, kind: output, shape index: {}]  }
   0x1   :  { %9 = vsyncpa [#allocation6], 0 }
   0x2   :  { %10 = vsyncpa [#allocation4], 0  ;;  %s5247_s12 = smov [#allocation5]   ;;  %s5248_s14 = smov [#allocation2]  }
   0x3   :  { %s28_s13 = sshll.u32 %s5247_s12, 4  ;;  %s16_s15 = sshll.u32 %s5248_s14, 4  ;;  %s29_s13 = int_to_ptr.vmem [resolvable:$true] %s28_s13  ;;  %s17_s15 = int_to_ptr.vmem [resolvable:$true] %s16_s15 }
   0x4   :  { %s5169_s16 = scalar_lea.vmem %s29_s13, 9216  ;;  %p5174_p1 = scmp.lt.s32.totalorder %s29_s13, %s29_s13 }
   0x5   :  { %p5170_p0 = scmp.ne.s32.totalorder %s29_s13, %s5169_s16  ;;  %p5175_p2 = scmp.lt.s32.totalorder %s5169_s16, %s5169_s16 }
   0x7   :  { %p5176_p3 = por %p5175_p2, %p5174_p1 }
   0x9   :  { %p5177_p4 = pnand %p5176_p3, %p5170_p0 }
   0xb   :  { %5180 = shalt.err (!%p5177_p4)
}
   0xc   :  { %s5249_s17 = smov 192   ;;  %s5250_s18 = smov 12  }
   0xd   :  { %34 = dma.hbm_to_vmem [thread:$0]  %s6817_s1, 9216, %s29_s13, [#allocation6], %s5249_s17, %s5249_s17, %s5250_s18  }
   0xe   :  { %s5189_s21 = scalar_lea.vmem %s17_s15, 9216  ;;  %p5194_p6 = scmp.lt.s32.totalorder %s17_s15, %s17_s15 }
   0xf   :  { %p5190_p5 = scmp.ne.s32.totalorder %s17_s15, %s5189_s21  ;;  %p5195_p7 = scmp.lt.s32.totalorder %s5189_s21, %s5189_s21 }
  0x11   :  { %p5196_p8 = por %p5195_p7, %p5194_p6 }
  0x13   :  { %p5197_p9 = pnand %p5196_p8, %p5190_p5 }
  0x15   :  { %5200 = shalt.err (!%p5197_p9)
}
  0x16   :  { %22 = dma.hbm_to_vmem [thread:$0]  %s6816_s0, 9216, %s17_s15, [#allocation3], %s5249_s17, %s5249_s17, %s5250_s18  }
  0x17   :  { %s5251_s24 = smov [#allocation7]  }
  0x18   :  { %s40_s25 = sshll.u32 %s5251_s24, 4  ;;  %s41_s25 = int_to_ptr.vmem [resolvable:$true] %s40_s25 }
  0x19   :  { %s5209_s26 = scalar_lea.vmem %s41_s25, 9216  ;;  %p5214_p11 = scmp.lt.s32.totalorder %s41_s25, %s41_s25 }
  0x1a   :  { %p5210_p10 = scmp.ne.s32.totalorder %s41_s25, %s5209_s26  ;;  %p5215_p12 = scmp.lt.s32.totalorder %s5209_s26, %s5209_s26 }
  0x1c   :  { %p5216_p13 = por %p5215_p12, %p5214_p11 }
  0x1e   :  { %p5217_p0 = pnand %p5216_p13, %p5210_p10 }
  0x20   :  { %5220 = shalt.err (!%p5217_p0)
}
  0x21   :  { %46 = dma.hbm_to_vmem [thread:$0]  %s6818_s2, 9216, %s41_s25, [#allocation6], %s5249_s17, %s5249_s17, %s5250_s18  }
  0x22   :  { %5241 = dma.done.wait [#allocation3], 9216  }
  0x23   :  { %5242 = vsyncadd [#allocation3], 4294958080 }
  0x24   :  { %5243 = dma.done.wait [#allocation6], 18432  }
  0x25   :  { %5244 = vsyncadd [#allocation6], 4294948864  ;;  %v6823_v0 = vmov 0   ;;  %v4871_v1 = vld [vmem:[#allocation5 + $0xac] ss:$12 sps:$4 sm:$0xff]   ;;  %s5253_s0 = smov [#allocation8]  }
  0x26   :  { %1322 = vmatprep.mubr.bf16.mxu1 %v6823_v0  ;;  %v4873_v2 = vld [vmem:[#allocation5 + $0x22c] ss:$12 sps:$4 sm:$0xff]   ;;  %1017 = vmatprep.subr.bf16.mxu0 %v4871_v1  ;;  %v4875_v3 = vld [vmem:[#allocation5 + $0xa8] ss:$12 sps:$4 sm:$0xff]   ;;  %v4881_v7 = vld [vmem:[#allocation5 + $0x90] ss:$12 sps:$4 sm:$0xff]  }
  0x27   :  { %v4876_v4 = vld [vmem:[#allocation5 + $0x228] ss:$12 sps:$4 sm:$0xff]   ;;  %1290 = vmatprep.subr.bf16.mxu1 %v4873_v2  ;;  %1018 = vmatpush1.bf16.msra.mxu0 %v4875_v3  ;;  %v4882_v8 = vld [vmem:[#allocation5 + $0x210] ss:$12 sps:$4 sm:$0xff]   ;;  %v4887_v11 = vld [vmem:[#allocation5 + $0x78] ss:$12 sps:$4 sm:$0xff]  }
  0x28   :  { %v4877_v5 = vld [vmem:[#allocation5 + $0x94] ss:$12 sps:$4 sm:$0xff]   ;;  %1291 = vmatpush1.bf16.msra.mxu1 %v4876_v4  ;;  %v4883_v9 = vld [vmem:[#allocation5 + $0x7c] ss:$12 sps:$4 sm:$0xff]   ;;  %v4888_v12 = vld [vmem:[#allocation5 + $0x1f8] ss:$12 sps:$4 sm:$0xff]  }
  0x29   :  { %v4879_v6 = vld [vmem:[#allocation5 + $0x214] ss:$12 sps:$4 sm:$0xff]   ;;  %1019 = vmatprep.subr.bf16.mxu0 %v4877_v5  ;;  %v4885_v10 = vld [vmem:[#allocation5 + $0x1fc] ss:$12 sps:$4 sm:$0xff]   ;;  %v4889_v13 = vld [vmem:[#allocation5 + $0x64] ss:$12 sps:$4 sm:$0xff]  }
  0x2a   :  { %1292 = vmatprep.subr.bf16.mxu1 %v4879_v6  ;;  %v4891_v14 = vld [vmem:[#allocation5 + $0x1e4] ss:$12 sps:$4 sm:$0xff]   ;;  %v4893_v15 = vld [vmem:[#allocation5 + $0x60] ss:$12 sps:$4 sm:$0xff]   ;;  %v4899_v19 = vld [vmem:[#allocation5 + $0x48] ss:$12 sps:$4 sm:$0xff]  }
  0x2b   :  { %1020 = vmatpush1.bf16.msra.mxu0 %v4881_v7  ;;  %v4894_v16 = vld [vmem:[#allocation5 + $0x1e0] ss:$12 sps:$4 sm:$0xff]   ;;  %v4900_v20 = vld [vmem:[#allocation5 + $0x1c8] ss:$12 sps:$4 sm:$0xff]   ;;  %v4905_v23 = vld [vmem:[#allocation5 + $0x30] ss:$12 sps:$4 sm:$0xff]  }
  0x2c   :  { %1293 = vmatpush1.bf16.msra.mxu1 %v4882_v8  ;;  %1021 = vmatprep.subr.bf16.mxu0 %v4883_v9  ;;  %v4895_v17 = vld [vmem:[#allocation5 + $0x4c] ss:$12 sps:$4 sm:$0xff]   ;;  %v4901_v21 = vld [vmem:[#allocation5 + $0x34] ss:$12 sps:$4 sm:$0xff]   ;;  %v4906_v24 = vld [vmem:[#allocation5 + $0x1b0] ss:$12 sps:$4 sm:$0xff]  }
  0x2d   :  { %1294 = vmatprep.subr.bf16.mxu1 %v4885_v10  ;;  %v4897_v18 = vld [vmem:[#allocation5 + $0x1cc] ss:$12 sps:$4 sm:$0xff]   ;;  %v4903_v22 = vld [vmem:[#allocation5 + $0x1b4] ss:$12 sps:$4 sm:$0xff]   ;;  %v4907_v25 = vld [vmem:[#allocation5 + $0x1c] ss:$12 sps:$4 sm:$0xff]  }
  0x2e   :  { %v4909_v26 = vld [vmem:[#allocation5 + $0x19c] ss:$12 sps:$4 sm:$0xff]   ;;  %v4911_v27 = vld [vmem:[#allocation5 + $0x18] ss:$12 sps:$4 sm:$0xff]   ;;  %v4917_v31 = vld [vmem:[#allocation5] ss:$12 sps:$4 sm:$0xff]  }
  0x2f   :  { %1022 = vmatpush1.bf16.msra.mxu0 %v4887_v11  ;;  %v4912_v28 = vld [vmem:[#allocation5 + $0x198] ss:$12 sps:$4 sm:$0xff]   ;;  %v4918_v32 = vld [vmem:[#allocation5 + $0x180] ss:$12 sps:$4 sm:$0xff]   ;;  %v4921_v34 = vld [vmem:[#allocation2 + $0x8] ss:$12 sps:$4 sm:$0xff]  }
  0x30   :  { %1295 = vmatpush1.bf16.msra.mxu1 %v4888_v12  ;;  %1023 = vmatprep.subr.bf16.mxu0 %v4889_v13  ;;  %v4913_v29 = vld [vmem:[#allocation5 + $0x4] ss:$12 sps:$4 sm:$0xff]   ;;  %v4919_v33 = vld [vmem:[#allocation5 + $0x16c] ss:$12 sps:$4 sm:$0xff]   ;;  %v4922_v35 = vld [vmem:[#allocation5 + $0x168] ss:$12 sps:$4 sm:$0xff]  }
  0x31   :  { %1296 = vmatprep.subr.bf16.mxu1 %v4891_v14  ;;  %v4915_v30 = vld [vmem:[#allocation5 + $0x184] ss:$12 sps:$4 sm:$0xff]   ;;  %v4923_v36 = vld [vmem:[#allocation5 + $0x154] ss:$12 sps:$4 sm:$0xff]   ;;  %v4926_v38 = vld [vmem:[#allocation5 + $0x13c] ss:$12 sps:$4 sm:$0xff]  }
  0x32   :  { %v4925_v37 = vld [vmem:[#allocation5 + $0x150] ss:$12 sps:$4 sm:$0xff]   ;;  %v4928_v40 = vld [vmem:[#allocation2 + $0x20] ss:$12 sps:$4 sm:$0xff]   ;;  %v4929_v41 = vld [vmem:[#allocation5 + $0x138] ss:$12 sps:$4 sm:$0xff]  }
  0x33   :  { %1024 = vmatpush1.bf16.msra.mxu0 %v4893_v15  ;;  %v5288_v39 = vld [vmem:[#allocation2 + $0x4] ss:$12 sps:$4 sm:$0xff]   ;;  %v4932_v44 = vld [vmem:[#allocation5 + $0x120] ss:$12 sps:$4 sm:$0xff]   ;;  %v4936_v48 = vld [vmem:[#allocation5 + $0x108] ss:$12 sps:$4 sm:$0xff]  }
  0x34   :  { %1297 = vmatpush1.bf16.msra.mxu1 %v4894_v16  ;;  %1025 = vmatprep.subr.bf16.mxu0 %v4895_v17  ;;  %v4952_v42 = vld [vmem:[#allocation5 + $0xb0] ss:$12 sps:$4 sm:$0xff]   ;;  %v4959_v45 = vld [vmem:[#allocation5 + $0x98] ss:$12 sps:$4 sm:$0xff]   ;;  %v4937_v49 = vld [vmem:[#allocation5 + $0xf4] ss:$12 sps:$4 sm:$0xff]  }
  0x35   :  { %1298 = vmatprep.subr.bf16.mxu1 %v4897_v18  ;;  %1049 = vmatprep.mubr.bf16.mxu0 %v5288_v39  ;;  %v4930_v43 = vld [vmem:[#allocation5 + $0x124] ss:$12 sps:$4 sm:$0xff]   ;;  %v4933_v46 = vld [vmem:[#allocation5 + $0x10c] ss:$12 sps:$4 sm:$0xff]   ;;  %v4940_v52 = vld [vmem:[#allocation5 + $0xdc] ss:$12 sps:$4 sm:$0xff]  }
  0x36   :  { %v5293_v47 = vld [vmem:[#allocation2 + $0x38] ss:$12 sps:$4 sm:$0xff]   ;;  %v4967_v50 = vld [vmem:[#allocation5 + $0x80] ss:$12 sps:$4 sm:$0xff]   ;;  %v4939_v51 = vld [vmem:[#allocation5 + $0xf0] ss:$12 sps:$4 sm:$0xff]  }
  0x37   :  { %1026 = vmatpush1.bf16.msra.mxu0 %v4899_v19  ;;  %v4974_v53 = vld [vmem:[#allocation5 + $0x68] ss:$12 sps:$4 sm:$0xff]   ;;  %v5299_v54 = vld [vmem:[#allocation2 + $0x50] ss:$12 sps:$4 sm:$0xff]   ;;  %v4943_v55 = vld [vmem:[#allocation5 + $0xd8] ss:$12 sps:$4 sm:$0xff]  }
  0x38   :  { %1299 = vmatpush1.bf16.msra.mxu1 %v4900_v20  ;;  %1027 = vmatprep.subr.bf16.mxu0 %v4901_v21  ;;  %v4944_v56 = vld [vmem:[#allocation5 + $0xc4] ss:$12 sps:$4 sm:$0xff]   ;;  %v4946_v57 = vld [vmem:[#allocation5 + $0xc0] ss:$12 sps:$4 sm:$0xff]   ;;  %v5306_v61 = vld [vmem:[#allocation2 + $0x68] ss:$12 sps:$4 sm:$0xff]  }
  0x39   :  { %1300 = vmatprep.subr.bf16.mxu1 %v4903_v22  ;;  %v4982_v58 = vld [vmem:[#allocation5 + $0x50] ss:$12 sps:$4 sm:$0xff]   ;;  %v5304_v60 = vld [vmem:[#allocation2] ss:$12 sps:$4 sm:$0xff]   ;;  %v4989_v63 = vld [vmem:[#allocation5 + $0x38] ss:$12 sps:$4 sm:$0xff]  }
  0x3a   :  { %v4951_v59 = vld [vmem:[#allocation5 + $0x230] ss:$12 sps:$4 sm:$0xff]   ;;  %v4966_v1 = vld [vmem:[#allocation5 + $0x218] ss:$12 sps:$4 sm:$0xff]   ;;  %v4981_v2 = vld [vmem:[#allocation5 + $0x200] ss:$12 sps:$4 sm:$0xff]  }
  0x3b   :  { %1028 = vmatpush1.bf16.msra.mxu0 %v4905_v23  ;;  %v5309_v62 = vld [vmem:[#allocation2 + $0x1c] ss:$12 sps:$4 sm:$0xff]   ;;  %v4997_v3 = vld [vmem:[#allocation5 + $0x20] ss:$12 sps:$4 sm:$0xff]   ;;  %v5316_v4 = vld [vmem:[#allocation2 + $0x18] ss:$12 sps:$4 sm:$0xff]  }
  0x3c   :  { %1301 = vmatpush1.bf16.msra.mxu1 %v4906_v24  ;;  %1029 = vmatprep.subr.bf16.mxu0 %v4907_v25  ;;  %v5318_v5 = vld [vmem:[#allocation2 + $0x80] ss:$12 sps:$4 sm:$0xff]   ;;  %v4996_v7 = vld [vmem:[#allocation5 + $0x1e8] ss:$12 sps:$4 sm:$0xff]   ;;  %v5327_v9 = vld [vmem:[#allocation2 + $0x30] ss:$12 sps:$4 sm:$0xff]  }
  0x3d   :  { %1302 = vmatprep.subr.bf16.mxu1 %v4909_v26  ;;  %v5320_v6 = vld [vmem:[#allocation2 + $0x34] ss:$12 sps:$4 sm:$0xff]   ;;  %v5329_v10 = vld [vmem:[#allocation2 + $0x98] ss:$12 sps:$4 sm:$0xff]   ;;  %v5011_v12 = vld [vmem:[#allocation5 + $0x1d0] ss:$12 sps:$4 sm:$0xff]  }
  0x3e   :  { %v5004_v8 = vld [vmem:[#allocation5 + $0x8] ss:$12 sps:$4 sm:$0xff]   ;;  %v5331_v11 = vld [vmem:[#allocation2 + $0x4c] ss:$12 sps:$4 sm:$0xff]   ;;  %v5012_v13 = vld [vmem:[#allocation5 + $0x170] ss:$12 sps:$4 sm:$0xff]  }
  0x3f   :  { %1030 = vmatpush1.bf16.msra.mxu0 %v4911_v27  ;;  %v5019_v14 = vld [vmem:[#allocation5 + $0x158] ss:$12 sps:$4 sm:$0xff]   ;;  %v5339_v15 = vld [vmem:[#allocation2 + $0x48] ss:$12 sps:$4 sm:$0xff]   ;;  %v5341_v16 = vld [vmem:[#allocation2 + $0xb0] ss:$12 sps:$4 sm:$0xff]  }
  0x40   :  { %1303 = vmatpush1.bf16.msra.mxu1 %v4912_v28  ;;  %1031 = vmatprep.subr.bf16.mxu0 %v4913_v29  ;;  %v5344_v17 = vld [vmem:[#allocation2 + $0x64] ss:$12 sps:$4 sm:$0xff]   ;;  %v5027_v19 = vld [vmem:[#allocation5 + $0x140] ss:$12 sps:$4 sm:$0xff]   ;;  %v5034_v21 = vld [vmem:[#allocation5 + $0x128] ss:$12 sps:$4 sm:$0xff]  }
  0x41   :  { %1304 = vmatprep.subr.bf16.mxu1 %v4915_v30  ;;  %v5026_v18 = vld [vmem:[#allocation5 + $0x1b8] ss:$12 sps:$4 sm:$0xff]   ;;  %v5350_v20 = vld [vmem:[#allocation2 + $0x60] ss:$12 sps:$4 sm:$0xff]   ;;  %v5353_v22 = vld [vmem:[#allocation2 + $0xc8] ss:$12 sps:$4 sm:$0xff]  }
  0x42   :  { %v5355_v23 = vld [vmem:[#allocation2 + $0x7c] ss:$12 sps:$4 sm:$0xff]   ;;  %v5041_v24 = vld [vmem:[#allocation5 + $0x1a0] ss:$12 sps:$4 sm:$0xff]   ;;  %v5362_v26 = vld [vmem:[#allocation2 + $0x78] ss:$12 sps:$4 sm:$0xff]  }
  0x43   :  { %1032 = vmatpush1.bf16.msra.mxu0 %v4917_v31  ;;  %v5042_v25 = vld [vmem:[#allocation5 + $0x110] ss:$12 sps:$4 sm:$0xff]   ;;  %v5043_v27 = vld [vmem:[#allocation5 + $0xf8] ss:$12 sps:$4 sm:$0xff]   ;;  %v5364_v28 = vld [vmem:[#allocation2 + $0xe0] ss:$12 sps:$4 sm:$0xff]  }
  0x44   :  { %1305 = vmatpush1.bf16.msra.mxu1 %v4918_v32  ;;  %1033 = vmatprep.subr.bf16.mxu0 %v4919_v33  ;;  %v5367_v29 = vld [vmem:[#allocation2 + $0x94] ss:$12 sps:$4 sm:$0xff]   ;;  %v5373_v32 = vld [vmem:[#allocation2 + $0x90] ss:$12 sps:$4 sm:$0xff]   ;;  %v5375_v33 = vld [vmem:[#allocation2 + $0xf8] ss:$12 sps:$4 sm:$0xff]  }
  0x45   :  { %1563 = vmatprep.subr.bf16.mxu1 %v6823_v0  ;;  %v5048_v30 = vld [vmem:[#allocation5 + $0xe0] ss:$12 sps:$4 sm:$0xff]   ;;  %v5049_v31 = vld [vmem:[#allocation5 + $0xc8] ss:$12 sps:$4 sm:$0xff]   ;;  %s4441_s2 = sshll.u32 %s5253_s0, 4  ;;  %s4442_s2 = int_to_ptr.vmem [resolvable:$true] %s4441_s2 }
  0x46   :  { %s5221_s28 = scalar_lea.vmem %s4442_s2, 18432  ;;  %p5226_p2 = scmp.lt.s32.totalorder %s4442_s2, %s4442_s2 }
  0x47   :  { %1323 = vmatmul.mubr.bf16.vlgmr.msra.gmra.mxu1 %v4921_v34  ;;  %1034 = vmatpush2.bf16.msra.mxu0 %v4922_v35  ;;  %v5056_v34 = vld [vmem:[#allocation5 + $0x188] ss:$12 sps:$4 sm:$0xff]   ;;  %v5379_v35 = vld [vmem:[#allocation2 + $0xac] ss:$12 sps:$4 sm:$0xff]   ;;  %p5222_p1 = scmp.ne.s32.totalorder %s4442_s2, %s5221_s28  ;;  %p5227_p3 = scmp.lt.s32.totalorder %s5221_s28, %s5221_s28 }
  0x48   :  { %1332 = vmatprep.mubr.bf16.mxu1 %v6823_v0  ;;  %1035 = vmatprep.subr.bf16.mxu0 %v4923_v36  ;;  %v5385_v36 = vld [vmem:[#allocation2 + $0xa8] ss:$12 sps:$4 sm:$0xff]  }
  0x49   :  { %1564 = vmatpush1.bf16.msra.mxu1 %v4952_v42  ;;  %v5399_v42 = vld [vmem:[#allocation2 + $0xdc] ss:$12 sps:$4 sm:$0xff]   ;;  %p5228_p4 = por %p5227_p3, %p5226_p2 }
  0x4a   :  { %1565 = vmatprep.subr.bf16.mxu1 %v6823_v0 }
  0x4b   :  { %1036 = vmatpush2.bf16.msra.mxu0 %v4925_v37  ;;  %v5387_v37 = vld [vmem:[#allocation2 + $0x110] ss:$12 sps:$4 sm:$0xff]   ;;  %p5229_p5 = pnand %p5228_p4, %p5222_p1 }
  0x4c   :  { %1037 = vmatprep.subr.bf16.mxu0 %v4926_v38  ;;  %v5389_v38 = vld [vmem:[#allocation2 + $0xc4] ss:$12 sps:$4 sm:$0xff]  }
  0x4d   :  { %1566 = vmatpush1.bf16.msra.mxu1 %v4959_v45  ;;  %v5409_v45 = vld [vmem:[#allocation2 + $0xf4] ss:$12 sps:$4 sm:$0xff]  }
  0x4e   :  { %1567 = vmatprep.subr.bf16.mxu1 %v6823_v0 }
  0x4f   :  { %1333 = vmatmul.mubr.bf16.gmra.mxu1 %v4928_v40  ;;  %1038 = vmatpush2.bf16.msra.mxu0 %v4929_v41  ;;  %v5395_v40 = vld [vmem:[#allocation2 + $0xc0] ss:$12 sps:$4 sm:$0xff]   ;;  %v5397_v41 = vld [vmem:[#allocation2 + $0x128] ss:$12 sps:$4 sm:$0xff]  }
  0x50   :  { %1342 = vmatprep.mubr.bf16.mxu1 %v6823_v0  ;;  %1039 = vmatprep.subr.bf16.mxu0 %v4930_v43  ;;  %v5405_v43 = vld [vmem:[#allocation2 + $0xd8] ss:$12 sps:$4 sm:$0xff]  }
  0x51   :  { %1568 = vmatpush1.bf16.msra.mxu1 %v4967_v50  ;;  %v5065_v50 = vld [vmem:[#allocation7 + $0x22c] ss:$12 sps:$4 sm:$0xff]  }
  0x52   :  { %1569 = vmatprep.subr.bf16.mxu1 %v6823_v0 }
  0x53   :  { %1040 = vmatpush2.bf16.msra.mxu0 %v4932_v44  ;;  %v5407_v44 = vld [vmem:[#allocation2 + $0x140] ss:$12 sps:$4 sm:$0xff]  }
  0x54   :  { %1041 = vmatprep.subr.bf16.mxu0 %v4933_v46  ;;  %v5415_v46 = vld [vmem:[#allocation2 + $0xf0] ss:$12 sps:$4 sm:$0xff]  }
  0x55   :  { %1570 = vmatpush1.bf16.msra.mxu1 %v4974_v53  ;;  %v5429_v53 = vld [vmem:[#allocation2 + $0x124] ss:$12 sps:$4 sm:$0xff]  }
  0x56   :  { %1571 = vmatprep.subr.bf16.mxu1 %v6823_v0 }
  0x57   :  { %1343 = vmatmul.mubr.bf16.gmra.mxu1 %v5293_v47  ;;  %1042 = vmatpush2.bf16.msra.mxu0 %v4936_v48  ;;  %v5417_v48 = vld [vmem:[#allocation2 + $0x158] ss:$12 sps:$4 sm:$0xff]  }
  0x58   :  { %1352 = vmatprep.mubr.bf16.mxu1 %v6823_v0  ;;  %1043 = vmatprep.subr.bf16.mxu0 %v4937_v49  ;;  %v5419_v49 = vld [vmem:[#allocation2 + $0x10c] ss:$12 sps:$4 sm:$0xff]  }
  0x59   :  { %1572 = vmatpush1.bf16.msra.mxu1 %v4982_v58  ;;  %v5439_v58 = vld [vmem:[#allocation2 + $0x13c] ss:$12 sps:$4 sm:$0xff]  }
  0x5a   :  { %1573 = vmatprep.subr.bf16.mxu1 %v6823_v0 }
  0x5b   :  { %1044 = vmatpush2.bf16.msra.mxu0 %v4939_v51  ;;  %v5425_v51 = vld [vmem:[#allocation2 + $0x108] ss:$12 sps:$4 sm:$0xff]  }
  0x5c   :  { %1045 = vmatprep.subr.bf16.mxu0 %v4940_v52  ;;  %v5427_v52 = vld [vmem:[#allocation2 + $0x170] ss:$12 sps:$4 sm:$0xff]  }
  0x5d   :  { %1574 = vmatpush1.bf16.msra.mxu1 %v4989_v63  ;;  %v5447_v63 = vld [vmem:[#allocation2 + $0x1a0] ss:$12 sps:$4 sm:$0xff]  }
  0x5e   :  { %1575 = vmatprep.subr.bf16.mxu1 %v6823_v0 }
  0x5f   :  { %1353 = vmatmul.mubr.bf16.gmra.mxu1 %v5299_v54  ;;  %1046 = vmatpush2.bf16.msra.mxu0 %v4943_v55  ;;  %v5068_v55 = vld [vmem:[#allocation7 + $0xac] ss:$12 sps:$4 sm:$0xff]  }
  0x60   :  { %1362 = vmatprep.mubr.bf16.mxu1 %v6823_v0  ;;  %1047 = vmatprep.subr.bf16.mxu0 %v4944_v56  ;;  %v5435_v56 = vld [vmem:[#allocation2 + $0x120] ss:$12 sps:$4 sm:$0xff]  }
  0x61   :  { %1576 = vmatpush1.bf16.msra.mxu1 %v4997_v3  ;;  %v5457_v3 = vld [vmem:[#allocation2 + $0x1b8] ss:$12 sps:$4 sm:$0xff]  }
  0x62   :  { %1577 = vmatprep.subr.bf16.mxu1 %v6823_v0  ;;  %6895 = vst [vmem:[#allocation15_spill] sm:$0xff] %v5457_v3 }
  0x63   :  { %1048 = vmatpush2.bf16.msra.mxu0 %v4946_v57  ;;  %v5437_v57 = vld [vmem:[#allocation2 + $0x188] ss:$12 sps:$4 sm:$0xff]  }
  0x64   :  { %4734 = vmatprep.subr.bf16.mxu0 %v4951_v59 }
  0x65   :  { %1578 = vmatpush1.bf16.msra.mxu1 %v5004_v8  ;;  %v5465_v8 = vld [vmem:[#allocation2 + $0x168] ss:$12 sps:$4 sm:$0xff]  }
  0x66   :  { %1050 = vmatmul.mubr.bf16.vlgmr.msra.gmra.mxu0 %v5304_v60  ;;  %1579 = vmatprep.subr.bf16.mxu1 %v6823_v0  ;;  %6897 = vst [vmem:[#allocation17_spill] sm:$0xff] %v5465_v8 }
  0x67   :  { %1363 = vmatmul.mubr.bf16.gmra.mxu1 %v5306_v61  ;;  %4735 = vmatpush3.bf16.msra.mxu0 %v4951_v59  ;;  %v5445_v59 = vld [vmem:[#allocation2 + $0x138] ss:$12 sps:$4 sm:$0xff]  }
  0x68   :  { %1059 = vmatprep.mubr.bf16.mxu0 %v5309_v62  ;;  %1372 = vmatprep.mubr.bf16.mxu1 %v6823_v0  ;;  %6892 = vst [vmem:[#allocation12_spill] sm:$0xff] %v5445_v59 }
  0x69   :  { %4736 = vmatprep.subr.bf16.mxu0 %v4966_v1  ;;  %1580 = vmatpush2.bf16.msra.mxu1 %v5012_v13  ;;  %v5469_v13 = vld [vmem:[#allocation2 + $0x184] ss:$12 sps:$4 sm:$0xff]  }
  0x6a   :  { %1581 = vmatprep.subr.bf16.mxu1 %v6823_v0  ;;  %6899 = vst [vmem:[#allocation19_spill] sm:$0xff] %v5469_v13 }
  0x6b   :  { %4737 = vmatpush3.bf16.msra.mxu0 %v4966_v1  ;;  %v5449_v1 = vld [vmem:[#allocation2 + $0x154] ss:$12 sps:$4 sm:$0xff]  }
  0x6c   :  { %4738 = vmatprep.subr.bf16.mxu0 %v4981_v2  ;;  %6893 = vst [vmem:[#allocation13_spill] sm:$0xff] %v5449_v1 }
  0x6d   :  { %1582 = vmatpush2.bf16.msra.mxu1 %v5019_v14  ;;  %v5475_v14 = vld [vmem:[#allocation2 + $0x180] ss:$12 sps:$4 sm:$0xff]  }
  0x6e   :  { %1060 = vmatmul.mubr.bf16.gmra.mxu0 %v5316_v4  ;;  %1583 = vmatprep.subr.bf16.mxu1 %v6823_v0  ;;  %6900 = vst [vmem:[#allocation20_spill] sm:$0xff] %v5475_v14 }
  0x6f   :  { %1373 = vmatmul.mubr.bf16.gmra.mxu1 %v5318_v5  ;;  %1069 = vmatprep.mubr.bf16.mxu0 %v5320_v6 }
  0x70   :  { %1382 = vmatprep.mubr.bf16.mxu1 %v6823_v0  ;;  %4739 = vmatpush3.bf16.msra.mxu0 %v4981_v2  ;;  %v5455_v2 = vld [vmem:[#allocation2 + $0x150] ss:$12 sps:$4 sm:$0xff]  }
  0x71   :  { %4740 = vmatprep.subr.bf16.mxu0 %v4996_v7  ;;  %1584 = vmatpush2.bf16.msra.mxu1 %v5027_v19  ;;  %6894 = vst [vmem:[#allocation14_spill] sm:$0xff] %v5455_v2  ;;  %v5479_v19 = vld [vmem:[#allocation2 + $0x19c] ss:$12 sps:$4 sm:$0xff]  }
  0x72   :  { %1585 = vmatprep.subr.bf16.mxu1 %v6823_v0  ;;  %6902 = vst [vmem:[#allocation22_spill] sm:$0xff] %v5479_v19 }
  0x74   :  { %4741 = vmatpush3.bf16.msra.mxu0 %v4996_v7  ;;  %v5459_v7 = vld [vmem:[#allocation2 + $0x16c] ss:$12 sps:$4 sm:$0xff]  }
  0x75   :  { %4742 = vmatprep.subr.bf16.mxu0 %v5011_v12  ;;  %1586 = vmatpush2.bf16.msra.mxu1 %v5034_v21  ;;  %6896 = vst [vmem:[#allocation16_spill] sm:$0xff] %v5459_v7  ;;  %v5485_v21 = vld [vmem:[#allocation2 + $0x198] ss:$12 sps:$4 sm:$0xff]  }
  0x76   :  { %1070 = vmatmul.mubr.bf16.gmra.mxu0 %v5327_v9  ;;  %1587 = vmatprep.subr.bf16.mxu1 %v6823_v0  ;;  %6903 = vst [vmem:[#allocation23_spill] sm:$0xff] %v5485_v21 }
  0x77   :  { %1383 = vmatmul.mubr.bf16.gmra.mxu1 %v5329_v10  ;;  %1079 = vmatprep.mubr.bf16.mxu0 %v5331_v11 }
  0x78   :  { %1392 = vmatprep.mubr.bf16.mxu1 %v6823_v0  ;;  %4743 = vmatpush3.bf16.msra.mxu0 %v5011_v12  ;;  %v5467_v12 = vld [vmem:[#allocation2 + $0x1d0] ss:$12 sps:$4 sm:$0xff]  }
  0x79   :  { %4744 = vmatprep.subr.bf16.mxu0 %v5026_v18  ;;  %1588 = vmatpush2.bf16.msra.mxu1 %v5042_v25  ;;  %6898 = vst [vmem:[#allocation18_spill] sm:$0xff] %v5467_v12  ;;  %v5489_v25 = vld [vmem:[#allocation2 + $0x1b4] ss:$12 sps:$4 sm:$0xff]  }
  0x7a   :  { %1589 = vmatprep.subr.bf16.mxu1 %v6823_v0  ;;  %6905 = vst [vmem:[#allocation25_spill] sm:$0xff] %v5489_v25 }
  0x7c   :  { %4745 = vmatpush3.bf16.msra.mxu0 %v5026_v18  ;;  %v5477_v18 = vld [vmem:[#allocation2 + $0x1e8] ss:$12 sps:$4 sm:$0xff]  }
  0x7d   :  { %4746 = vmatprep.subr.bf16.mxu0 %v5041_v24  ;;  %1590 = vmatpush2.bf16.msra.mxu1 %v5043_v27  ;;  %6901 = vst [vmem:[#allocation21_spill] sm:$0xff] %v5477_v18  ;;  %v5495_v27 = vld [vmem:[#allocation2 + $0x1b0] ss:$12 sps:$4 sm:$0xff]  }
  0x7e   :  { %1080 = vmatmul.mubr.bf16.gmra.mxu0 %v5339_v15  ;;  %1591 = vmatprep.subr.bf16.mxu1 %v6823_v0  ;;  %6906 = vst [vmem:[#allocation26_spill] sm:$0xff] %v5495_v27 }
  0x7f   :  { %1393 = vmatmul.mubr.bf16.gmra.mxu1 %v5341_v16  ;;  %1089 = vmatprep.mubr.bf16.mxu0 %v5344_v17 }
  0x80   :  { %1402 = vmatprep.mubr.bf16.mxu1 %v6823_v0  ;;  %4747 = vmatpush3.bf16.msra.mxu0 %v5041_v24  ;;  %v5487_v24 = vld [vmem:[#allocation2 + $0x200] ss:$12 sps:$4 sm:$0xff]  }
  0x81   :  { %1592 = vmatpush2.bf16.msra.mxu1 %v5048_v30  ;;  %4748 = vmatprep.subr.bf16.mxu0 %v5056_v34  ;;  %6904 = vst [vmem:[#allocation24_spill] sm:$0xff] %v5487_v24  ;;  %v5497_v30 = vld [vmem:[#allocation2 + $0x218] ss:$12 sps:$4 sm:$0xff]  }
  0x82   :  { %1593 = vmatprep.subr.bf16.mxu1 %v6823_v0  ;;  %6907 = vst [vmem:[#allocation27_spill] sm:$0xff] %v5497_v30 }
  0x84   :  { %4749 = vmatpush3.bf16.msra.mxu0 %v5056_v34  ;;  %v5505_v34 = vld [vmem:[#allocation2 + $0x1c8] ss:$12 sps:$4 sm:$0xff]  }
  0x85   :  { %1594 = vmatpush2.bf16.msra.mxu1 %v5049_v31  ;;  %3296 = vmatprep.subr.bf16.mxu0 %v5068_v55  ;;  %v5499_v31 = vld [vmem:[#allocation2 + $0x1cc] ss:$12 sps:$4 sm:$0xff]   ;;  %6909 = vst [vmem:[#allocation29_spill] sm:$0xff] %v5505_v34  ;;  %v5509_v55 = vld [vmem:[#allocation2 + $0x1e4] ss:$12 sps:$4 sm:$0xff]  }
  0x86   :  { %1090 = vmatmul.mubr.bf16.gmra.mxu0 %v5350_v20  ;;  %3569 = vmatprep.subr.bf16.mxu1 %v5065_v50  ;;  %6908 = vst [vmem:[#allocation28_spill] sm:$0xff] %v5499_v31  ;;  %v5507_v50 = vld [vmem:[#allocation2 + $0x230] ss:$12 sps:$4 sm:$0xff]   ;;  %6911 = vst [vmem:[#allocation31_spill] sm:$0xff] %v5509_v55 }
  0x87   :  { %1403 = vmatmul.mubr.bf16.gmra.mxu1 %v5353_v22  ;;  %1099 = vmatprep.mubr.bf16.mxu0 %v5355_v23  ;;  %6910 = vst [vmem:[#allocation30_spill] sm:$0xff] %v5507_v50 }
  0x88   :  { %1412 = vmatprep.mubr.bf16.mxu1 %v6823_v0 }
  0x8e   :  { %1100 = vmatmul.mubr.bf16.gmra.mxu0 %v5362_v26 }
  0x8f   :  { %1413 = vmatmul.mubr.bf16.gmra.mxu1 %v5364_v28  ;;  %1109 = vmatprep.mubr.bf16.mxu0 %v5367_v29 }
  0x90   :  { %1422 = vmatprep.mubr.bf16.mxu1 %v6823_v0 }
  0x96   :  { %1110 = vmatmul.mubr.bf16.gmra.mxu0 %v5373_v32 }
  0x97   :  { %1423 = vmatmul.mubr.bf16.gmra.mxu1 %v5375_v33  ;;  %1119 = vmatprep.mubr.bf16.mxu0 %v5379_v35 }
  0x98   :  { %1432 = vmatprep.mubr.bf16.mxu1 %v6823_v0 }
  0x9e   :  { %1120 = vmatmul.mubr.bf16.gmra.mxu0 %v5385_v36 }
  0x9f   :  { %1433 = vmatmul.mubr.bf16.gmra.mxu1 %v5387_v37  ;;  %1129 = vmatprep.mubr.bf16.mxu0 %v5389_v38 }
  0xa0   :  { %1442 = vmatprep.mubr.bf16.mxu1 %v6823_v0 }
  0xa6   :  { %1130 = vmatmul.mubr.bf16.gmra.mxu0 %v5395_v40 }
  0xa7   :  { %1443 = vmatmul.mubr.bf16.gmra.mxu1 %v5397_v41  ;;  %1139 = vmatprep.mubr.bf16.mxu0 %v5399_v42 }
  0xa8   :  { %1452 = vmatprep.mubr.bf16.mxu1 %v6823_v0 }
  0xae   :  { %1140 = vmatmul.mubr.bf16.gmra.mxu0 %v5405_v43 }
  0xaf   :  { %1453 = vmatmul.mubr.bf16.gmra.mxu1 %v5407_v44  ;;  %1149 = vmatprep.mubr.bf16.mxu0 %v5409_v45 }
  0xb0   :  { %1462 = vmatprep.mubr.bf16.mxu1 %v6823_v0 }
  0xb6   :  { %1150 = vmatmul.mubr.bf16.gmra.mxu0 %v5415_v46 }
  0xb7   :  { %1463 = vmatmul.mubr.bf16.gmra.mxu1 %v5417_v48  ;;  %1159 = vmatprep.mubr.bf16.mxu0 %v5419_v49 }
  0xb8   :  { %1472 = vmatprep.mubr.bf16.mxu1 %v6823_v0 }
  0xbe   :  { %1160 = vmatmul.mubr.bf16.gmra.mxu0 %v5425_v51 }
  0xbf   :  { %1473 = vmatmul.mubr.bf16.gmra.mxu1 %v5427_v52  ;;  %1169 = vmatprep.mubr.bf16.mxu0 %v5429_v53 }
  0xc0   :  { %1482 = vmatprep.mubr.bf16.mxu1 %v6823_v0 }
  0xc6   :  { %1170 = vmatmul.mubr.bf16.gmra.mxu0 %v5435_v56 }
  0xc7   :  { %1483 = vmatmul.mubr.bf16.gmra.mxu1 %v5437_v57  ;;  %1179 = vmatprep.mubr.bf16.mxu0 %v5439_v58 }
  0xc8   :  { %1492 = vmatprep.mubr.bf16.mxu1 %v6823_v0 }
  0xce   :  { %1180 = vmatmul.mubr.bf16.gmra.mxu0 %v5445_v59 }
  0xcf   :  { %1493 = vmatmul.mubr.bf16.gmra.mxu1 %v5447_v63  ;;  %1189 = vmatprep.mubr.bf16.mxu0 %v5449_v1  ;;  %v5074_v1 = vld [vmem:[#allocation7 + $0x7c] ss:$12 sps:$4 sm:$0xff]  }
  0xd0   :  { %1502 = vmatprep.mubr.bf16.mxu1 %v6823_v0 }
  0xd6   :  { %1190 = vmatmul.mubr.bf16.gmra.mxu0 %v5455_v2  ;;  %v5069_v2 = vld [vmem:[#allocation7 + $0x90] ss:$12 sps:$4 sm:$0xff]  }
  0xd7   :  { %1503 = vmatmul.mubr.bf16.gmra.mxu1 %v5457_v3  ;;  %1199 = vmatprep.mubr.bf16.mxu0 %v5459_v7  ;;  %v5071_v7 = vld [vmem:[#allocation7 + $0x94] ss:$12 sps:$4 sm:$0xff]  }
  0xd8   :  { %1512 = vmatprep.mubr.bf16.mxu1 %v6823_v0 }
  0xde   :  { %1200 = vmatmul.mubr.bf16.gmra.mxu0 %v5465_v8  ;;  %v5559_v8 = vld [vmem:[#allocation2 + $0x228] ss:$12 sps:$4 sm:$0xff]  }
  0xdf   :  { %1513 = vmatmul.mubr.bf16.gmra.mxu1 %v5467_v12  ;;  %1209 = vmatprep.mubr.bf16.mxu0 %v5469_v13  ;;  %v5529_v13 = vld [vmem:[#allocation2 + $0x214] ss:$12 sps:$4 sm:$0xff]   ;;  %6918 = vst [vmem:[#allocation38_spill] sm:$0xff] %v5559_v8 }
  0xe0   :  { %1522 = vmatprep.mubr.bf16.mxu1 %v6823_v0  ;;  %6915 = vst [vmem:[#allocation35_spill] sm:$0xff] %v5529_v13 }
  0xe6   :  { %1210 = vmatmul.mubr.bf16.gmra.mxu0 %v5475_v14  ;;  %v5527_v14 = vld [vmem:[#allocation2 + $0x1f8] ss:$12 sps:$4 sm:$0xff]  }
  0xe7   :  { %1523 = vmatmul.mubr.bf16.gmra.mxu1 %v5477_v18  ;;  %1219 = vmatprep.mubr.bf16.mxu0 %v5479_v19  ;;  %6914 = vst [vmem:[#allocation34_spill] sm:$0xff] %v5527_v14 }
  0xe8   :  { %1532 = vmatprep.mubr.bf16.mxu1 %v6823_v0 }
  0xee   :  { %1220 = vmatmul.mubr.bf16.gmra.mxu0 %v5485_v21 }
  0xef   :  { %1533 = vmatmul.mubr.bf16.gmra.mxu1 %v5487_v24  ;;  %1229 = vmatprep.mubr.bf16.mxu0 %v5489_v25  ;;  %v5517_v25 = vld [vmem:[#allocation2 + $0x1fc] ss:$12 sps:$4 sm:$0xff]  }
  0xf0   :  { %1542 = vmatprep.mubr.bf16.mxu1 %v6823_v0  ;;  %6913 = vst [vmem:[#allocation33_spill] sm:$0xff] %v5517_v25 }
  0xf6   :  { %1230 = vmatmul.mubr.bf16.gmra.mxu0 %v5495_v27  ;;  %v5515_v27 = vld [vmem:[#allocation2 + $0x1e0] ss:$12 sps:$4 sm:$0xff]  }
  0xf7   :  { %1543 = vmatmul.mubr.bf16.gmra.mxu1 %v5497_v30  ;;  %1239 = vmatprep.mubr.bf16.mxu0 %v5499_v31  ;;  %6912 = vst [vmem:[#allocation32_spill] sm:$0xff] %v5515_v27  ;;  %v5063_v31 = vld [vmem:[#allocation7 + $0x228] ss:$12 sps:$4 sm:$0xff]  }
  0xf8   :  { %1552 = vmatprep.mubr.bf16.mxu1 %v6823_v0  ;;  %v5080_v0 = vld [vmem:[#allocation7 + $0x214] ss:$12 sps:$4 sm:$0xff]  }
  0xfe   :  { %1240 = vmatmul.mubr.bf16.gmra.mxu0 %v5505_v34 }
  0xff   :  { %1553 = vmatmul.mubr.bf16.gmra.mxu1 %v5507_v50  ;;  %1249 = vmatprep.mubr.bf16.mxu0 %v5509_v55  ;;  %v5078_v55 = vld [vmem:[#allocation7 + $0x210] ss:$12 sps:$4 sm:$0xff]  }
 0x100   :  { %1595 = vmatprep.mubr.bf16.mxu1 %v5288_v39  ;;  %v5098_v39 = vld [vmem:[#allocation7 + $0x1fc] ss:$12 sps:$4 sm:$0xff]  }
 0x106   :  { %1250 = vmatmul.mubr.bf16.gmra.mxu0 %v5515_v27 }
 0x107   :  { %v1324_v21 = vpop.f32.mrf.mxu1  ;;  %1596 = vmatmul.mubr.bf16.vlgmr.msra.gmra.mxu1 %v5304_v60  ;;  %1259 = vmatprep.mubr.bf16.mxu0 %v5517_v25  ;;  %v5096_v60 = vld [vmem:[#allocation7 + $0x1f8] ss:$12 sps:$4 sm:$0xff]  }
 0x108   :  { %1603 = vmatprep.mubr.bf16.mxu1 %v5309_v62  ;;  %3570 = vmatpush1.bf16.msra.mxu1 %v5063_v31  ;;  %v5119_v25 = vld [vmem:[#allocation7 + $0x1e4] ss:$12 sps:$4 sm:$0xff]   ;;  %v5117_v31 = vld [vmem:[#allocation7 + $0x1e0] ss:$12 sps:$4 sm:$0xff]  }
 0x109   :  { %v5523_v34 = vpop.f32.mrf.mxu1  ;;  %3571 = vmatprep.subr.bf16.mxu1 %v5080_v0 }
 0x10b   :  { %v5525_v19 = vpop.f32.mrf.mxu1 }
 0x10c   :  { %3572 = vmatpush1.bf16.msra.mxu1 %v5078_v55  ;;  %v5543_v55 = vld [vmem:[#allocation2 + $0x210] ss:$12 sps:$4 sm:$0xff]  }
 0x10d   :  { %v5531_v27 = vpop.f32.mrf.mxu1  ;;  %3573 = vmatprep.subr.bf16.mxu1 %v5098_v39  ;;  %6916 = vst [vmem:[#allocation36_spill] sm:$0xff] %v5543_v55  ;;  %v5545_v39 = vld [vmem:[#allocation2 + $0x22c] ss:$12 sps:$4 sm:$0xff]  }
 0x10e   :  { %1260 = vmatmul.mubr.bf16.gmra.mxu0 %v5527_v14  ;;  %6917 = vst [vmem:[#allocation37_spill] sm:$0xff] %v5545_v39 }
 0x10f   :  { %v5534_v62 = vpop.f32.mrf.mxu1  ;;  %1604 = vmatmul.mubr.bf16.gmra.mxu1 %v5316_v4  ;;  %1269 = vmatprep.mubr.bf16.mxu0 %v5529_v13 }
 0x110   :  { %1611 = vmatprep.mubr.bf16.mxu1 %v5320_v6  ;;  %3574 = vmatpush1.bf16.msra.mxu1 %v5096_v60  ;;  %v5125_v60 = vld [vmem:[#allocation7 + $0x1cc] ss:$12 sps:$4 sm:$0xff]  }
 0x111   :  { %v5539_v0 = vpop.f32.mrf.mxu1  ;;  %3575 = vmatprep.subr.bf16.mxu1 %v5119_v25  ;;  %v5123_v25 = vld [vmem:[#allocation7 + $0x1c8] ss:$12 sps:$4 sm:$0xff]  }
 0x113   :  { %v5541_v50 = vpop.f32.mrf.mxu1 }
 0x114   :  { %3576 = vmatpush1.bf16.msra.mxu1 %v5117_v31 }
 0x115   :  { %v5547_v14 = vpop.f32.mrf.mxu1  ;;  %3577 = vmatprep.subr.bf16.mxu1 %v5125_v60  ;;  %v5066_v60 = vld [vmem:[#allocation7 + $0xa8] ss:$12 sps:$4 sm:$0xff]  }
 0x116   :  { %1270 = vmatmul.mubr.bf16.gmra.mxu0 %v5543_v55 }
 0x117   :  { %v5550_v4 = vpop.f32.mrf.mxu1  ;;  %1612 = vmatmul.mubr.bf16.gmra.mxu1 %v5327_v9  ;;  %1279 = vmatprep.mubr.bf16.mxu0 %v5545_v39  ;;  %v5159_v9 = vld [vmem:[#allocation2 + $0x8] ss:$12 sps:$4 sm:$0xff]  }
 0x118   :  { %1619 = vmatprep.mubr.bf16.mxu1 %v5331_v11  ;;  %3578 = vmatpush1.bf16.msra.mxu1 %v5123_v25 }
 0x119   :  { %v5555_v6 = vpop.f32.mrf.mxu1 }
 0x11b   :  { %v5557_v13 = vpop.f32.mrf.mxu1 }
 0x11d   :  { %v5561_v31 = vpop.f32.mrf.mxu1 }
 0x11e   :  { %1280 = vmatmul.mubr.bf16.gmra.mxu0 %v5559_v8  ;;  %v5160_v8 = vld [vmem:[#allocation2 + $0x20] ss:$12 sps:$4 sm:$0xff]  }
 0x11f   :  { %v5564_v55 = vpop.f32.mrf.mxu1  ;;  %1620 = vmatmul.mubr.bf16.gmra.mxu1 %v5339_v15  ;;  %4750 = vmatprep.mubr.bf16.mxu0 %v5159_v9 }
 0x120   :  { %1627 = vmatprep.mubr.bf16.mxu1 %v5344_v17 }
 0x121   :  { %v5568_v11 = vpop.f32.mrf.mxu1 }
 0x123   :  { %v5570_v39 = vpop.f32.mrf.mxu1 }
 0x125   :  { %v5572_v30 = vpop.f32.mrf.mxu1 }
 0x126   :  { %v1051_v24 = vpop.f32.mrf.mxu0  ;;  %4751 = vmatmul.mubr.bf16.vlgmr.msra.gmra.mxu0 %v5160_v8 }
 0x127   :  { %v5574_v25 = vpop.f32.mrf.mxu1  ;;  %1628 = vmatmul.mubr.bf16.gmra.mxu1 %v5350_v20  ;;  %v1325_v15 = vadd.f32 %v1324_v21, %v1051_v24  ;;  %4754 = vmatprep.mubr.bf16.mxu0 %v5293_v47  ;;  %v5077_v24 = vld [vmem:[#allocation7 + $0x64] ss:$12 sps:$4 sm:$0xff]  }
 0x128   :  { %1635 = vmatprep.mubr.bf16.mxu1 %v5355_v23  ;;  %v1053_v17 = vpop.f32.mrf.mxu0  ;;  %3297 = vmatpush1.bf16.msra.mxu0 %v5066_v60  ;;  %v5072_v23 = vld [vmem:[#allocation7 + $0x78] ss:$12 sps:$4 sm:$0xff]  }
 0x129   :  { %v5579_v9 = vpop.f32.mrf.mxu1  ;;  %v1327_v18 = vadd.f32 %v5523_v34, %v1053_v17  ;;  %3298 = vmatprep.subr.bf16.mxu0 %v5071_v7  ;;  %v5130_v17 = vld [vmem:[#allocation7 + $0x1b4] ss:$12 sps:$4 sm:$0xff]  }
 0x12a   :  { %v1055_v12 = vpop.f32.mrf.mxu0  ;;  %3579 = vmatprep.subr.bf16.mxu1 %v5130_v17  ;;  %v5092_v17 = vld [vmem:[#allocation7 + $0x4] ss:$12 sps:$4 sm:$0xff]  }
 0x12b   :  { %v5582_v59 = vpop.f32.mrf.mxu1  ;;  %v1329_v20 = vadd.f32 %v5525_v19, %v1055_v12  ;;  %v5075_v19 = vld [vmem:[#allocation7 + $0x60] ss:$12 sps:$4 sm:$0xff]  }
 0x12c   :  { %v1057_v8 = vpop.f32.mrf.mxu0  ;;  %3299 = vmatpush1.bf16.msra.mxu0 %v5069_v2 }
 0x12d   :  { %v5585_v21 = vpop.f32.mrf.mxu1  ;;  %v1331_v47 = vadd.f32 %v5531_v27, %v1057_v8  ;;  %3300 = vmatprep.subr.bf16.mxu0 %v5074_v1  ;;  %v5588_v60 = vpack.c.bf16 %v1329_v20, %v1325_v15  ;;  %v5083_v15 = vld [vmem:[#allocation7 + $0x4c] ss:$12 sps:$4 sm:$0xff]  }
 0x12e   :  { %v1061_v3 = vpop.f32.mrf.mxu0  ;;  %4755 = vmatmul.mubr.bf16.gmra.mxu0 %v5299_v54 }
 0x12f   :  { %v5590_v34 = vpop.f32.mrf.mxu1  ;;  %1636 = vmatmul.mubr.bf16.gmra.mxu1 %v5362_v26  ;;  %v1335_v7 = vadd.f32 %v5534_v62, %v1061_v3  ;;  %4758 = vmatprep.mubr.bf16.mxu0 %v5306_v61  ;;  %v5597_v2 = vpack.c.bf16 %v1331_v47, %v1327_v18  ;;  %v5128_v26 = vld [vmem:[#allocation7 + $0x1b0] ss:$12 sps:$4 sm:$0xff]   ;;  %v5081_v18 = vld [vmem:[#allocation7 + $0x48] ss:$12 sps:$4 sm:$0xff]  }
 0x130   :  { %1643 = vmatprep.mubr.bf16.mxu1 %v5367_v29  ;;  %v1063_v12 = vpop.f32.mrf.mxu0  ;;  %3301 = vmatpush1.bf16.msra.mxu0 %v5072_v23 }
 0x131   :  { %v5599_v1 = vpop.f32.mrf.mxu1  ;;  %v1337_v27 = vadd.f32 %v5539_v0, %v1063_v12  ;;  %3302 = vmatprep.subr.bf16.mxu0 %v5077_v24  ;;  %3580 = vmatpush1.bf16.msra.mxu1 %v5128_v26  ;;  %v5086_v0 = vld [vmem:[#allocation7 + $0x34] ss:$12 sps:$4 sm:$0xff]  }
 0x132   :  { %v1065_v54 = vpop.f32.mrf.mxu0 }
 0x133   :  { %v5602_v20 = vpop.f32.mrf.mxu1  ;;  %v1339_v29 = vadd.f32 %v5541_v50, %v1065_v54 }
 0x134   :  { %v1067_v61 = vpop.f32.mrf.mxu0  ;;  %3303 = vmatpush1.bf16.msra.mxu0 %v5075_v19 }
 0x135   :  { %v5605_v3 = vpop.f32.mrf.mxu1  ;;  %v1341_v62 = vadd.f32 %v5547_v14, %v1067_v61  ;;  %3304 = vmatprep.subr.bf16.mxu0 %v5083_v15  ;;  %v5608_v8 = vpack.c.bf16 %v1339_v29, %v1335_v7  ;;  %v5084_v7 = vld [vmem:[#allocation7 + $0x30] ss:$12 sps:$4 sm:$0xff]  }
 0x136   :  { %v1071_v23 = vpop.f32.mrf.mxu0  ;;  %4759 = vmatmul.mubr.bf16.gmra.mxu0 %v5318_v5  ;;  %v5089_v15 = vld [vmem:[#allocation7 + $0x1c] ss:$12 sps:$4 sm:$0xff]  }
 0x137   :  { %v5610_v47 = vpop.f32.mrf.mxu1  ;;  %1644 = vmatmul.mubr.bf16.gmra.mxu1 %v5373_v32  ;;  %v1345_v50 = vadd.f32 %v5550_v4, %v1071_v23  ;;  %4762 = vmatprep.mubr.bf16.mxu0 %v5329_v10  ;;  %v5617_v24 = vpack.c.bf16 %v1341_v62, %v1337_v27  ;;  %v5087_v10 = vld [vmem:[#allocation7 + $0x18] ss:$12 sps:$4 sm:$0xff]   ;;  %v5090_v62 = vld [vmem:[#allocation7] ss:$12 sps:$4 sm:$0xff]  }
 0x138   :  { %1651 = vmatprep.mubr.bf16.mxu1 %v5379_v35  ;;  %v1073_v14 = vpop.f32.mrf.mxu0  ;;  %3305 = vmatpush1.bf16.msra.mxu0 %v5081_v18  ;;  %v5095_v23 = vld [vmem:[#allocation7 + $0x16c] ss:$12 sps:$4 sm:$0xff]  }
 0x139   :  { %v5619_v12 = vpop.f32.mrf.mxu1  ;;  %v1347_v19 = vadd.f32 %v5555_v6, %v1073_v14  ;;  %3306 = vmatprep.subr.bf16.mxu0 %v5086_v0 }
 0x13a   :  { %v1075_v32 = vpop.f32.mrf.mxu0 }
 0x13b   :  { %v5622_v26 = vpop.f32.mrf.mxu1  ;;  %v1349_v5 = vadd.f32 %v5557_v13, %v1075_v32 }
 0x13c   :  { %v1077_v4 = vpop.f32.mrf.mxu0  ;;  %3307 = vmatpush1.bf16.msra.mxu0 %v5084_v7  ;;  %v5101_v7 = vld [vmem:[#allocation7 + $0x154] ss:$12 sps:$4 sm:$0xff]  }
 0x13d   :  { %v5625_v35 = vpop.f32.mrf.mxu1  ;;  %v1351_v27 = vadd.f32 %v5561_v31, %v1077_v4  ;;  %3308 = vmatprep.subr.bf16.mxu0 %v5089_v15  ;;  %v5628_v54 = vpack.c.bf16 %v1349_v5, %v1345_v50  ;;  %v5099_v4 = vld [vmem:[#allocation7 + $0x150] ss:$12 sps:$4 sm:$0xff]  }
 0x13e   :  { %v1081_v29 = vpop.f32.mrf.mxu0  ;;  %4763 = vmatmul.mubr.bf16.gmra.mxu0 %v5341_v16 }
 0x13f   :  { %v5630_v6 = vpop.f32.mrf.mxu1  ;;  %1652 = vmatmul.mubr.bf16.gmra.mxu1 %v5385_v36  ;;  %v1355_v13 = vadd.f32 %v5564_v55, %v1081_v29  ;;  %4766 = vmatprep.mubr.bf16.mxu0 %v5353_v22  ;;  %v5637_v61 = vpack.c.bf16 %v1351_v27, %v1347_v19  ;;  %v5093_v22 = vld [vmem:[#allocation7 + $0x168] ss:$12 sps:$4 sm:$0xff]  }
 0x140   :  { %1659 = vmatprep.mubr.bf16.mxu1 %v5389_v38  ;;  %v1083_v31 = vpop.f32.mrf.mxu0  ;;  %3309 = vmatpush1.bf16.msra.mxu0 %v5087_v10  ;;  %v5104_v27 = vld [vmem:[#allocation7 + $0x13c] ss:$12 sps:$4 sm:$0xff]  }
 0x141   :  { %v5639_v18 = vpop.f32.mrf.mxu1  ;;  %v1357_v0 = vadd.f32 %v5568_v11, %v1083_v31  ;;  %3310 = vmatprep.subr.bf16.mxu0 %v5092_v17  ;;  %v5135_v17 = vld [vmem:[#allocation7 + $0x19c] ss:$12 sps:$4 sm:$0xff]  }
 0x142   :  { %v1085_v36 = vpop.f32.mrf.mxu0  ;;  %3581 = vmatprep.subr.bf16.mxu1 %v5135_v17 }
 0x143   :  { %v5642_v50 = vpop.f32.mrf.mxu1  ;;  %v1359_v16 = vadd.f32 %v5570_v39, %v1085_v36 }
 0x144   :  { %v1087_v55 = vpop.f32.mrf.mxu0  ;;  %3311 = vmatpush1.bf16.msra.mxu0 %v5090_v62 }
 0x145   :  { %v5645_v38 = vpop.f32.mrf.mxu1  ;;  %v1361_v14 = vadd.f32 %v5572_v30, %v1087_v55  ;;  %3312 = vmatprep.subr.bf16.mxu0 %v5095_v23  ;;  %v5648_v19 = vpack.c.bf16 %v1359_v16, %v1355_v13  ;;  %v5102_v13 = vld [vmem:[#allocation7 + $0x138] ss:$12 sps:$4 sm:$0xff]   ;;  %v5105_v55 = vld [vmem:[#allocation7 + $0x120] ss:$12 sps:$4 sm:$0xff]  }
 0x146   :  { %v1091_v15 = vpop.f32.mrf.mxu0  ;;  %4767 = vmatmul.mubr.bf16.gmra.mxu0 %v5364_v28 }
 0x147   :  { %v5650_v11 = vpop.f32.mrf.mxu1  ;;  %1660 = vmatmul.mubr.bf16.gmra.mxu1 %v5395_v40  ;;  %v1365_v39 = vadd.f32 %v5574_v25, %v1091_v15  ;;  %4770 = vmatprep.mubr.bf16.mxu0 %v5375_v33  ;;  %v5657_v32 = vpack.c.bf16 %v1361_v14, %v1357_v0  ;;  %v5133_v40 = vld [vmem:[#allocation7 + $0x198] ss:$12 sps:$4 sm:$0xff]  }
 0x148   :  { %1667 = vmatprep.mubr.bf16.mxu1 %v5399_v42  ;;  %v1093_v30 = vpop.f32.mrf.mxu0  ;;  %3313 = vmatpush2.bf16.msra.mxu0 %v5093_v22  ;;  %v5110_v14 = vld [vmem:[#allocation7 + $0x10c] ss:$12 sps:$4 sm:$0xff]  }
 0x149   :  { %v5659_v5 = vpop.f32.mrf.mxu1  ;;  %v1367_v10 = vadd.f32 %v5579_v9, %v1093_v30  ;;  %3314 = vmatprep.subr.bf16.mxu0 %v5101_v7  ;;  %3582 = vmatpush1.bf16.msra.mxu1 %v5133_v40  ;;  %v5107_v9 = vld [vmem:[#allocation7 + $0x124] ss:$12 sps:$4 sm:$0xff]  }
 0x14a   :  { %v1095_v28 = vpop.f32.mrf.mxu0  ;;  %v5111_v40 = vld [vmem:[#allocation7 + $0xf0] ss:$12 sps:$4 sm:$0xff]  }
 0x14b   :  { %v5662_v29 = vpop.f32.mrf.mxu1  ;;  %v1369_v42 = vadd.f32 %v5582_v59, %v1095_v28  ;;  %v5116_v28 = vld [vmem:[#allocation7 + $0xdc] ss:$12 sps:$4 sm:$0xff]  }
 0x14c   :  { %v1097_v33 = vpop.f32.mrf.mxu0  ;;  %3315 = vmatpush2.bf16.msra.mxu0 %v5099_v4 }
 0x14d   :  { %v5665_v25 = vpop.f32.mrf.mxu1  ;;  %v1371_v31 = vadd.f32 %v5585_v21, %v1097_v33  ;;  %3316 = vmatprep.subr.bf16.mxu0 %v5104_v27  ;;  %v5668_v62 = vpack.c.bf16 %v1369_v42, %v1365_v39  ;;  %v5113_v39 = vld [vmem:[#allocation7 + $0xf4] ss:$12 sps:$4 sm:$0xff]  }
 0x14e   :  { %v1101_v0 = vpop.f32.mrf.mxu0  ;;  %4771 = vmatmul.mubr.bf16.gmra.mxu0 %v5387_v37 }
 0x14f   :  { %6919 = vst [vmem:[#allocation39_spill] sm:$0xff] %v5668_v62  ;;  %v5670_v23 = vpop.f32.mrf.mxu1  ;;  %1668 = vmatmul.mubr.bf16.gmra.mxu1 %v5405_v43  ;;  %v1375_v59 = vadd.f32 %v5590_v34, %v1101_v0  ;;  %4774 = vmatprep.mubr.bf16.mxu0 %v5397_v41  ;;  %v5677_v36 = vpack.c.bf16 %v1371_v31, %v1367_v10  ;;  %v5108_v41 = vld [vmem:[#allocation7 + $0x108] ss:$12 sps:$4 sm:$0xff]  }
 0x150   :  { %1675 = vmatprep.mubr.bf16.mxu1 %v5409_v45  ;;  %v1103_v21 = vpop.f32.mrf.mxu0  ;;  %3317 = vmatpush2.bf16.msra.mxu0 %v5102_v13  ;;  %v5122_v13 = vld [vmem:[#allocation7 + $0xc4] ss:$12 sps:$4 sm:$0xff]  }
 0x151   :  { %v5679_v16 = vpop.f32.mrf.mxu1  ;;  %v1377_v22 = vadd.f32 %v5599_v1, %v1103_v21  ;;  %3318 = vmatprep.subr.bf16.mxu0 %v5107_v9  ;;  %v5120_v21 = vld [vmem:[#allocation7 + $0xc0] ss:$12 sps:$4 sm:$0xff]  }
 0x152   :  { %v1105_v43 = vpop.f32.mrf.mxu0 }
 0x153   :  { %v5682_v7 = vpop.f32.mrf.mxu1  ;;  %v1379_v37 = vadd.f32 %v5602_v20, %v1105_v43 }
 0x154   :  { %v1107_v34 = vpop.f32.mrf.mxu0  ;;  %3319 = vmatpush2.bf16.msra.mxu0 %v5105_v55 }
 0x155   :  { %v5685_v45 = vpop.f32.mrf.mxu1  ;;  %v1381_v15 = vadd.f32 %v5605_v3, %v1107_v34  ;;  %3320 = vmatprep.subr.bf16.mxu0 %v5110_v14  ;;  %v5688_v30 = vpack.c.bf16 %v1379_v37, %v1375_v59  ;;  %v6924_v37 = vmov 0  }
 0x156   :  { %v1111_v4 = vpop.f32.mrf.mxu0  ;;  %4775 = vmatmul.mubr.bf16.gmra.mxu0 %v5407_v44 }
 0x157   :  { %6920 = vst [vmem:[#allocation40_spill] sm:$0xff] %v5688_v30  ;;  %v5690_v1 = vpop.f32.mrf.mxu1  ;;  %1676 = vmatmul.mubr.bf16.gmra.mxu1 %v5415_v46  ;;  %v1385_v20 = vadd.f32 %v5610_v47, %v1111_v4  ;;  %4778 = vmatprep.mubr.bf16.mxu0 %v5417_v48  ;;  %v5697_v10 = vpack.c.bf16 %v1381_v15, %v1377_v22  ;;  %v5114_v48 = vld [vmem:[#allocation7 + $0xd8] ss:$12 sps:$4 sm:$0xff]   ;;  %v5138_v22 = vld [vmem:[#allocation7 + $0x180] ss:$12 sps:$4 sm:$0xff]  }
 0x158   :  { %1683 = vmatprep.mubr.bf16.mxu1 %v5419_v49  ;;  %v1113_v3 = vpop.f32.mrf.mxu0  ;;  %3321 = vmatpush2.bf16.msra.mxu0 %v5108_v41  ;;  %v6926_v15 = vld [vmem:[#allocation15_spill] sm:$0xff] }
 0x159   :  { %6921 = vst [vmem:[#allocation41_spill] sm:$0xff] %v5697_v10  ;;  %v5699_v27 = vpop.f32.mrf.mxu1  ;;  %v1387_v17 = vadd.f32 %v5619_v12, %v1113_v3  ;;  %3322 = vmatprep.subr.bf16.mxu0 %v5113_v39 }
 0x15a   :  { %v1115_v46 = vpop.f32.mrf.mxu0 }
 0x15b   :  { %v5702_v42 = vpop.f32.mrf.mxu1  ;;  %v1389_v44 = vadd.f32 %v5622_v26, %v1115_v46 }
 0x15c   :  { %v1117_v47 = vpop.f32.mrf.mxu0  ;;  %3323 = vmatpush2.bf16.msra.mxu0 %v5111_v40 }
 0x15d   :  { %v5705_v49 = vpop.f32.mrf.mxu1  ;;  %v1391_v33 = vadd.f32 %v5625_v35, %v1117_v47  ;;  %3324 = vmatprep.subr.bf16.mxu0 %v5116_v28  ;;  %v5708_v31 = vpack.c.bf16 %v1389_v44, %v1385_v20  ;;  %v6929_v44 = vld [vmem:[#allocation12_spill] sm:$0xff]  ;;  %v6930_v47 = vld [vmem:[#allocation18_spill] sm:$0xff] }
 0x15e   :  { %v1121_v9 = vpop.f32.mrf.mxu0  ;;  %4779 = vmatmul.mubr.bf16.gmra.mxu0 %v5427_v52 }
 0x15f   :  { %6922 = vst [vmem:[#allocation42_spill] sm:$0xff] %v5708_v31  ;;  %v5710_v12 = vpop.f32.mrf.mxu1  ;;  %1684 = vmatmul.mubr.bf16.gmra.mxu1 %v5425_v51  ;;  %v1395_v26 = vadd.f32 %v5630_v6, %v1121_v9  ;;  %4782 = vmatprep.mubr.bf16.mxu0 %v5437_v57  ;;  %v5717_v0 = vpack.c.bf16 %v1391_v33, %v1387_v17  ;;  %v5140_v51 = vld [vmem:[#allocation7 + $0x184] ss:$12 sps:$4 sm:$0xff]   ;;  %v6932_v33 = vld [vmem:[#allocation21_spill] sm:$0xff] }
 0x160   :  { %1691 = vmatprep.mubr.bf16.mxu1 %v5429_v53  ;;  %v1123_v35 = vpop.f32.mrf.mxu0  ;;  %3325 = vmatpush2.bf16.msra.mxu0 %v5114_v48  ;;  %v6931_v48 = vld [vmem:[#allocation13_spill] sm:$0xff] }
 0x161   :  { %6923 = vst [vmem:[#allocation43_spill] sm:$0xff] %v5717_v0  ;;  %v5719_v59 = vpop.f32.mrf.mxu1  ;;  %v1397_v55 = vadd.f32 %v5639_v18, %v1123_v35  ;;  %3326 = vmatprep.subr.bf16.mxu0 %v5122_v13  ;;  %3583 = vmatprep.subr.bf16.mxu1 %v5140_v51 }
 0x162   :  { %v1125_v14 = vpop.f32.mrf.mxu0  ;;  %3584 = vmatpush1.bf16.msra.mxu1 %v5138_v22 }
 0x163   :  { %v5722_v52 = vpop.f32.mrf.mxu1  ;;  %v1399_v6 = vadd.f32 %v5642_v50, %v1125_v14 }
 0x164   :  { %v1127_v53 = vpop.f32.mrf.mxu0  ;;  %3327 = vmatpush2.bf16.msra.mxu0 %v5120_v21 }
 0x165   :  { %v5725_v57 = vpop.f32.mrf.mxu1  ;;  %v1401_v43 = vadd.f32 %v5645_v38, %v1127_v53  ;;  %3842 = vmatprep.subr.bf16.mxu0 %v6924_v37  ;;  %v5729_v34 = vpack.c.bf16 %v1399_v6, %v1395_v26  ;;  %v6934_v53 = vld [vmem:[#allocation14_spill] sm:$0xff] }
 0x166   :  { %v1131_v18 = vpop.f32.mrf.mxu0  ;;  %4783 = vmatmul.mubr.bf16.gmra.mxu0 %v5447_v63 }
 0x167   :  { %6925 = vst [vmem:[#allocation44_spill] sm:$0xff] %v5729_v34  ;;  %v5731_v41 = vpop.f32.mrf.mxu1  ;;  %1692 = vmatmul.mubr.bf16.gmra.mxu1 %v5435_v56  ;;  %v1405_v50 = vadd.f32 %v5650_v11, %v1131_v18  ;;  %4786 = vmatprep.mubr.bf16.mxu0 %v6926_v15  ;;  %v5738_v39 = vpack.c.bf16 %v1401_v43, %v1397_v55  ;;  %v6935_v43 = vld [vmem:[#allocation24_spill] sm:$0xff] }
 0x168   :  { %1699 = vmatprep.mubr.bf16.mxu1 %v5439_v58  ;;  %v1133_v38 = vpop.f32.mrf.mxu0  ;;  %v6936_v18 = vld [vmem:[#allocation16_spill] sm:$0xff] }
 0x169   :  { %6927 = vst [vmem:[#allocation15_spill] sm:$0xff] %v5738_v39  ;;  %v5740_v4 = vpop.f32.mrf.mxu1  ;;  %v1407_v20 = vadd.f32 %v5659_v5, %v1133_v38 }
 0x16a   :  { %v1135_v3 = vpop.f32.mrf.mxu0 }
 0x16b   :  { %v5743_v40 = vpop.f32.mrf.mxu1  ;;  %v1409_v56 = vadd.f32 %v5662_v29, %v1135_v3 }
 0x16c   :  { %v1137_v17 = vpop.f32.mrf.mxu0 }
 0x16d   :  { %v5746_v63 = vpop.f32.mrf.mxu1  ;;  %v1411_v11 = vadd.f32 %v5665_v25, %v1137_v17  ;;  %v5749_v58 = vpack.c.bf16 %v1409_v56, %v1405_v50  ;;  %v6937_v50 = vld [vmem:[#allocation27_spill] sm:$0xff] }
 0x16e   :  { %v1141_v28 = vpop.f32.mrf.mxu0  ;;  %4787 = vmatmul.mubr.bf16.gmra.mxu0 %v6930_v47 }
 0x16f   :  { %6928 = vst [vmem:[#allocation45_spill] sm:$0xff] %v5749_v58  ;;  %v5751_v46 = vpop.f32.mrf.mxu1  ;;  %1700 = vmatmul.mubr.bf16.gmra.mxu1 %v6929_v44  ;;  %v1415_v5 = vadd.f32 %v5670_v23, %v1141_v28  ;;  %4790 = vmatprep.mubr.bf16.mxu0 %v6932_v33  ;;  %v5758_v29 = vpack.c.bf16 %v1411_v11, %v1407_v20  ;;  %v5783_v20 = vld [vmem:[#allocation7 + $0x230] ss:$12 sps:$4 sm:$0xff]  }
 0x170   :  { %1707 = vmatprep.mubr.bf16.mxu1 %v6931_v48  ;;  %v1143_v13 = vpop.f32.mrf.mxu0  ;;  %4798 = vmatprep.subr.bf16.mxu1 %v5783_v20  ;;  %v6939_v48 = vld [vmem:[#allocation30_spill] sm:$0xff] }
 0x171   :  { %6933 = vst [vmem:[#allocation12_spill] sm:$0xff] %v5758_v29  ;;  %v5760_v9 = vpop.f32.mrf.mxu1  ;;  %v1417_v25 = vadd.f32 %v5679_v16, %v1143_v13 }
 0x172   :  { %v1145_v26 = vpop.f32.mrf.mxu0 }
 0x173   :  { %v5763_v35 = vpop.f32.mrf.mxu1  ;;  %v1419_v21 = vadd.f32 %v5682_v7, %v1145_v26 }
 0x174   :  { %v1147_v55 = vpop.f32.mrf.mxu0 }
 0x175   :  { %v5766_v22 = vpop.f32.mrf.mxu1  ;;  %v1421_v23 = vadd.f32 %v5685_v45, %v1147_v55  ;;  %v5769_v51 = vpack.c.bf16 %v1419_v21, %v1415_v5 }
 0x176   :  { %v1151_v14 = vpop.f32.mrf.mxu0  ;;  %4791 = vmatmul.mubr.bf16.gmra.mxu0 %v6935_v43 }
 0x177   :  { %v5771_v6 = vpop.f32.mrf.mxu1  ;;  %1708 = vmatmul.mubr.bf16.gmra.mxu1 %v6934_v53  ;;  %v1425_v16 = vadd.f32 %v5690_v1, %v1151_v14  ;;  %4794 = vmatprep.mubr.bf16.mxu0 %v6937_v50  ;;  %v5778_v7 = vpack.c.bf16 %v1421_v23, %v1417_v25 }
 0x178   :  { %1715 = vmatprep.mubr.bf16.mxu1 %v6936_v18  ;;  %v1153_v15 = vpop.f32.mrf.mxu0 }
 0x179   :  { %v5780_v38 = vpop.f32.mrf.mxu1  ;;  %v1427_v45 = vadd.f32 %v5699_v27, %v1153_v15  ;;  %v6938_v27 = vld [vmem:[#allocation17_spill] sm:$0xff]  ;;  %v6941_v15 = vld [vmem:[#allocation20_spill] sm:$0xff] }
 0x17a   :  { %v1155_v3 = vpop.f32.mrf.mxu0 }
 0x17b   :  { %v5785_v56 = vpop.f32.mrf.mxu1  ;;  %v1429_v17 = vadd.f32 %v5702_v42, %v1155_v3  ;;  %v6940_v42 = vld [vmem:[#allocation19_spill] sm:$0xff] }
 0x17c   :  { %v1157_v1 = vpop.f32.mrf.mxu0 }
 0x17d   :  { %v5789_v11 = vpop.f32.mrf.mxu1  ;;  %v1431_v28 = vadd.f32 %v5705_v49, %v1157_v1  ;;  %v5792_v44 = vpack.c.bf16 %v1429_v17, %v1425_v16 }
 0x17e   :  { %v1161_v47 = vpop.f32.mrf.mxu0  ;;  %4795 = vmatmul.mubr.bf16.gmra.mxu0 %v6939_v48 }
 0x17f   :  { %v5794_v5 = vpop.f32.mrf.mxu1  ;;  %1716 = vmatmul.mubr.bf16.gmra.mxu1 %v6938_v27  ;;  %v1435_v33 = vadd.f32 %v5710_v12, %v1161_v47  ;;  %3328 = vmatprep.mubr.bf16.mxu0 %v5597_v2  ;;  %v5801_v13 = vpack.c.bf16 %v1431_v28, %v1427_v45  ;;  %v5126_v12 = vld [vmem:[#allocation7 + $0xb0] ss:$12 sps:$4 sm:$0xff]  }
 0x180   :  { %1723 = vmatprep.mubr.bf16.mxu1 %v6940_v42  ;;  %v1163_v25 = vpop.f32.mrf.mxu0 }
 0x181   :  { %v5803_v26 = vpop.f32.mrf.mxu1  ;;  %v1437_v49 = vadd.f32 %v5719_v59, %v1163_v25 }
 0x182   :  { %v1165_v21 = vpop.f32.mrf.mxu0 }
 0x183   :  { %v5806_v55 = vpop.f32.mrf.mxu1  ;;  %v1439_v23 = vadd.f32 %v5722_v52, %v1165_v21  ;;  %v6942_v52 = vld [vmem:[#allocation22_spill] sm:$0xff]  ;;  %v6943_v21 = vld [vmem:[#allocation23_spill] sm:$0xff] }
 0x184   :  { %v1167_v14 = vpop.f32.mrf.mxu0 }
 0x185   :  { %v5809_v53 = vpop.f32.mrf.mxu1  ;;  %v1441_v43 = vadd.f32 %v5725_v57, %v1167_v14  ;;  %v5812_v16 = vpack.c.bf16 %v1439_v23, %v1435_v33  ;;  %v5127_v57 = vld [vmem:[#allocation7 + $0x98] ss:$12 sps:$4 sm:$0xff]   ;;  %v5131_v33 = vld [vmem:[#allocation7 + $0x80] ss:$12 sps:$4 sm:$0xff]  }
 0x186   :  { %v1171_v18 = vpop.f32.mrf.mxu0  ;;  %3329 = vmatmul.mubr.bf16.vlgmr.msra.gmra.mxu0 %v5588_v60  ;;  %v6944_v23 = vld [vmem:[#allocation25_spill] sm:$0xff] }
 0x187   :  { %v5814_v50 = vpop.f32.mrf.mxu1  ;;  %1724 = vmatmul.mubr.bf16.gmra.mxu1 %v6941_v15  ;;  %v1445_v59 = vadd.f32 %v5731_v41, %v1171_v18  ;;  %3338 = vmatprep.mubr.bf16.mxu0 %v5617_v24  ;;  %v5821_v45 = vpack.c.bf16 %v1441_v43, %v1437_v49  ;;  %v5132_v43 = vld [vmem:[#allocation7 + $0x68] ss:$12 sps:$4 sm:$0xff]  }
 0x188   :  { %1731 = vmatprep.mubr.bf16.mxu1 %v6942_v52  ;;  %v1173_v3 = vpop.f32.mrf.mxu0  ;;  %3843 = vmatpush1.bf16.msra.mxu0 %v5126_v12 }
 0x189   :  { %v5823_v17 = vpop.f32.mrf.mxu1  ;;  %v1447_v1 = vadd.f32 %v5740_v4, %v1173_v3  ;;  %3844 = vmatprep.subr.bf16.mxu0 %v6924_v37 }
 0x18a   :  { %v1175_v28 = vpop.f32.mrf.mxu0 }
 0x18b   :  { %v5827_v47 = vpop.f32.mrf.mxu1  ;;  %v1449_v41 = vadd.f32 %v5743_v40, %v1175_v28 }
 0x18c   :  { %v1177_v27 = vpop.f32.mrf.mxu0  ;;  %3845 = vmatpush1.bf16.msra.mxu0 %v5127_v57  ;;  %v5136_v57 = vld [vmem:[#allocation7 + $0x50] ss:$12 sps:$4 sm:$0xff]  }
 0x18d   :  { %v5830_v48 = vpop.f32.mrf.mxu1  ;;  %v1451_v42 = vadd.f32 %v5746_v63, %v1177_v27  ;;  %3846 = vmatprep.subr.bf16.mxu0 %v6924_v37  ;;  %v5834_v25 = vpack.c.bf16 %v1449_v41, %v1445_v59  ;;  %v6945_v27 = vld [vmem:[#allocation26_spill] sm:$0xff] }
 0x18e   :  { %v1181_v49 = vpop.f32.mrf.mxu0  ;;  %3339 = vmatmul.mubr.bf16.gmra.mxu0 %v5608_v8 }
 0x18f   :  { %v5836_v4 = vpop.f32.mrf.mxu1  ;;  %1732 = vmatmul.mubr.bf16.gmra.mxu1 %v6943_v21  ;;  %v1455_v40 = vadd.f32 %v5751_v46, %v1181_v49  ;;  %3348 = vmatprep.mubr.bf16.mxu0 %v5637_v61  ;;  %v5843_v14 = vpack.c.bf16 %v1451_v42, %v1447_v1  ;;  %v5137_v21 = vld [vmem:[#allocation7 + $0x38] ss:$12 sps:$4 sm:$0xff]  }
 0x190   :  { %1739 = vmatprep.mubr.bf16.mxu1 %v6944_v23  ;;  %v1183_v63 = vpop.f32.mrf.mxu0  ;;  %3847 = vmatpush1.bf16.msra.mxu0 %v5131_v33  ;;  %v6946_v33 = vld [vmem:[#allocation28_spill] sm:$0xff] }
 0x191   :  { %v5845_v12 = vpop.f32.mrf.mxu1  ;;  %v1457_v18 = vadd.f32 %v5760_v9, %v1183_v63  ;;  %3848 = vmatprep.subr.bf16.mxu0 %v6924_v37 }
 0x192   :  { %v1185_v15 = vpop.f32.mrf.mxu0 }
 0x193   :  { %v5849_v59 = vpop.f32.mrf.mxu1  ;;  %v1459_v46 = vadd.f32 %v5763_v35, %v1185_v15 }
 0x194   :  { %v1187_v52 = vpop.f32.mrf.mxu0  ;;  %3849 = vmatpush1.bf16.msra.mxu0 %v5132_v43 }
 0x195   :  { %v5852_v3 = vpop.f32.mrf.mxu1  ;;  %v1461_v1 = vadd.f32 %v5766_v22, %v1187_v52  ;;  %3850 = vmatprep.subr.bf16.mxu0 %v6924_v37  ;;  %v5856_v28 = vpack.c.bf16 %v1459_v46, %v1455_v40 }
 0x196   :  { %v1191_v41 = vpop.f32.mrf.mxu0  ;;  %3349 = vmatmul.mubr.bf16.gmra.mxu0 %v5628_v54 }
 0x197   :  { %v5858_v9 = vpop.f32.mrf.mxu1  ;;  %1740 = vmatmul.mubr.bf16.gmra.mxu1 %v6945_v27  ;;  %v1465_v35 = vadd.f32 %v5771_v6, %v1191_v41  ;;  %3358 = vmatprep.mubr.bf16.mxu0 %v5657_v32  ;;  %v5865_v42 = vpack.c.bf16 %v1461_v1, %v1457_v18  ;;  %v5141_v18 = vld [vmem:[#allocation7 + $0x20] ss:$12 sps:$4 sm:$0xff]   ;;  %v6950_v41 = vld [vmem:[#allocation31_spill] sm:$0xff] }
 0x198   :  { %1747 = vmatprep.mubr.bf16.mxu1 %v6946_v33  ;;  %v1193_v22 = vpop.f32.mrf.mxu0  ;;  %3851 = vmatpush1.bf16.msra.mxu0 %v5136_v57  ;;  %v6949_v1 = vld [vmem:[#allocation29_spill] sm:$0xff] }
 0x199   :  { %6947 = vst [vmem:[#allocation18_spill] sm:$0xff] %v5865_v42  ;;  %v5867_v49 = vpop.f32.mrf.mxu1  ;;  %v1467_v40 = vadd.f32 %v5780_v38, %v1193_v22  ;;  %3852 = vmatprep.subr.bf16.mxu0 %v6924_v37 }
 0x19a   :  { %v1195_v23 = vpop.f32.mrf.mxu0 }
 0x19b   :  { %v5871_v63 = vpop.f32.mrf.mxu1  ;;  %v1469_v6 = vadd.f32 %v5785_v56, %v1195_v23 }
 0x19c   :  { %v1197_v43 = vpop.f32.mrf.mxu0  ;;  %3853 = vmatpush1.bf16.msra.mxu0 %v5137_v21 }
 0x19d   :  { %v5874_v15 = vpop.f32.mrf.mxu1  ;;  %v1471_v46 = vadd.f32 %v5789_v11, %v1197_v43  ;;  %3854 = vmatprep.subr.bf16.mxu0 %v6924_v37  ;;  %v5878_v52 = vpack.c.bf16 %v1469_v6, %v1465_v35  ;;  %v5142_v35 = vld [vmem:[#allocation7 + $0x8] ss:$12 sps:$4 sm:$0xff]  }
 0x19e   :  { %v1201_v57 = vpop.f32.mrf.mxu0  ;;  %3359 = vmatmul.mubr.bf16.gmra.mxu0 %v5648_v19 }
 0x19f   :  { %6948 = vst [vmem:[#allocation13_spill] sm:$0xff] %v5878_v52  ;;  %v5880_v38 = vpop.f32.mrf.mxu1  ;;  %1748 = vmatmul.mubr.bf16.gmra.mxu1 %v6949_v1  ;;  %v1475_v56 = vadd.f32 %v5794_v5, %v1201_v57  ;;  %3368 = vmatprep.mubr.bf16.mxu0 %v5677_v36  ;;  %v5887_v27 = vpack.c.bf16 %v1471_v46, %v1467_v40  ;;  %v5144_v40 = vld [vmem:[#allocation7 + $0x170] ss:$12 sps:$4 sm:$0xff]   ;;  %v6953_v1 = vld [vmem:[#allocation32_spill] sm:$0xff] }
 0x1a0   :  { %1755 = vmatprep.mubr.bf16.mxu1 %v6950_v41  ;;  %v1203_v11 = vpop.f32.mrf.mxu0  ;;  %3855 = vmatpush1.bf16.msra.mxu0 %v5141_v18  ;;  %v6954_v41 = vld [vmem:[#allocation33_spill] sm:$0xff] }
 0x1a1   :  { %6951 = vst [vmem:[#allocation21_spill] sm:$0xff] %v5887_v27  ;;  %v5889_v33 = vpop.f32.mrf.mxu1  ;;  %v1477_v22 = vadd.f32 %v5803_v26, %v1203_v11  ;;  %3856 = vmatprep.subr.bf16.mxu0 %v6924_v37 }
 0x1a2   :  { %v1205_v21 = vpop.f32.mrf.mxu0 }
 0x1a3   :  { %v5893_v23 = vpop.f32.mrf.mxu1  ;;  %v1479_v5 = vadd.f32 %v5806_v55, %v1205_v21 }
 0x1a4   :  { %v1207_v6 = vpop.f32.mrf.mxu0  ;;  %3857 = vmatpush1.bf16.msra.mxu0 %v5142_v35 }
 0x1a5   :  { %v5896_v43 = vpop.f32.mrf.mxu1  ;;  %v1481_v46 = vadd.f32 %v5809_v53, %v1207_v6  ;;  %3858 = vmatprep.subr.bf16.mxu0 %v6924_v37  ;;  %v5900_v18 = vpack.c.bf16 %v1479_v5, %v1475_v56  ;;  %v5145_v56 = vld [vmem:[#allocation7 + $0x158] ss:$12 sps:$4 sm:$0xff]  }
 0x1a6   :  { %v1211_v57 = vpop.f32.mrf.mxu0  ;;  %3369 = vmatmul.mubr.bf16.gmra.mxu0 %v5668_v62 }
 0x1a7   :  { %6952 = vst [vmem:[#allocation14_spill] sm:$0xff] %v5900_v18  ;;  %v5902_v26 = vpop.f32.mrf.mxu1  ;;  %1756 = vmatmul.mubr.bf16.gmra.mxu1 %v6953_v1  ;;  %v1485_v55 = vadd.f32 %v5814_v50, %v1211_v57  ;;  %3378 = vmatprep.mubr.bf16.mxu0 %v5697_v10  ;;  %v5909_v11 = vpack.c.bf16 %v1481_v46, %v1477_v22  ;;  %v5147_v22 = vld [vmem:[#allocation7 + $0x140] ss:$12 sps:$4 sm:$0xff]  }
 0x1a8   :  { %1763 = vmatprep.mubr.bf16.mxu1 %v6954_v41  ;;  %v1213_v53 = vpop.f32.mrf.mxu0  ;;  %3859 = vmatpush2.bf16.msra.mxu0 %v5144_v40 }
 0x1a9   :  { %6955 = vst [vmem:[#allocation24_spill] sm:$0xff] %v5909_v11  ;;  %v5911_v35 = vpop.f32.mrf.mxu1  ;;  %v1487_v21 = vadd.f32 %v5823_v17, %v1213_v53  ;;  %3860 = vmatprep.subr.bf16.mxu0 %v6924_v37  ;;  %v6957_v53 = vld [vmem:[#allocation34_spill] sm:$0xff] }
 0x1aa   :  { %v1215_v5 = vpop.f32.mrf.mxu0 }
 0x1ab   :  { %v5915_v6 = vpop.f32.mrf.mxu1  ;;  %v1489_v50 = vadd.f32 %v5827_v47, %v1215_v5  ;;  %v6958_v5 = vld [vmem:[#allocation35_spill] sm:$0xff] }
 0x1ac   :  { %v1217_v57 = vpop.f32.mrf.mxu0  ;;  %3861 = vmatpush2.bf16.msra.mxu0 %v5145_v56 }
 0x1ad   :  { %v5918_v1 = vpop.f32.mrf.mxu1  ;;  %v1491_v46 = vadd.f32 %v5830_v48, %v1217_v57  ;;  %v5921_v41 = vpack.c.bf16 %v1489_v50, %v1485_v55  ;;  %3862 = vmatprep.subr.bf16.mxu0 %v6924_v37  ;;  %v5148_v50 = vld [vmem:[#allocation7 + $0x128] ss:$12 sps:$4 sm:$0xff]  }
 0x1ae   :  { %v1221_v40 = vpop.f32.mrf.mxu0  ;;  %3379 = vmatmul.mubr.bf16.gmra.mxu0 %v5688_v30 }
 0x1af   :  { %6956 = vst [vmem:[#allocation16_spill] sm:$0xff] %v5921_v41  ;;  %v5924_v17 = vpop.f32.mrf.mxu1  ;;  %1764 = vmatmul.mubr.bf16.gmra.mxu1 %v6957_v53  ;;  %v1495_v47 = vadd.f32 %v5836_v4, %v1221_v40  ;;  %3388 = vmatprep.mubr.bf16.mxu0 %v5717_v0  ;;  %v5931_v56 = vpack.c.bf16 %v1491_v46, %v1487_v21  ;;  %v5150_v21 = vld [vmem:[#allocation7 + $0x110] ss:$12 sps:$4 sm:$0xff]  }
 0x1b0   :  { %1771 = vmatprep.mubr.bf16.mxu1 %v6958_v5  ;;  %v1223_v48 = vpop.f32.mrf.mxu0  ;;  %3863 = vmatpush2.bf16.msra.mxu0 %v5147_v22 }
 0x1b1   :  { %6959 = vst [vmem:[#allocation27_spill] sm:$0xff] %v5931_v56  ;;  %v5933_v55 = vpop.f32.mrf.mxu1  ;;  %v1497_v57 = vadd.f32 %v5845_v12, %v1223_v48  ;;  %3864 = vmatprep.subr.bf16.mxu0 %v6924_v37  ;;  %v6961_v48 = vld [vmem:[#allocation36_spill] sm:$0xff] }
 0x1b2   :  { %v1225_v53 = vpop.f32.mrf.mxu0 }
 0x1b3   :  { %v5937_v10 = vpop.f32.mrf.mxu1  ;;  %v1499_v4 = vadd.f32 %v5849_v59, %v1225_v53  ;;  %v6962_v53 = vld [vmem:[#allocation37_spill] sm:$0xff] }
 0x1b4   :  { %v1227_v40 = vpop.f32.mrf.mxu0  ;;  %3865 = vmatpush2.bf16.msra.mxu0 %v5148_v50 }
 0x1b5   :  { %v5940_v0 = vpop.f32.mrf.mxu1  ;;  %v1501_v46 = vadd.f32 %v5852_v3, %v1227_v40  ;;  %v5943_v5 = vpack.c.bf16 %v1499_v4, %v1495_v47  ;;  %3866 = vmatprep.subr.bf16.mxu0 %v6924_v37  ;;  %v5151_v4 = vld [vmem:[#allocation7 + $0xf8] ss:$12 sps:$4 sm:$0xff]  }
 0x1b6   :  { %v1231_v22 = vpop.f32.mrf.mxu0  ;;  %3389 = vmatmul.mubr.bf16.gmra.mxu0 %v5708_v31 }
 0x1b7   :  { %6960 = vst [vmem:[#allocation17_spill] sm:$0xff] %v5943_v5  ;;  %v5946_v12 = vpop.f32.mrf.mxu1  ;;  %1772 = vmatmul.mubr.bf16.gmra.mxu1 %v6961_v48  ;;  %v1505_v59 = vadd.f32 %v5858_v9, %v1231_v22  ;;  %3398 = vmatprep.mubr.bf16.mxu0 %v5738_v39  ;;  %v5953_v50 = vpack.c.bf16 %v1501_v46, %v1497_v57 }
 0x1b8   :  { %1779 = vmatprep.mubr.bf16.mxu1 %v6962_v53  ;;  %v1233_v3 = vpop.f32.mrf.mxu0  ;;  %3867 = vmatpush2.bf16.msra.mxu0 %v5150_v21  ;;  %v5152_v21 = vld [vmem:[#allocation7 + $0xe0] ss:$12 sps:$4 sm:$0xff]  }
 0x1b9   :  { %6963 = vst [vmem:[#allocation30_spill] sm:$0xff] %v5953_v50  ;;  %v5955_v47 = vpop.f32.mrf.mxu1  ;;  %v1507_v40 = vadd.f32 %v5867_v49, %v1233_v3  ;;  %3868 = vmatprep.subr.bf16.mxu0 %v6924_v37  ;;  %v6965_v3 = vld [vmem:[#allocation38_spill] sm:$0xff] }
 0x1ba   :  { %v1235_v48 = vpop.f32.mrf.mxu0 }
 0x1bb   :  { %v5959_v30 = vpop.f32.mrf.mxu1  ;;  %v1509_v9 = vadd.f32 %v5871_v63, %v1235_v48 }
 0x1bc   :  { %v1237_v22 = vpop.f32.mrf.mxu0  ;;  %3869 = vmatpush2.bf16.msra.mxu0 %v5151_v4 }
 0x1bd   :  { %v5962_v39 = vpop.f32.mrf.mxu1  ;;  %v1511_v57 = vadd.f32 %v5874_v15, %v1237_v22  ;;  %v5965_v46 = vpack.c.bf16 %v1509_v9, %v1505_v59  ;;  %3870 = vmatprep.subr.bf16.mxu0 %v6924_v37  ;;  %v5154_v9 = vld [vmem:[#allocation7 + $0xc8] ss:$12 sps:$4 sm:$0xff]  }
 0x1be   :  { %v1241_v53 = vpop.f32.mrf.mxu0  ;;  %3399 = vmatmul.mubr.bf16.gmra.mxu0 %v5729_v34 }
 0x1bf   :  { %6964 = vst [vmem:[#allocation19_spill] sm:$0xff] %v5965_v46  ;;  %v5968_v49 = vpop.f32.mrf.mxu1  ;;  %1780 = vmatmul.mubr.bf16.gmra.mxu1 %v6965_v3  ;;  %v1515_v63 = vadd.f32 %v5880_v38, %v1241_v53  ;;  %3408 = vmatprep.mubr.bf16.mxu0 %v5758_v29  ;;  %v5975_v4 = vpack.c.bf16 %v1511_v57, %v1507_v40 }
 0x1c0   :  { %3601 = vmatprep.mubr.bf16.mxu1 %v6924_v37  ;;  %v1243_v15 = vpop.f32.mrf.mxu0  ;;  %3871 = vmatpush2.bf16.msra.mxu0 %v5152_v21 }
 0x1c1   :  { %6966 = vst [vmem:[#allocation20_spill] sm:$0xff] %v5975_v4  ;;  %v5977_v59 = vpop.f32.mrf.mxu1  ;;  %v1517_v48 = vadd.f32 %v5889_v33, %v1243_v15  ;;  %3872 = vmatprep.subr.bf16.mxu0 %v6924_v37 }
 0x1c2   :  { %v1245_v22 = vpop.f32.mrf.mxu0 }
 0x1c3   :  { %v5981_v3 = vpop.f32.mrf.mxu1  ;;  %v1519_v38 = vadd.f32 %v5893_v23, %v1245_v22 }
 0x1c4   :  { %v1247_v53 = vpop.f32.mrf.mxu0  ;;  %3873 = vmatpush2.bf16.msra.mxu0 %v5154_v9 }
 0x1c5   :  { %v5984_v29 = vpop.f32.mrf.mxu1  ;;  %v1521_v40 = vadd.f32 %v5896_v43, %v1247_v53  ;;  %v5987_v57 = vpack.c.bf16 %v1519_v38, %v1515_v63 }
 0x1c6   :  { %v1251_v34 = vpop.f32.mrf.mxu0  ;;  %3409 = vmatmul.mubr.bf16.gmra.mxu0 %v5749_v58 }
 0x1c7   :  { %6967 = vst [vmem:[#allocation22_spill] sm:$0xff] %v5987_v57  ;;  %v5989_v21 = vpop.f32.mrf.mxu1  ;;  %v1525_v33 = vadd.f32 %v5902_v26, %v1251_v34  ;;  %3418 = vmatprep.mubr.bf16.mxu0 %v5778_v7  ;;  %v5994_v15 = vpack.c.bf16 %v1521_v40, %v1517_v48 }
 0x1c8   :  { %v1253_v23 = vpop.f32.mrf.mxu0 }
 0x1c9   :  { %6968 = vst [vmem:[#allocation23_spill] sm:$0xff] %v5994_v15  ;;  %v1599_v22 = vpop.f32.mrf.mxu1  ;;  %v1527_v31 = vadd.f32 %v5911_v35, %v1253_v23 }
 0x1ca   :  { %v1255_v9 = vpop.f32.mrf.mxu0 }
 0x1cb   :  { %v5997_v62 = vpop.f32.mrf.mxu1  ;;  %v1529_v43 = vadd.f32 %v5915_v6, %v1255_v9 }
 0x1cc   :  { %v1257_v63 = vpop.f32.mrf.mxu0 }
 0x1cd   :  { %v1602_v38 = vpop.f32.mrf.mxu1  ;;  %v1531_v53 = vadd.f32 %v5918_v1, %v1257_v63  ;;  %v6001_v58 = vpack.c.bf16 %v1529_v43, %v1525_v33 }
 0x1ce   :  { %v1261_v34 = vpop.f32.mrf.mxu0  ;;  %3419 = vmatmul.mubr.bf16.gmra.mxu0 %v5769_v51 }
 0x1cf   :  { %6969 = vst [vmem:[#allocation25_spill] sm:$0xff] %v6001_v58  ;;  %v6003_v26 = vpop.f32.mrf.mxu1  ;;  %v1535_v48 = vadd.f32 %v5924_v17, %v1261_v34  ;;  %3428 = vmatprep.mubr.bf16.mxu0 %v5801_v13  ;;  %v6008_v35 = vpack.c.bf16 %v1531_v53, %v1527_v31 }
 0x1d0   :  { %v1263_v40 = vpop.f32.mrf.mxu0 }
 0x1d1   :  { %6970 = vst [vmem:[#allocation26_spill] sm:$0xff] %v6008_v35  ;;  %v1607_v23 = vpop.f32.mrf.mxu1  ;;  %v1537_v6 = vadd.f32 %v5933_v55, %v1263_v40 }
 0x1d2   :  { %v1265_v22 = vpop.f32.mrf.mxu0 }
 0x1d3   :  { %v6011_v9 = vpop.f32.mrf.mxu1  ;;  %v1539_v1 = vadd.f32 %v5937_v10, %v1265_v22 }
 0x1d4   :  { %v1267_v33 = vpop.f32.mrf.mxu0 }
 0x1d5   :  { %v1610_v43 = vpop.f32.mrf.mxu1  ;;  %v1541_v63 = vadd.f32 %v5940_v0, %v1267_v33  ;;  %v6015_v38 = vpack.c.bf16 %v1539_v1, %v1535_v48 }
 0x1d6   :  { %v1271_v17 = vpop.f32.mrf.mxu0  ;;  %3429 = vmatmul.mubr.bf16.gmra.mxu0 %v5792_v44 }
 0x1d7   :  { %6971 = vst [vmem:[#allocation28_spill] sm:$0xff] %v6015_v38  ;;  %v6017_v34 = vpop.f32.mrf.mxu1  ;;  %v1545_v31 = vadd.f32 %v5946_v12, %v1271_v17  ;;  %3438 = vmatprep.mubr.bf16.mxu0 %v5821_v45  ;;  %v6022_v55 = vpack.c.bf16 %v1541_v63, %v1537_v6 }
 0x1d8   :  { %v1273_v53 = vpop.f32.mrf.mxu0 }
 0x1d9   :  { %6972 = vst [vmem:[#allocation29_spill] sm:$0xff] %v6022_v55  ;;  %v1615_v40 = vpop.f32.mrf.mxu1  ;;  %v1547_v10 = vadd.f32 %v5955_v47, %v1273_v53 }
 0x1da   :  { %v1275_v23 = vpop.f32.mrf.mxu0 }
 0x1db   :  { %v6025_v22 = vpop.f32.mrf.mxu1  ;;  %v1549_v0 = vadd.f32 %v5959_v30, %v1275_v23 }
 0x1dc   :  { %v1277_v48 = vpop.f32.mrf.mxu0 }
 0x1dd   :  { %v1618_v1 = vpop.f32.mrf.mxu1  ;;  %v1551_v33 = vadd.f32 %v5962_v39, %v1277_v48  ;;  %v6029_v43 = vpack.c.bf16 %v1549_v0, %v1545_v31 }
 0x1de   :  { %v1281_v12 = vpop.f32.mrf.mxu0  ;;  %3439 = vmatmul.mubr.bf16.gmra.mxu0 %v5812_v16 }
 0x1df   :  { %6973 = vst [vmem:[#allocation31_spill] sm:$0xff] %v6029_v43  ;;  %v6031_v17 = vpop.f32.mrf.mxu1  ;;  %v1555_v6 = vadd.f32 %v5968_v49, %v1281_v12  ;;  %3448 = vmatprep.mubr.bf16.mxu0 %v5843_v14  ;;  %v6036_v47 = vpack.c.bf16 %v1551_v33, %v1547_v10 }
 0x1e0   :  { %v1283_v63 = vpop.f32.mrf.mxu0 }
 0x1e1   :  { %6974 = vst [vmem:[#allocation32_spill] sm:$0xff] %v6036_v47  ;;  %v1623_v53 = vpop.f32.mrf.mxu1  ;;  %v1557_v30 = vadd.f32 %v5977_v59, %v1283_v63 }
 0x1e2   :  { %v1285_v40 = vpop.f32.mrf.mxu0 }
 0x1e3   :  { %v6039_v23 = vpop.f32.mrf.mxu1  ;;  %v1559_v39 = vadd.f32 %v5981_v3, %v1285_v40 }
 0x1e4   :  { %v1287_v31 = vpop.f32.mrf.mxu0 }
 0x1e5   :  { %v1626_v0 = vpop.f32.mrf.mxu1  ;;  %v1561_v48 = vadd.f32 %v5984_v29, %v1287_v31  ;;  %v6043_v1 = vpack.c.bf16 %v1559_v39, %v1555_v6 }
 0x1e6   :  { %v4752_v12 = vpop.f32.mrf.mxu0  ;;  %3449 = vmatmul.mubr.bf16.gmra.mxu0 %v5834_v25  ;;  %v5146_v0 = vld [vmem:[#allocation7 + $0x218] ss:$12 sps:$4 sm:$0xff]  }
 0x1e7   :  { %6975 = vst [vmem:[#allocation33_spill] sm:$0xff] %v6043_v1  ;;  %v6045_v49 = vpop.f32.mrf.mxu1  ;;  %3458 = vmatprep.mubr.bf16.mxu0 %v5865_v42  ;;  %v6049_v10 = vpack.c.bf16 %v1561_v48, %v1557_v30 }
 0x1e8   :  { %v1822_v33 = vpop.f32.mrf.mxu0 }
 0x1e9   :  { %6976 = vst [vmem:[#allocation34_spill] sm:$0xff] %v6049_v10  ;;  %v1631_v59 = vpop.f32.mrf.mxu1  ;;  %v1823_v29 = vadd.f32 %v1822_v33, %v5989_v21  ;;  %v5149_v21 = vld [vmem:[#allocation7 + $0x200] ss:$12 sps:$4 sm:$0xff]  }
 0x1ea   :  { %v4753_v3 = vpop.f32.mrf.mxu0 }
 0x1eb   :  { %v6051_v63 = vpop.f32.mrf.mxu1 }
 0x1ec   :  { %v1825_v40 = vpop.f32.mrf.mxu0 }
 0x1ed   :  { %v1634_v53 = vpop.f32.mrf.mxu1  ;;  %v1826_v6 = vadd.f32 %v1825_v40, %v5997_v62  ;;  %v1834_v62 = vadd.f32 %v4753_v3, %v6011_v9 }
 0x1ee   :  { %v4756_v31 = vpop.f32.mrf.mxu0  ;;  %3459 = vmatmul.mubr.bf16.gmra.mxu0 %v5856_v28 }
 0x1ef   :  { %v6055_v39 = vpop.f32.mrf.mxu1  ;;  %3468 = vmatprep.mubr.bf16.mxu0 %v5887_v27  ;;  %v6059_v30 = vpack.c.bf16 %v1826_v6, %v1823_v29  ;;  %v1831_v29 = vadd.f32 %v4752_v12, %v6003_v26  ;;  %v5153_v27 = vld [vmem:[#allocation7 + $0x1e8] ss:$12 sps:$4 sm:$0xff]  }
 0x1f0   :  { %v1838_v59 = vpop.f32.mrf.mxu0 }
 0x1f1   :  { %v1639_v48 = vpop.f32.mrf.mxu1  ;;  %3602 = vmatmul.mubr.bf16.vlgmr.msra.gmra.mxu1 %v6059_v30  ;;  %v1839_v12 = vadd.f32 %v1838_v59, %v6017_v34 }
 0x1f2   :  { %v4757_v42 = vpop.f32.mrf.mxu0  ;;  %4799 = vmatpush3.bf16.msra.mxu1 %v5783_v20  ;;  %3611 = vmatprep.mubr.bf16.mxu1 %v6924_v37  ;;  %v6074_v20 = vpack.c.bf16 %v1834_v62, %v1831_v29 }
 0x1f3   :  { %v6062_v53 = vpop.f32.mrf.mxu1  ;;  %4800 = vmatprep.subr.bf16.mxu1 %v5146_v0 }
 0x1f4   :  { %v1841_v40 = vpop.f32.mrf.mxu0  ;;  %6977 = vst [vmem:[#allocation35_spill] sm:$0xff] %v6074_v20 }
 0x1f5   :  { %v1642_v33 = vpop.f32.mrf.mxu1 }
 0x1f6   :  { %v6070_v48 = vpop.f32.mrf.mxu0  ;;  %3469 = vmatmul.mubr.bf16.gmra.mxu0 %v5878_v52  ;;  %4801 = vmatpush3.bf16.msra.mxu1 %v5146_v0  ;;  %v1842_v0 = vadd.f32 %v1841_v40, %v6025_v22 }
 0x1f7   :  { %v6068_v6 = vpop.f32.mrf.mxu1  ;;  %3478 = vmatprep.mubr.bf16.mxu0 %v5909_v11  ;;  %4802 = vmatprep.subr.bf16.mxu1 %v5149_v21  ;;  %v5155_v11 = vld [vmem:[#allocation7 + $0x1d0] ss:$12 sps:$4 sm:$0xff]  }
 0x1f8   :  { %v1854_v3 = vpop.f32.mrf.mxu0 }
 0x1f9   :  { %v1647_v9 = vpop.f32.mrf.mxu1  ;;  %3612 = vmatmul.mubr.bf16.gmra.mxu1 %v6074_v20  ;;  %v6088_v20 = vpack.c.bf16 %v1842_v0, %v1839_v12 }
 0x1fa   :  { %v4761_v26 = vpop.f32.mrf.mxu0  ;;  %3621 = vmatprep.mubr.bf16.mxu1 %v6924_v37  ;;  %4803 = vmatpush3.bf16.msra.mxu1 %v5149_v21  ;;  %v5156_v21 = vld [vmem:[#allocation7 + $0x1b8] ss:$12 sps:$4 sm:$0xff]  }
 0x1fb   :  { %v6077_v33 = vpop.f32.mrf.mxu1  ;;  %4804 = vmatprep.subr.bf16.mxu1 %v5153_v27  ;;  %6978 = vst [vmem:[#allocation36_spill] sm:$0xff] %v6088_v20 }
 0x1fc   :  { %v1857_v29 = vpop.f32.mrf.mxu0 }
 0x1fd   :  { %v1650_v62 = vpop.f32.mrf.mxu1 }
 0x1fe   :  { %v6084_v9 = vpop.f32.mrf.mxu0  ;;  %3479 = vmatmul.mubr.bf16.gmra.mxu0 %v5900_v18  ;;  %4805 = vmatpush3.bf16.msra.mxu1 %v5153_v27  ;;  %v1847_v62 = vadd.f32 %v4756_v31, %v6031_v17  ;;  %v1850_v27 = vadd.f32 %v4757_v42, %v6039_v23  ;;  %v5157_v17 = vld [vmem:[#allocation7 + $0x1a0] ss:$12 sps:$4 sm:$0xff]   ;;  %v1855_v31 = vadd.f32 %v1854_v3, %v6045_v49 }
 0x1ff   :  { %v6082_v52 = vpop.f32.mrf.mxu1  ;;  %3488 = vmatprep.mubr.bf16.mxu0 %v5931_v56  ;;  %4806 = vmatprep.subr.bf16.mxu1 %v5155_v11  ;;  %v1863_v3 = vadd.f32 %v6070_v48, %v6055_v39 }
 0x200   :  { %v1870_v59 = vpop.f32.mrf.mxu0  ;;  %v6104_v18 = vpack.c.bf16 %v1850_v27, %v1847_v62 }
 0x201   :  { %v1655_v34 = vpop.f32.mrf.mxu1  ;;  %3622 = vmatmul.mubr.bf16.gmra.mxu1 %v6088_v20  ;;  %v1871_v48 = vadd.f32 %v1870_v59, %v6068_v6  ;;  %v1879_v59 = vadd.f32 %v6084_v9, %v6082_v52 }
 0x202   :  { %v6093_v40 = vpop.f32.mrf.mxu0  ;;  %3631 = vmatprep.mubr.bf16.mxu1 %v6924_v37  ;;  %4807 = vmatpush3.bf16.msra.mxu1 %v5155_v11  ;;  %6979 = vst [vmem:[#allocation37_spill] sm:$0xff] %v6104_v18 }
 0x203   :  { %v6091_v22 = vpop.f32.mrf.mxu1  ;;  %4808 = vmatprep.subr.bf16.mxu1 %v5156_v21 }
 0x204   :  { %v1873_v0 = vpop.f32.mrf.mxu0 }
 0x205   :  { %v1658_v12 = vpop.f32.mrf.mxu1 }
 0x206   :  { %v6100_v34 = vpop.f32.mrf.mxu0  ;;  %3489 = vmatmul.mubr.bf16.gmra.mxu0 %v5921_v41  ;;  %4809 = vmatpush3.bf16.msra.mxu1 %v5156_v21  ;;  %v1858_v21 = vadd.f32 %v1857_v29, %v6051_v63  ;;  %v1866_v29 = vadd.f32 %v4761_v26, %v6062_v53  ;;  %v1874_v26 = vadd.f32 %v1873_v0, %v6077_v33 }
 0x207   :  { %v6098_v56 = vpop.f32.mrf.mxu1  ;;  %3498 = vmatprep.mubr.bf16.mxu0 %v5953_v50  ;;  %4810 = vmatprep.subr.bf16.mxu1 %v5157_v17  ;;  %v1882_v0 = vadd.f32 %v6093_v40, %v6091_v22 }
 0x208   :  { %v6106_v11 = vpop.f32.mrf.mxu0  ;;  %v6122_v50 = vpack.c.bf16 %v1858_v21, %v1855_v31  ;;  %v6143_v21 = vpack.c.bf16 %v1866_v29, %v1863_v3  ;;  %v6163_v29 = vpack.c.bf16 %v1874_v26, %v1871_v48 }
 0x209   :  { %v1663_v20 = vpop.f32.mrf.mxu1  ;;  %3632 = vmatmul.mubr.bf16.gmra.mxu1 %v6104_v18  ;;  %v1887_v9 = vadd.f32 %v6106_v11, %v6098_v56 }
 0x20a   :  { %v6111_v23 = vpop.f32.mrf.mxu0  ;;  %3641 = vmatprep.mubr.bf16.mxu1 %v6924_v37  ;;  %4811 = vmatpush3.bf16.msra.mxu1 %v5157_v17  ;;  %6980 = vst [vmem:[#allocation38_spill] sm:$0xff] %v6122_v50  ;;  %6981 = vst [vmem:[#allocation46_spill] sm:$0xff] %v6143_v21 }
 0x20b   :  { %v6109_v42 = vpop.f32.mrf.mxu1  ;;  %6982 = vst [vmem:[#allocation47_spill] sm:$0xff] %v6163_v29 }
 0x20c   :  { %v1889_v27 = vpop.f32.mrf.mxu0 }
 0x20d   :  { %v1666_v62 = vpop.f32.mrf.mxu1  ;;  %v1890_v22 = vadd.f32 %v1889_v27, %v6109_v42 }
 0x20e   :  { %v6118_v12 = vpop.f32.mrf.mxu0  ;;  %3499 = vmatmul.mubr.bf16.gmra.mxu0 %v5943_v5 }
 0x20f   :  { %v6116_v20 = vpop.f32.mrf.mxu1  ;;  %3508 = vmatprep.mubr.bf16.mxu0 %v5975_v4 }
 0x210   :  { %v6124_v18 = vpop.f32.mrf.mxu0  ;;  %v1895_v42 = vadd.f32 %v6100_v34, %v6116_v20 }
 0x211   :  { %v1671_v41 = vpop.f32.mrf.mxu1  ;;  %3642 = vmatmul.mubr.bf16.gmra.mxu1 %v6122_v50  ;;  %v5158_v50 = vld [vmem:[#allocation7 + $0x188] ss:$12 sps:$4 sm:$0xff]  }
 0x212   :  { %v6129_v63 = vpop.f32.mrf.mxu0  ;;  %3651 = vmatprep.mubr.bf16.mxu1 %v6924_v37  ;;  %4812 = vmatprep.subr.bf16.mxu1 %v5158_v50 }
 0x213   :  { %v6127_v49 = vpop.f32.mrf.mxu1  ;;  %4813 = vmatpush3.bf16.msra.mxu1 %v5158_v50 }
 0x214   :  { %v6135_v62 = vpop.f32.mrf.mxu0  ;;  %v1898_v27 = vadd.f32 %v6111_v23, %v6127_v49 }
 0x215   :  { %v1674_v17 = vpop.f32.mrf.mxu1 }
 0x216   :  { %v6139_v41 = vpop.f32.mrf.mxu0  ;;  %3509 = vmatmul.mubr.bf16.gmra.mxu0 %v5965_v46 }
 0x217   :  { %v6137_v31 = vpop.f32.mrf.mxu1  ;;  %3518 = vmatprep.mubr.bf16.mxu0 %v5994_v15 }
 0x218   :  { %v6145_v5 = vpop.f32.mrf.mxu0  ;;  %v1903_v20 = vadd.f32 %v6124_v18, %v6137_v31 }
 0x219   :  { %v1679_v4 = vpop.f32.mrf.mxu1  ;;  %3652 = vmatmul.mubr.bf16.gmra.mxu1 %v6143_v21 }
 0x21a   :  { %v6150_v53 = vpop.f32.mrf.mxu0  ;;  %3661 = vmatprep.mubr.bf16.mxu1 %v6924_v37 }
 0x21b   :  { %v6148_v39 = vpop.f32.mrf.mxu1 }
 0x21c   :  { %v6155_v46 = vpop.f32.mrf.mxu0  ;;  %v1906_v49 = vadd.f32 %v6135_v62, %v6148_v39 }
 0x21d   :  { %v1682_v17 = vpop.f32.mrf.mxu1 }
 0x21e   :  { %v6159_v4 = vpop.f32.mrf.mxu0  ;;  %3519 = vmatmul.mubr.bf16.gmra.mxu0 %v5987_v57 }
 0x21f   :  { %v6157_v3 = vpop.f32.mrf.mxu1  ;;  %3528 = vmatprep.mubr.bf16.mxu0 %v6008_v35  ;;  %v6185_v35 = vpack.c.bf16 %v1882_v0, %v1879_v59  ;;  %v6204_v0 = vpack.c.bf16 %v1890_v22, %v1887_v9 }
 0x220   :  { %v6165_v21 = vpop.f32.mrf.mxu0 }
 0x221   :  { %v1687_v15 = vpop.f32.mrf.mxu1  ;;  %3662 = vmatmul.mubr.bf16.gmra.mxu1 %v6163_v29  ;;  %6983 = vst [vmem:[#allocation48_spill] sm:$0xff] %v6204_v0 }
 0x222   :  { %v6170_v33 = vpop.f32.mrf.mxu0  ;;  %3671 = vmatprep.mubr.bf16.mxu1 %v6924_v37 }
 0x223   :  { %v6168_v6 = vpop.f32.mrf.mxu1 }
 0x224   :  { %v6177_v48 = vpop.f32.mrf.mxu0  ;;  %v1914_v62 = vadd.f32 %v6129_v63, %v6168_v6 }
 0x225   :  { %v1690_v15 = vpop.f32.mrf.mxu1 }
 0x226   :  { %v6181_v17 = vpop.f32.mrf.mxu0  ;;  %3529 = vmatmul.mubr.bf16.gmra.mxu0 %v6001_v58 }
 0x227   :  { %v6179_v26 = vpop.f32.mrf.mxu1  ;;  %3538 = vmatprep.mubr.bf16.mxu0 %v6022_v55 }
 0x228   :  { %v6187_v29 = vpop.f32.mrf.mxu0 }
 0x229   :  { %v1695_v57 = vpop.f32.mrf.mxu1  ;;  %3672 = vmatmul.mubr.bf16.gmra.mxu1 %v6185_v35 }
 0x22a   :  { %v6192_v50 = vpop.f32.mrf.mxu0  ;;  %3681 = vmatprep.mubr.bf16.mxu1 %v6924_v37 }
 0x22b   :  { %v6190_v52 = vpop.f32.mrf.mxu1 }
 0x22c   :  { %v1953_v15 = vpop.f32.mrf.mxu0 }
 0x22d   :  { %v1698_v40 = vpop.f32.mrf.mxu1 }
 0x22e   :  { %v6200_v57 = vpop.f32.mrf.mxu0  ;;  %3539 = vmatmul.mubr.bf16.gmra.mxu0 %v6015_v38 }
 0x22f   :  { %v6198_v59 = vpop.f32.mrf.mxu1  ;;  %3548 = vmatprep.mubr.bf16.mxu0 %v6036_v47  ;;  %v6226_v47 = vpack.c.bf16 %v1898_v27, %v1895_v42 }
 0x230   :  { %v6206_v58 = vpop.f32.mrf.mxu0 }
 0x231   :  { %v1703_v55 = vpop.f32.mrf.mxu1  ;;  %3682 = vmatmul.mubr.bf16.gmra.mxu1 %v6204_v0  ;;  %6984 = vst [vmem:[#allocation49_spill] sm:$0xff] %v6226_v47 }
 0x232   :  { %v6211_v11 = vpop.f32.mrf.mxu0  ;;  %3691 = vmatprep.mubr.bf16.mxu1 %v6924_v37 }
 0x233   :  { %v6209_v56 = vpop.f32.mrf.mxu1 }
 0x234   :  { %v6218_v9 = vpop.f32.mrf.mxu0 }
 0x235   :  { %v1706_v40 = vpop.f32.mrf.mxu1 }
 0x236   :  { %v6222_v22 = vpop.f32.mrf.mxu0  ;;  %3549 = vmatmul.mubr.bf16.gmra.mxu0 %v6029_v43 }
 0x237   :  { %v6220_v55 = vpop.f32.mrf.mxu1  ;;  %3558 = vmatprep.mubr.bf16.mxu0 %v6049_v10  ;;  %v6246_v10 = vpack.c.bf16 %v1906_v49, %v1903_v20 }
 0x238   :  { %v6228_v0 = vpop.f32.mrf.mxu0 }
 0x239   :  { %v1711_v38 = vpop.f32.mrf.mxu1  ;;  %3692 = vmatmul.mubr.bf16.gmra.mxu1 %v6226_v47  ;;  %6985 = vst [vmem:[#allocation50_spill] sm:$0xff] %v6246_v10 }
 0x23a   :  { %v6233_v23 = vpop.f32.mrf.mxu0  ;;  %3701 = vmatprep.mubr.bf16.mxu1 %v6924_v37 }
 0x23b   :  { %v6231_v34 = vpop.f32.mrf.mxu1 }
 0x23c   :  { %v6240_v42 = vpop.f32.mrf.mxu0 }
 0x23d   :  { %v1714_v40 = vpop.f32.mrf.mxu1 }
 0x23e   :  { %v6242_v27 = vpop.f32.mrf.mxu0  ;;  %3559 = vmatmul.mubr.bf16.gmra.mxu0 %v6043_v1 }
 0x23f   :  { %v1717_v38 = vpop.f32.mrf.mxu1  ;;  %3874 = vmatprep.mubr.bf16.mxu0 %v5597_v2 }
 0x240   :  { %v6248_v47 = vpop.f32.mrf.mxu0  ;;  %v1943_v39 = vadd.f32 %v6159_v4, %v1717_v38 }
 0x241   :  { %v1719_v43 = vpop.f32.mrf.mxu1  ;;  %3702 = vmatmul.mubr.bf16.gmra.mxu1 %v6246_v10 }
 0x242   :  { %v6251_v31 = vpop.f32.mrf.mxu0  ;;  %3711 = vmatprep.mubr.bf16.mxu1 %v6924_v37  ;;  %v1911_v43 = vadd.f32 %v6118_v12, %v6157_v3  ;;  %v1922_v12 = vadd.f32 %v6155_v46, %v6190_v52 }
 0x243   :  { %v1720_v18 = vpop.f32.mrf.mxu1 }
 0x244   :  { %v1946_v40 = vadd.f32 %v6170_v33, %v1720_v18  ;;  %v6258_v20 = vpop.f32.mrf.mxu0  ;;  %v6268_v63 = vpack.c.bf16 %v1914_v62, %v1911_v43  ;;  %v1919_v62 = vadd.f32 %v6145_v5, %v6179_v26  ;;  %v1930_v5 = vadd.f32 %v6150_v53, %v6209_v56 }
 0x245   :  { %v1722_v2 = vpop.f32.mrf.mxu1 }
 0x246   :  { %v6262_v49 = vpack.c.bf16 %v1946_v40, %v1943_v39  ;;  %v6264_v10 = vpop.f32.mrf.mxu0  ;;  %3875 = vmatmul.mubr.bf16.vlgmr.msra.gmra.mxu0 %v5588_v60  ;;  %v6289_v43 = vpack.c.bf16 %v1922_v12, %v1919_v62  ;;  %v1935_v62 = vadd.f32 %v6165_v21, %v6220_v55 }
 0x247   :  { %v1725_v1 = vpop.f32.mrf.mxu1  ;;  %3882 = vmatprep.mubr.bf16.mxu0 %v5617_v24 }
 0x248   :  { %6986 = vst [vmem:[#allocation51_spill] sm:$0xff] %v6262_v49  ;;  %v6270_v6 = vpop.f32.mrf.mxu0  ;;  %v1951_v3 = vadd.f32 %v6187_v29, %v1725_v1 }
 0x249   :  { %v1727_v4 = vpop.f32.mrf.mxu1  ;;  %3712 = vmatmul.mubr.bf16.gmra.mxu1 %v6268_v63 }
 0x24a   :  { %v6273_v38 = vpop.f32.mrf.mxu0  ;;  %3721 = vmatprep.mubr.bf16.mxu1 %v6924_v37  ;;  %v1927_v4 = vadd.f32 %v6139_v41, %v6198_v59  ;;  %v1938_v41 = vadd.f32 %v6177_v48, %v6231_v34 }
 0x24b   :  { %v1728_v33 = vpop.f32.mrf.mxu1 }
 0x24c   :  { %v1954_v60 = vadd.f32 %v1953_v15, %v1728_v33  ;;  %v6279_v24 = vpop.f32.mrf.mxu0  ;;  %v6311_v53 = vpack.c.bf16 %v1930_v5, %v1927_v4  ;;  %v6333_v48 = vpack.c.bf16 %v1938_v41, %v1935_v62  ;;  %v6990_v4 = vld [vmem:[#allocation39_spill] sm:$0xff] }
 0x24d   :  { %v1730_v18 = vpop.f32.mrf.mxu1 }
 0x24e   :  { %v6283_v39 = vpack.c.bf16 %v1954_v60, %v1951_v3  ;;  %v6285_v2 = vpop.f32.mrf.mxu0  ;;  %3883 = vmatmul.mubr.bf16.gmra.mxu0 %v5608_v8 }
 0x24f   :  { %v1733_v40 = vpop.f32.mrf.mxu1  ;;  %3890 = vmatprep.mubr.bf16.mxu0 %v5637_v61 }
 0x250   :  { %6987 = vst [vmem:[#allocation52_spill] sm:$0xff] %v6283_v39  ;;  %v6291_v1 = vpop.f32.mrf.mxu0  ;;  %v1959_v26 = vadd.f32 %v6181_v17, %v1733_v40 }
 0x251   :  { %v1735_v46 = vpop.f32.mrf.mxu1  ;;  %3722 = vmatmul.mubr.bf16.gmra.mxu1 %v6289_v43 }
 0x252   :  { %v6294_v52 = vpop.f32.mrf.mxu0  ;;  %3731 = vmatprep.mubr.bf16.mxu1 %v6924_v37 }
 0x253   :  { %v1736_v29 = vpop.f32.mrf.mxu1 }
 0x254   :  { %v1962_v8 = vadd.f32 %v6192_v50, %v1736_v29  ;;  %v6301_v15 = vpop.f32.mrf.mxu0 }
 0x255   :  { %v1738_v61 = vpop.f32.mrf.mxu1 }
 0x256   :  { %v6305_v33 = vpack.c.bf16 %v1962_v8, %v1959_v26  ;;  %v6307_v3 = vpop.f32.mrf.mxu0  ;;  %3891 = vmatmul.mubr.bf16.gmra.mxu0 %v5628_v54 }
 0x257   :  { %v1741_v12 = vpop.f32.mrf.mxu1  ;;  %3898 = vmatprep.mubr.bf16.mxu0 %v5657_v32 }
 0x258   :  { %6988 = vst [vmem:[#allocation53_spill] sm:$0xff] %v6305_v33  ;;  %v6313_v56 = vpop.f32.mrf.mxu0  ;;  %v1967_v59 = vadd.f32 %v6206_v58, %v1741_v12  ;;  %v6991_v12 = vld [vmem:[#allocation41_spill] sm:$0xff] }
 0x259   :  { %v1743_v17 = vpop.f32.mrf.mxu1  ;;  %3732 = vmatmul.mubr.bf16.gmra.mxu1 %v6311_v53 }
 0x25a   :  { %v6316_v60 = vpop.f32.mrf.mxu0  ;;  %3741 = vmatprep.mubr.bf16.mxu1 %v6924_v37 }
 0x25b   :  { %v1744_v50 = vpop.f32.mrf.mxu1 }
 0x25c   :  { %v1970_v54 = vadd.f32 %v6218_v9, %v1744_v50  ;;  %v6323_v18 = vpop.f32.mrf.mxu0 }
 0x25d   :  { %v1746_v32 = vpop.f32.mrf.mxu1 }
 0x25e   :  { %v6327_v40 = vpack.c.bf16 %v1970_v54, %v1967_v59  ;;  %v6329_v29 = vpop.f32.mrf.mxu0  ;;  %3899 = vmatmul.mubr.bf16.gmra.mxu0 %v5648_v19 }
 0x25f   :  { %v1749_v46 = vpop.f32.mrf.mxu1  ;;  %3906 = vmatprep.mubr.bf16.mxu0 %v5677_v36 }
 0x260   :  { %6989 = vst [vmem:[#allocation54_spill] sm:$0xff] %v6327_v40  ;;  %v6335_v34 = vpop.f32.mrf.mxu0  ;;  %v1975_v21 = vadd.f32 %v6200_v57, %v1749_v46 }
 0x261   :  { %v1751_v58 = vpop.f32.mrf.mxu1  ;;  %3742 = vmatmul.mubr.bf16.gmra.mxu1 %v6333_v48 }
 0x262   :  { %v6338_v5 = vpop.f32.mrf.mxu0  ;;  %3751 = vmatprep.mubr.bf16.mxu1 %v6924_v37 }
 0x263   :  { %v1752_v9 = vpop.f32.mrf.mxu1 }
 0x264   :  { %v1978_v55 = vadd.f32 %v6211_v11, %v1752_v9  ;;  %v6343_v19 = vpop.f32.mrf.mxu0  ;;  %v6992_v9 = vld [vmem:[#allocation40_spill] sm:$0xff] }
 0x265   :  { %v1754_v26 = vpop.f32.mrf.mxu1 }
 0x266   :  { %v6345_v36 = vpack.c.bf16 %v1978_v55, %v1975_v21  ;;  %v6347_v61 = vpop.f32.mrf.mxu0  ;;  %3907 = vmatmul.mubr.bf16.gmra.mxu0 %v6990_v4  ;;  %v6993_v21 = vld [vmem:[#allocation43_spill] sm:$0xff] }
 0x267   :  { %v1757_v8 = vpop.f32.mrf.mxu1  ;;  %3914 = vmatprep.mubr.bf16.mxu0 %v6991_v12 }
 0x268   :  { %v6351_v50 = vpop.f32.mrf.mxu0  ;;  %v1983_v11 = vadd.f32 %v6228_v0, %v1757_v8 }
 0x269   :  { %v1759_v17 = vpop.f32.mrf.mxu1  ;;  %3752 = vmatmul.mubr.bf16.gmra.mxu1 %v6262_v49 }
 0x26a   :  { %v6354_v41 = vpop.f32.mrf.mxu0  ;;  %3761 = vmatprep.mubr.bf16.mxu1 %v6924_v37 }
 0x26b   :  { %v1760_v57 = vpop.f32.mrf.mxu1 }
 0x26c   :  { %v1986_v59 = vadd.f32 %v6240_v42, %v1760_v57  ;;  %v6359_v32 = vpop.f32.mrf.mxu0 }
 0x26d   :  { %v1762_v54 = vpop.f32.mrf.mxu1 }
 0x26e   :  { %v6361_v62 = vpack.c.bf16 %v1986_v59, %v1983_v11  ;;  %v6363_v58 = vpop.f32.mrf.mxu0  ;;  %3915 = vmatmul.mubr.bf16.gmra.mxu0 %v6992_v9  ;;  %v6994_v54 = vld [vmem:[#allocation42_spill] sm:$0xff]  ;;  %v6995_v9 = vld [vmem:[#allocation15_spill] sm:$0xff] }
 0x26f   :  { %v1765_v46 = vpop.f32.mrf.mxu1  ;;  %3922 = vmatprep.mubr.bf16.mxu0 %v6993_v21 }
 0x270   :  { %v6367_v26 = vpop.f32.mrf.mxu0  ;;  %v1991_v42 = vadd.f32 %v6222_v22, %v1765_v46 }
 0x271   :  { %v1767_v55 = vpop.f32.mrf.mxu1  ;;  %3762 = vmatmul.mubr.bf16.gmra.mxu1 %v6283_v39 }
 0x272   :  { %v6370_v8 = vpop.f32.mrf.mxu0  ;;  %3771 = vmatprep.mubr.bf16.mxu1 %v6924_v37 }
 0x273   :  { %v1768_v0 = vpop.f32.mrf.mxu1 }
 0x274   :  { %v1994_v4 = vadd.f32 %v6233_v23, %v1768_v0  ;;  %v6375_v17 = vpop.f32.mrf.mxu0 }
 0x275   :  { %v1770_v12 = vpop.f32.mrf.mxu1 }
 0x276   :  { %v6377_v57 = vpack.c.bf16 %v1994_v4, %v1991_v42  ;;  %v6379_v59 = vpop.f32.mrf.mxu0  ;;  %3923 = vmatmul.mubr.bf16.gmra.mxu0 %v6994_v54 }
 0x277   :  { %v1773_v11 = vpop.f32.mrf.mxu1  ;;  %3930 = vmatprep.mubr.bf16.mxu0 %v6995_v9 }
 0x278   :  { %v6383_v55 = vpop.f32.mrf.mxu0  ;;  %v1999_v23 = vadd.f32 %v6248_v47, %v1773_v11 }
 0x279   :  { %v1775_v21 = vpop.f32.mrf.mxu1  ;;  %3772 = vmatmul.mubr.bf16.gmra.mxu1 %v6305_v33  ;;  %v6997_v33 = vld [vmem:[#allocation12_spill] sm:$0xff] }
 0x27a   :  { %v6386_v46 = vpop.f32.mrf.mxu0  ;;  %3781 = vmatprep.mubr.bf16.mxu1 %v6924_v37  ;;  %v6996_v21 = vld [vmem:[#allocation44_spill] sm:$0xff] }
 0x27b   :  { %v1776_v22 = vpop.f32.mrf.mxu1 }
 0x27c   :  { %v2002_v0 = vadd.f32 %v6258_v20, %v1776_v22  ;;  %v6391_v4 = vpop.f32.mrf.mxu0 }
 0x27d   :  { %v1778_v42 = vpop.f32.mrf.mxu1 }
 0x27e   :  { %v6393_v12 = vpack.c.bf16 %v2002_v0, %v1999_v23  ;;  %v6395_v9 = vpop.f32.mrf.mxu0  ;;  %3931 = vmatmul.mubr.bf16.gmra.mxu0 %v6996_v21 }
 0x27f   :  { %v1781_v54 = vpop.f32.mrf.mxu1  ;;  %3938 = vmatprep.mubr.bf16.mxu0 %v6997_v33 }
 0x280   :  { %v6399_v49 = vpop.f32.mrf.mxu0  ;;  %v2007_v20 = vadd.f32 %v6242_v27, %v1781_v54 }
 0x281   :  { %v1783_v39 = vpop.f32.mrf.mxu1  ;;  %3782 = vmatmul.mubr.bf16.gmra.mxu1 %v6327_v40 }
 0x282   :  { %v6402_v11 = vpop.f32.mrf.mxu0  ;;  %3791 = vmatprep.mubr.bf16.mxu1 %v6924_v37  ;;  %v6998_v39 = vld [vmem:[#allocation45_spill] sm:$0xff] }
 0x283   :  { %v1784_v47 = vpop.f32.mrf.mxu1 }
 0x284   :  { %v2010_v22 = vadd.f32 %v6251_v31, %v1784_v47  ;;  %v6407_v23 = vpop.f32.mrf.mxu0 }
 0x285   :  { %v1786_v0 = vpop.f32.mrf.mxu1 }
 0x286   :  { %v6409_v42 = vpack.c.bf16 %v2010_v22, %v2007_v20  ;;  %v6411_v33 = vpop.f32.mrf.mxu0  ;;  %3939 = vmatmul.mubr.bf16.gmra.mxu0 %v6998_v39 }
 0x287   :  { %3946 = vmatprep.mubr.bf16.mxu0 %v5778_v7 }
 0x288   :  { %v6415_v21 = vpop.f32.mrf.mxu0 }
 0x289   :  { %3792 = vmatmul.mubr.bf16.gmra.mxu1 %v6345_v36 }
 0x28a   :  { %v6418_v40 = vpop.f32.mrf.mxu0  ;;  %3801 = vmatprep.mubr.bf16.mxu1 %v6924_v37 }
 0x28c   :  { %v6421_v27 = vpop.f32.mrf.mxu0 }
 0x28e   :  { %v6423_v31 = vpop.f32.mrf.mxu0  ;;  %3947 = vmatmul.mubr.bf16.gmra.mxu0 %v5769_v51 }
 0x28f   :  { %3954 = vmatprep.mubr.bf16.mxu0 %v5801_v13 }
 0x290   :  { %v6427_v54 = vpop.f32.mrf.mxu0 }
 0x291   :  { %3802 = vmatmul.mubr.bf16.gmra.mxu1 %v6361_v62 }
 0x292   :  { %v6430_v7 = vpop.f32.mrf.mxu0  ;;  %3811 = vmatprep.mubr.bf16.mxu1 %v6924_v37 }
 0x294   :  { %v6433_v47 = vpop.f32.mrf.mxu0 }
 0x296   :  { %v6435_v20 = vpop.f32.mrf.mxu0  ;;  %3955 = vmatmul.mubr.bf16.gmra.mxu0 %v5792_v44 }
 0x297   :  { %3962 = vmatprep.mubr.bf16.mxu0 %v5821_v45 }
 0x298   :  { %v6439_v22 = vpop.f32.mrf.mxu0 }
 0x299   :  { %3812 = vmatmul.mubr.bf16.gmra.mxu1 %v6377_v57 }
 0x29a   :  { %v6442_v51 = vpop.f32.mrf.mxu0  ;;  %3821 = vmatprep.mubr.bf16.mxu1 %v6924_v37 }
 0x29b   :  { %6999 = vst [vmem:[#allocation39_spill] sm:$0xff] %v6442_v51 }
 0x29c   :  { %v6445_v13 = vpop.f32.mrf.mxu0 }
 0x29d   :  { %7000 = vst [vmem:[#allocation41_spill] sm:$0xff] %v6445_v13  ;;  %v7006_v13 = vld [vmem:[#allocation18_spill] sm:$0xff] }
 0x29e   :  { %v6447_v0 = vpop.f32.mrf.mxu0  ;;  %3963 = vmatmul.mubr.bf16.gmra.mxu0 %v5812_v16 }
 0x29f   :  { %7001 = vst [vmem:[#allocation40_spill] sm:$0xff] %v6447_v0  ;;  %3970 = vmatprep.mubr.bf16.mxu0 %v5843_v14 }
 0x2a0   :  { %v6451_v39 = vpop.f32.mrf.mxu0 }
 0x2a1   :  { %7002 = vst [vmem:[#allocation43_spill] sm:$0xff] %v6451_v39  ;;  %3822 = vmatmul.mubr.bf16.gmra.mxu1 %v6393_v12 }
 0x2a2   :  { %v6454_v44 = vpop.f32.mrf.mxu0  ;;  %3831 = vmatprep.mubr.bf16.mxu1 %v6924_v37  ;;  %v7011_v37 = vld [vmem:[#allocation21_spill] sm:$0xff] }
 0x2a3   :  { %7003 = vst [vmem:[#allocation42_spill] sm:$0xff] %v6454_v44 }
 0x2a4   :  { %v6457_v45 = vpop.f32.mrf.mxu0 }
 0x2a5   :  { %7004 = vst [vmem:[#allocation15_spill] sm:$0xff] %v6457_v45 }
 0x2a6   :  { %v6459_v51 = vpop.f32.mrf.mxu0  ;;  %3971 = vmatmul.mubr.bf16.gmra.mxu0 %v5834_v25 }
 0x2a7   :  { %7005 = vst [vmem:[#allocation44_spill] sm:$0xff] %v6459_v51  ;;  %3978 = vmatprep.mubr.bf16.mxu0 %v7006_v13  ;;  %v7013_v13 = vld [vmem:[#allocation35_spill] sm:$0xff] }
 0x2a8   :  { %v6463_v0 = vpop.f32.mrf.mxu0 }
 0x2a9   :  { %7007 = vst [vmem:[#allocation12_spill] sm:$0xff] %v6463_v0  ;;  %3832 = vmatmul.mubr.bf16.gmra.mxu1 %v6409_v42 }
 0x2aa   :  { %v6466_v16 = vpop.f32.mrf.mxu0  ;;  %4814 = vmatprep.mubr.bf16.mxu1 %v6059_v30 }
 0x2ab   :  { %7008 = vst [vmem:[#allocation45_spill] sm:$0xff] %v6466_v16  ;;  %v7015_v16 = vld [vmem:[#allocation36_spill] sm:$0xff] }
 0x2ac   :  { %v6469_v14 = vpop.f32.mrf.mxu0 }
 0x2ad   :  { %7009 = vst [vmem:[#allocation18_spill] sm:$0xff] %v6469_v14 }
 0x2ae   :  { %v6471_v44 = vpop.f32.mrf.mxu0  ;;  %3979 = vmatmul.mubr.bf16.gmra.mxu0 %v5856_v28 }
 0x2af   :  { %7010 = vst [vmem:[#allocation55_spill] sm:$0xff] %v6471_v44  ;;  %3986 = vmatprep.mubr.bf16.mxu0 %v7011_v37  ;;  %v7016_v37 = vld [vmem:[#allocation13_spill] sm:$0xff] }
 0x2b0   :  { %v6475_v51 = vpop.f32.mrf.mxu0 }
 0x2b1   :  { %7012 = vst [vmem:[#allocation21_spill] sm:$0xff] %v6475_v51  ;;  %v3603_v25 = vpop.f32.mrf.mxu1  ;;  %4815 = vmatmul.mubr.bf16.vlgmr.msra.gmra.mxu1 %v7013_v13  ;;  %v7017_v51 = vld [vmem:[#allocation24_spill] sm:$0xff] }
 0x2b2   :  { %v6478_v0 = vpop.f32.mrf.mxu0  ;;  %v3604_v45 = vadd.f32 %v3603_v25, %v6264_v10  ;;  %4818 = vmatprep.mubr.bf16.mxu1 %v7015_v16 }
 0x2b3   :  { %7014 = vst [vmem:[#allocation35_spill] sm:$0xff] %v6478_v0  ;;  %v3605_v30 = vpop.f32.mrf.mxu1 }
 0x2b4   :  { %v6482_v39 = vpop.f32.mrf.mxu0  ;;  %4292 = vst [vmem:[#allocation8] sm:$0xff] %v3604_v45  ;;  %v3606_v44 = vadd.f32 %v3605_v30, %v6270_v6  ;;  %v7018_v45 = vld [vmem:[#allocation37_spill] sm:$0xff] }
 0x2b5   :  { %v3607_v28 = vpop.f32.mrf.mxu1 }
 0x2b6   :  { %v6485_v14 = vpop.f32.mrf.mxu0  ;;  %3987 = vmatmul.mubr.bf16.gmra.mxu0 %v7016_v37  ;;  %4293 = vst [vmem:[#allocation8 + $0x8] sm:$0xff] %v3606_v44  ;;  %v3608_v13 = vadd.f32 %v3607_v28, %v6273_v38  ;;  %v7019_v37 = vld [vmem:[#allocation38_spill] sm:$0xff] }
 0x2b7   :  { %3994 = vmatprep.mubr.bf16.mxu0 %v7017_v51  ;;  %v3609_v0 = vpop.f32.mrf.mxu1 }
 0x2b8   :  { %v6490_v10 = vpop.f32.mrf.mxu0  ;;  %4295 = vst [vmem:[#allocation8 + $0x18] sm:$0xff] %v3608_v13  ;;  %v3610_v16 = vadd.f32 %v3609_v0, %v6279_v24  ;;  %v7020_v24 = vld [vmem:[#allocation14_spill] sm:$0xff] }
 0x2b9   :  { %v3613_v25 = vpop.f32.mrf.mxu1  ;;  %4819 = vmatmul.mubr.bf16.gmra.mxu1 %v7018_v45  ;;  %v7021_v45 = vld [vmem:[#allocation27_spill] sm:$0xff] }
 0x2ba   :  { %v6494_v6 = vpop.f32.mrf.mxu0  ;;  %4296 = vst [vmem:[#allocation8 + $0x20] sm:$0xff] %v3610_v16  ;;  %v3614_v30 = vadd.f32 %v3613_v25, %v6285_v2  ;;  %4822 = vmatprep.mubr.bf16.mxu1 %v7019_v37 }
 0x2bb   :  { %v3615_v44 = vpop.f32.mrf.mxu1 }
 0x2bc   :  { %v6498_v38 = vpop.f32.mrf.mxu0  ;;  %4298 = vst [vmem:[#allocation8 + $0x30] sm:$0xff] %v3614_v30  ;;  %v3616_v51 = vadd.f32 %v3615_v44, %v6291_v1  ;;  %v7022_v30 = vld [vmem:[#allocation46_spill] sm:$0xff] }
 0x2bd   :  { %v3617_v28 = vpop.f32.mrf.mxu1 }
 0x2be   :  { %v6501_v13 = vpop.f32.mrf.mxu0  ;;  %3995 = vmatmul.mubr.bf16.gmra.mxu0 %v7020_v24  ;;  %4299 = vst [vmem:[#allocation8 + $0x38] sm:$0xff] %v3616_v51  ;;  %v3618_v0 = vadd.f32 %v3617_v28, %v6294_v52  ;;  %v7023_v24 = vld [vmem:[#allocation47_spill] sm:$0xff] }
 0x2bf   :  { %4002 = vmatprep.mubr.bf16.mxu0 %v7021_v45  ;;  %v3619_v16 = vpop.f32.mrf.mxu1 }
 0x2c0   :  { %v6506_v2 = vpop.f32.mrf.mxu0  ;;  %4301 = vst [vmem:[#allocation8 + $0x48] sm:$0xff] %v3618_v0  ;;  %v3620_v25 = vadd.f32 %v3619_v16, %v6301_v15  ;;  %v7024_v15 = vld [vmem:[#allocation16_spill] sm:$0xff] }
 0x2c1   :  { %v3623_v37 = vpop.f32.mrf.mxu1  ;;  %4823 = vmatmul.mubr.bf16.gmra.mxu1 %v7022_v30  ;;  %v7025_v30 = vld [vmem:[#allocation30_spill] sm:$0xff] }
 0x2c2   :  { %v6510_v1 = vpop.f32.mrf.mxu0  ;;  %4302 = vst [vmem:[#allocation8 + $0x50] sm:$0xff] %v3620_v25  ;;  %v3624_v44 = vadd.f32 %v3623_v37, %v6307_v3  ;;  %4826 = vmatprep.mubr.bf16.mxu1 %v7023_v24 }
 0x2c3   :  { %v3625_v51 = vpop.f32.mrf.mxu1 }
 0x2c4   :  { %v6514_v52 = vpop.f32.mrf.mxu0  ;;  %4304 = vst [vmem:[#allocation8 + $0x60] sm:$0xff] %v3624_v44  ;;  %v3626_v28 = vadd.f32 %v3625_v51, %v6313_v56  ;;  %v7026_v51 = vld [vmem:[#allocation48_spill] sm:$0xff] }
 0x2c5   :  { %v3627_v45 = vpop.f32.mrf.mxu1 }
 0x2c6   :  { %v6517_v0 = vpop.f32.mrf.mxu0  ;;  %4003 = vmatmul.mubr.bf16.gmra.mxu0 %v7024_v15  ;;  %4305 = vst [vmem:[#allocation8 + $0x68] sm:$0xff] %v3626_v28  ;;  %v3628_v16 = vadd.f32 %v3627_v45, %v6316_v60 }
 0x2c7   :  { %4010 = vmatprep.mubr.bf16.mxu0 %v7025_v30  ;;  %v3629_v25 = vpop.f32.mrf.mxu1  ;;  %v7028_v30 = vld [vmem:[#allocation20_spill] sm:$0xff] }
 0x2c8   :  { %v6522_v3 = vpop.f32.mrf.mxu0  ;;  %4307 = vst [vmem:[#allocation8 + $0x78] sm:$0xff] %v3628_v16  ;;  %v3630_v37 = vadd.f32 %v3629_v25, %v6323_v18  ;;  %v7027_v18 = vld [vmem:[#allocation17_spill] sm:$0xff] }
 0x2c9   :  { %v3633_v24 = vpop.f32.mrf.mxu1  ;;  %4827 = vmatmul.mubr.bf16.gmra.mxu1 %v6185_v35 }
 0x2ca   :  { %v6526_v56 = vpop.f32.mrf.mxu0  ;;  %4308 = vst [vmem:[#allocation8 + $0x80] sm:$0xff] %v3630_v37  ;;  %v3634_v44 = vadd.f32 %v3633_v24, %v6329_v29  ;;  %4830 = vmatprep.mubr.bf16.mxu1 %v7026_v51 }
 0x2cb   :  { %v3635_v28 = vpop.f32.mrf.mxu1 }
 0x2cc   :  { %v6530_v60 = vpop.f32.mrf.mxu0  ;;  %4310 = vst [vmem:[#allocation8 + $0x90] sm:$0xff] %v3634_v44  ;;  %v3636_v45 = vadd.f32 %v3635_v28, %v6335_v34  ;;  %v7029_v44 = vld [vmem:[#allocation49_spill] sm:$0xff]  ;;  %v7030_v28 = vld [vmem:[#allocation50_spill] sm:$0xff] }
 0x2cd   :  { %v3637_v15 = vpop.f32.mrf.mxu1 }
 0x2ce   :  { %v6533_v16 = vpop.f32.mrf.mxu0  ;;  %4011 = vmatmul.mubr.bf16.gmra.mxu0 %v7027_v18  ;;  %4311 = vst [vmem:[#allocation8 + $0x98] sm:$0xff] %v3636_v45  ;;  %v3638_v35 = vadd.f32 %v3637_v15, %v6338_v5 }
 0x2cf   :  { %4018 = vmatprep.mubr.bf16.mxu0 %v7028_v30  ;;  %v3639_v25 = vpop.f32.mrf.mxu1 }
 0x2d0   :  { %v6538_v29 = vpop.f32.mrf.mxu0  ;;  %4313 = vst [vmem:[#allocation8 + $0xa8] sm:$0xff] %v3638_v35  ;;  %v3640_v37 = vadd.f32 %v3639_v25, %v6343_v19  ;;  %v7031_v19 = vld [vmem:[#allocation19_spill] sm:$0xff] }
 0x2d1   :  { %v3643_v24 = vpop.f32.mrf.mxu1  ;;  %4831 = vmatmul.mubr.bf16.gmra.mxu1 %v7029_v44  ;;  %v7032_v25 = vld [vmem:[#allocation23_spill] sm:$0xff] }
 0x2d2   :  { %v6542_v34 = vpop.f32.mrf.mxu0  ;;  %4314 = vst [vmem:[#allocation8 + $0xb0] sm:$0xff] %v3640_v37  ;;  %v3644_v51 = vadd.f32 %v3643_v24, %v6347_v61  ;;  %4834 = vmatprep.mubr.bf16.mxu1 %v7030_v28 }
 0x2d3   :  { %v3645_v45 = vpop.f32.mrf.mxu1 }
 0x2d4   :  { %v6546_v5 = vpop.f32.mrf.mxu0  ;;  %4316 = vst [vmem:[#allocation8 + $0xc0] sm:$0xff] %v3644_v51  ;;  %v3646_v15 = vadd.f32 %v3645_v45, %v6351_v50 }
 0x2d5   :  { %v3647_v18 = vpop.f32.mrf.mxu1 }
 0x2d6   :  { %v6549_v35 = vpop.f32.mrf.mxu0  ;;  %4019 = vmatmul.mubr.bf16.gmra.mxu0 %v7031_v19  ;;  %4317 = vst [vmem:[#allocation8 + $0xc8] sm:$0xff] %v3646_v15  ;;  %v3648_v30 = vadd.f32 %v3647_v18, %v6354_v41  ;;  %v7034_v19 = vld [vmem:[#allocation26_spill] sm:$0xff] }
 0x2d7   :  { %4026 = vmatprep.mubr.bf16.mxu0 %v7032_v25  ;;  %v3649_v37 = vpop.f32.mrf.mxu1 }
 0x2d8   :  { %v6554_v61 = vpop.f32.mrf.mxu0  ;;  %4319 = vst [vmem:[#allocation8 + $0xd8] sm:$0xff] %v3648_v30  ;;  %v3650_v24 = vadd.f32 %v3649_v37, %v6359_v32  ;;  %v7033_v32 = vld [vmem:[#allocation22_spill] sm:$0xff] }
 0x2d9   :  { %v3653_v44 = vpop.f32.mrf.mxu1  ;;  %4835 = vmatmul.mubr.bf16.gmra.mxu1 %v6268_v63 }
 0x2da   :  { %v6558_v50 = vpop.f32.mrf.mxu0  ;;  %4320 = vst [vmem:[#allocation8 + $0xe0] sm:$0xff] %v3650_v24  ;;  %v3654_v51 = vadd.f32 %v3653_v44, %v6363_v58  ;;  %4838 = vmatprep.mubr.bf16.mxu1 %v6289_v43 }
 0x2db   :  { %v3655_v28 = vpop.f32.mrf.mxu1 }
 0x2dc   :  { %v6562_v41 = vpop.f32.mrf.mxu0  ;;  %4322 = vst [vmem:[#allocation8 + $0xf0] sm:$0xff] %v3654_v51  ;;  %v3656_v45 = vadd.f32 %v3655_v28, %v6367_v26 }
 0x2dd   :  { %v3657_v15 = vpop.f32.mrf.mxu1 }
 0x2de   :  { %v6565_v18 = vpop.f32.mrf.mxu0  ;;  %4027 = vmatmul.mubr.bf16.gmra.mxu0 %v7033_v32  ;;  %4323 = vst [vmem:[#allocation8 + $0xf8] sm:$0xff] %v3656_v45  ;;  %v3658_v63 = vadd.f32 %v3657_v15, %v6370_v8  ;;  %v7036_v45 = vld [vmem:[#allocation29_spill] sm:$0xff] }
 0x2df   :  { %4034 = vmatprep.mubr.bf16.mxu0 %v7034_v19  ;;  %v3659_v30 = vpop.f32.mrf.mxu1 }
 0x2e0   :  { %v6570_v58 = vpop.f32.mrf.mxu0  ;;  %4325 = vst [vmem:[#allocation8 + $0x108] sm:$0xff] %v3658_v63  ;;  %v3660_v43 = vadd.f32 %v3659_v30, %v6375_v17  ;;  %v7035_v17 = vld [vmem:[#allocation25_spill] sm:$0xff]  ;;  %v7037_v63 = vld [vmem:[#allocation51_spill] sm:$0xff]  ;;  %v7038_v30 = vld [vmem:[#allocation52_spill] sm:$0xff] }
 0x2e1   :  { %v3663_v25 = vpop.f32.mrf.mxu1  ;;  %4839 = vmatmul.mubr.bf16.gmra.mxu1 %v6311_v53 }
 0x2e2   :  { %v6574_v26 = vpop.f32.mrf.mxu0  ;;  %4326 = vst [vmem:[#allocation8 + $0x110] sm:$0xff] %v3660_v43  ;;  %v3664_v37 = vadd.f32 %v3663_v25, %v6379_v59  ;;  %4842 = vmatprep.mubr.bf16.mxu1 %v6333_v48 }
 0x2e3   :  { %v3665_v24 = vpop.f32.mrf.mxu1 }
 0x2e4   :  { %v6578_v8 = vpop.f32.mrf.mxu0  ;;  %4328 = vst [vmem:[#allocation8 + $0x120] sm:$0xff] %v3664_v37  ;;  %v3666_v44 = vadd.f32 %v3665_v24, %v6383_v55 }
 0x2e5   :  { %v3667_v51 = vpop.f32.mrf.mxu1 }
 0x2e6   :  { %v6581_v28 = vpop.f32.mrf.mxu0  ;;  %4035 = vmatmul.mubr.bf16.gmra.mxu0 %v7035_v17  ;;  %4329 = vst [vmem:[#allocation8 + $0x128] sm:$0xff] %v3666_v44  ;;  %v3668_v53 = vadd.f32 %v3667_v51, %v6386_v46  ;;  %v7040_v51 = vld [vmem:[#allocation32_spill] sm:$0xff] }
 0x2e7   :  { %4042 = vmatprep.mubr.bf16.mxu0 %v7036_v45  ;;  %v3669_v15 = vpop.f32.mrf.mxu1 }
 0x2e8   :  { %v6586_v59 = vpop.f32.mrf.mxu0  ;;  %4331 = vst [vmem:[#allocation8 + $0x138] sm:$0xff] %v3668_v53  ;;  %v3670_v48 = vadd.f32 %v3669_v15, %v6391_v4  ;;  %v7039_v4 = vld [vmem:[#allocation28_spill] sm:$0xff]  ;;  %v7041_v15 = vld [vmem:[#allocation53_spill] sm:$0xff] }
 0x2e9   :  { %v3673_v32 = vpop.f32.mrf.mxu1  ;;  %4843 = vmatmul.mubr.bf16.gmra.mxu1 %v7037_v63 }
 0x2ea   :  { %v6590_v55 = vpop.f32.mrf.mxu0  ;;  %4332 = vst [vmem:[#allocation8 + $0x140] sm:$0xff] %v3670_v48  ;;  %v3674_v19 = vadd.f32 %v3673_v32, %v6395_v9  ;;  %4846 = vmatprep.mubr.bf16.mxu1 %v7038_v30  ;;  %v7042_v32 = vld [vmem:[#allocation54_spill] sm:$0xff] }
 0x2eb   :  { %v3675_v43 = vpop.f32.mrf.mxu1 }
 0x2ec   :  { %v6594_v46 = vpop.f32.mrf.mxu0  ;;  %4334 = vst [vmem:[#allocation8 + $0x150] sm:$0xff] %v3674_v19  ;;  %v3676_v25 = vadd.f32 %v3675_v43, %v6399_v49 }
 0x2ed   :  { %v3677_v37 = vpop.f32.mrf.mxu1 }
 0x2ee   :  { %v6597_v24 = vpop.f32.mrf.mxu0  ;;  %4043 = vmatmul.mubr.bf16.gmra.mxu0 %v7039_v4  ;;  %4335 = vst [vmem:[#allocation8 + $0x158] sm:$0xff] %v3676_v25  ;;  %v3678_v44 = vadd.f32 %v3677_v37, %v6402_v11  ;;  %v7044_v37 = vld [vmem:[#allocation34_spill] sm:$0xff] }
 0x2ef   :  { %4050 = vmatprep.mubr.bf16.mxu0 %v7040_v51  ;;  %v3679_v17 = vpop.f32.mrf.mxu1 }
 0x2f0   :  { %v6602_v9 = vpop.f32.mrf.mxu0  ;;  %4337 = vst [vmem:[#allocation8 + $0x168] sm:$0xff] %v3678_v44  ;;  %v3680_v53 = vadd.f32 %v3679_v17, %v6407_v23  ;;  %v7043_v23 = vld [vmem:[#allocation31_spill] sm:$0xff] }
 0x2f1   :  { %v3683_v45 = vpop.f32.mrf.mxu1  ;;  %4847 = vmatmul.mubr.bf16.gmra.mxu1 %v7041_v15 }
 0x2f2   :  { %v6606_v49 = vpop.f32.mrf.mxu0  ;;  %4338 = vst [vmem:[#allocation8 + $0x170] sm:$0xff] %v3680_v53  ;;  %v3684_v48 = vadd.f32 %v3683_v45, %v6411_v33  ;;  %4850 = vmatprep.mubr.bf16.mxu1 %v7042_v32 }
 0x2f3   :  { %v3685_v63 = vpop.f32.mrf.mxu1 }
 0x2f4   :  { %v6610_v11 = vpop.f32.mrf.mxu0  ;;  %4340 = vst [vmem:[#allocation8 + $0x180] sm:$0xff] %v3684_v48  ;;  %v3686_v19 = vadd.f32 %v3685_v63, %v6415_v21 }
 0x2f5   :  { %v3687_v30 = vpop.f32.mrf.mxu1 }
 0x2f6   :  { %v6613_v43 = vpop.f32.mrf.mxu0  ;;  %4051 = vmatmul.mubr.bf16.gmra.mxu0 %v7043_v23  ;;  %4341 = vst [vmem:[#allocation8 + $0x188] sm:$0xff] %v3686_v19  ;;  %v3688_v25 = vadd.f32 %v3687_v30, %v6418_v40 }
 0x2f7   :  { %4058 = vmatprep.mubr.bf16.mxu0 %v7044_v37  ;;  %v3689_v4 = vpop.f32.mrf.mxu1 }
 0x2f8   :  { %v6618_v33 = vpop.f32.mrf.mxu0  ;;  %4343 = vst [vmem:[#allocation8 + $0x198] sm:$0xff] %v3688_v25  ;;  %v3690_v44 = vadd.f32 %v3689_v4, %v6421_v27  ;;  %v7045_v27 = vld [vmem:[#allocation33_spill] sm:$0xff] }
 0x2f9   :  { %v3693_v51 = vpop.f32.mrf.mxu1  ;;  %4851 = vmatmul.mubr.bf16.gmra.mxu1 %v6345_v36 }
 0x2fa   :  { %v6622_v21 = vpop.f32.mrf.mxu0  ;;  %4344 = vst [vmem:[#allocation8 + $0x1a0] sm:$0xff] %v3690_v44  ;;  %v3694_v17 = vadd.f32 %v3693_v51, %v6423_v31  ;;  %4854 = vmatprep.mubr.bf16.mxu1 %v6361_v62  ;;  %v7047_v51 = vld [vmem:[#allocation41_spill] sm:$0xff] }
 0x2fb   :  { %v3695_v53 = vpop.f32.mrf.mxu1 }
 0x2fc   :  { %v6626_v40 = vpop.f32.mrf.mxu0  ;;  %4346 = vst [vmem:[#allocation8 + $0x1b0] sm:$0xff] %v3694_v17  ;;  %v3696_v45 = vadd.f32 %v3695_v53, %v6427_v54  ;;  %v7048_v53 = vld [vmem:[#allocation40_spill] sm:$0xff] }
 0x2fd   :  { %v3697_v15 = vpop.f32.mrf.mxu1 }
 0x2fe   :  { %v6629_v48 = vpop.f32.mrf.mxu0  ;;  %4059 = vmatmul.mubr.bf16.gmra.mxu0 %v7045_v27  ;;  %4347 = vst [vmem:[#allocation8 + $0x1b8] sm:$0xff] %v3696_v45  ;;  %v3698_v36 = vadd.f32 %v3697_v15, %v6430_v7  ;;  %v7049_v27 = vld [vmem:[#allocation43_spill] sm:$0xff] }
 0x2ff   :  { %v3699_v32 = vpop.f32.mrf.mxu1 }
 0x300   :  { %v6633_v63 = vpop.f32.mrf.mxu0  ;;  %4349 = vst [vmem:[#allocation8 + $0x1c8] sm:$0xff] %v3698_v36  ;;  %v3700_v62 = vadd.f32 %v3699_v32, %v6433_v47  ;;  %v7046_v47 = vld [vmem:[#allocation39_spill] sm:$0xff] }
 0x301   :  { %v3703_v31 = vpop.f32.mrf.mxu1  ;;  %4855 = vmatmul.mubr.bf16.gmra.mxu1 %v6377_v57 }
 0x302   :  { %v6637_v19 = vpop.f32.mrf.mxu0  ;;  %4350 = vst [vmem:[#allocation8 + $0x1d0] sm:$0xff] %v3700_v62  ;;  %v3704_v54 = vadd.f32 %v3703_v31, %v6435_v20  ;;  %4858 = vmatprep.mubr.bf16.mxu1 %v6393_v12  ;;  %v7050_v31 = vld [vmem:[#allocation42_spill] sm:$0xff] }
 0x303   :  { %v3705_v30 = vpop.f32.mrf.mxu1 }
 0x304   :  { %v6641_v23 = vpop.f32.mrf.mxu0  ;;  %4352 = vst [vmem:[#allocation8 + $0x1e0] sm:$0xff] %v3704_v54  ;;  %v3706_v7 = vadd.f32 %v3705_v30, %v6439_v22 }
 0x305   :  { %v3707_v25 = vpop.f32.mrf.mxu1 }
 0x306   :  { %v6644_v37 = vpop.f32.mrf.mxu0  ;;  %4353 = vst [vmem:[#allocation8 + $0x1e8] sm:$0xff] %v3706_v7  ;;  %v3708_v4 = vadd.f32 %v3707_v25, %v7046_v47 }
 0x307   :  { %v3709_v57 = vpop.f32.mrf.mxu1 }
 0x308   :  { %v3878_v44 = vpop.f32.mrf.mxu0  ;;  %4355 = vst [vmem:[#allocation8 + $0x1f8] sm:$0xff] %v3708_v4  ;;  %v3710_v17 = vadd.f32 %v3709_v57, %v7047_v51  ;;  %v7052_v57 = vld [vmem:[#allocation44_spill] sm:$0xff] }
 0x309   :  { %v3713_v20 = vpop.f32.mrf.mxu1  ;;  %4859 = vmatmul.mubr.bf16.gmra.mxu1 %v6409_v42  ;;  %v7051_v42 = vld [vmem:[#allocation15_spill] sm:$0xff] }
 0x30a   :  { %v6649_v12 = vpop.f32.mrf.mxu0  ;;  %4356 = vst [vmem:[#allocation8 + $0x200] sm:$0xff] %v3710_v17  ;;  %v3714_v45 = vadd.f32 %v3713_v20, %v7048_v53  ;;  %v7053_v20 = vld [vmem:[#allocation12_spill] sm:$0xff] }
 0x30b   :  { %v3715_v22 = vpop.f32.mrf.mxu1 }
 0x30c   :  { %v3881_v15 = vpop.f32.mrf.mxu0  ;;  %4358 = vst [vmem:[#allocation8 + $0x210] sm:$0xff] %v3714_v45  ;;  %v3716_v36 = vadd.f32 %v3715_v22, %v7049_v27 }
 0x30d   :  { %v3717_v32 = vpop.f32.mrf.mxu1  ;;  %v7054_v15 = vld [vmem:[#allocation45_spill] sm:$0xff] }
 0x30e   :  { %v6653_v62 = vpop.f32.mrf.mxu0  ;;  %4359 = vst [vmem:[#allocation8 + $0x218] sm:$0xff] %v3716_v36  ;;  %v3718_v54 = vadd.f32 %v3717_v32, %v7050_v31  ;;  %v7055_v31 = vld [vmem:[#allocation18_spill] sm:$0xff] }
 0x30f   :  { %v3719_v30 = vpop.f32.mrf.mxu1 }
 0x310   :  { %v3886_v7 = vpop.f32.mrf.mxu0  ;;  %4361 = vst [vmem:[#allocation8 + $0x228] sm:$0xff] %v3718_v54  ;;  %v3720_v25 = vadd.f32 %v3719_v30, %v7051_v42  ;;  %v7056_v42 = vld [vmem:[#allocation55_spill] sm:$0xff] }
 0x311   :  { %v3723_v47 = vpop.f32.mrf.mxu1 }
 0x312   :  { %v6657_v4 = vpop.f32.mrf.mxu0  ;;  %4362 = vst [vmem:[#allocation8 + $0x230] sm:$0xff] %v3720_v25  ;;  %v3724_v44 = vadd.f32 %v3723_v47, %v7052_v57 }
 0x313   :  { %v3725_v51 = vpop.f32.mrf.mxu1 }
 0x314   :  { %v3889_v17 = vpop.f32.mrf.mxu0  ;;  %4364 = vst [vmem:[#allocation8 + $0x240] sm:$0xff] %v3724_v44  ;;  %v3726_v53 = vadd.f32 %v3725_v51, %v7053_v20  ;;  %v7057_v44 = vld [vmem:[#allocation21_spill] sm:$0xff] }
 0x315   :  { %v3727_v45 = vpop.f32.mrf.mxu1 }
 0x316   :  { %v6661_v22 = vpop.f32.mrf.mxu0  ;;  %4365 = vst [vmem:[#allocation8 + $0x248] sm:$0xff] %v3726_v53  ;;  %v3728_v27 = vadd.f32 %v3727_v45, %v7054_v15  ;;  %v7058_v53 = vld [vmem:[#allocation35_spill] sm:$0xff] }
 0x317   :  { %v3729_v36 = vpop.f32.mrf.mxu1 }
 0x318   :  { %v3894_v32 = vpop.f32.mrf.mxu0  ;;  %4367 = vst [vmem:[#allocation8 + $0x258] sm:$0xff] %v3728_v27  ;;  %v3730_v54 = vadd.f32 %v3729_v36, %v7055_v31 }
 0x319   :  { %v3733_v30 = vpop.f32.mrf.mxu1 }
 0x31a   :  { %v6665_v7 = vpop.f32.mrf.mxu0  ;;  %4368 = vst [vmem:[#allocation8 + $0x260] sm:$0xff] %v3730_v54  ;;  %v3734_v25 = vadd.f32 %v3733_v30, %v7056_v42 }
 0x31b   :  { %v3735_v47 = vpop.f32.mrf.mxu1 }
 0x31c   :  { %v3897_v57 = vpop.f32.mrf.mxu0  ;;  %4370 = vst [vmem:[#allocation8 + $0x270] sm:$0xff] %v3734_v25  ;;  %v3736_v51 = vadd.f32 %v3735_v47, %v7057_v44 }
 0x31d   :  { %v3737_v17 = vpop.f32.mrf.mxu1 }
 0x31e   :  { %v6669_v20 = vpop.f32.mrf.mxu0  ;;  %4371 = vst [vmem:[#allocation8 + $0x278] sm:$0xff] %v3736_v51  ;;  %v3738_v45 = vadd.f32 %v3737_v17, %v7058_v53 }
 0x31f   :  { %v3739_v15 = vpop.f32.mrf.mxu1 }
 0x320   :  { %v3902_v27 = vpop.f32.mrf.mxu0  ;;  %4373 = vst [vmem:[#allocation8 + $0x288] sm:$0xff] %v3738_v45  ;;  %v3740_v36 = vadd.f32 %v3739_v15, %v6482_v39 }
 0x321   :  { %v3743_v32 = vpop.f32.mrf.mxu1 }
 0x322   :  { %v6673_v31 = vpop.f32.mrf.mxu0  ;;  %4374 = vst [vmem:[#allocation8 + $0x290] sm:$0xff] %v3740_v36  ;;  %v3744_v54 = vadd.f32 %v3743_v32, %v6485_v14 }
 0x323   :  { %v3745_v30 = vpop.f32.mrf.mxu1 }
 0x324   :  { %v3905_v42 = vpop.f32.mrf.mxu0  ;;  %4376 = vst [vmem:[#allocation8 + $0x2a0] sm:$0xff] %v3744_v54  ;;  %v3746_v25 = vadd.f32 %v3745_v30, %v6490_v10 }
 0x325   :  { %v3747_v47 = vpop.f32.mrf.mxu1 }
 0x326   :  { %v6677_v57 = vpop.f32.mrf.mxu0  ;;  %4377 = vst [vmem:[#allocation8 + $0x2a8] sm:$0xff] %v3746_v25  ;;  %v3748_v44 = vadd.f32 %v3747_v47, %v6494_v6 }
 0x327   :  { %v3749_v51 = vpop.f32.mrf.mxu1 }
 0x328   :  { %v3910_v17 = vpop.f32.mrf.mxu0  ;;  %4379 = vst [vmem:[#allocation8 + $0x2b8] sm:$0xff] %v3748_v44  ;;  %v3750_v39 = vadd.f32 %v3749_v51, %v6498_v38 }
 0x329   :  { %v3753_v53 = vpop.f32.mrf.mxu1 }
 0x32a   :  { %v6681_v45 = vpop.f32.mrf.mxu0  ;;  %4380 = vst [vmem:[#allocation8 + $0x2c0] sm:$0xff] %v3750_v39  ;;  %v3754_v14 = vadd.f32 %v3753_v53, %v6501_v13 }
 0x32b   :  { %v3755_v15 = vpop.f32.mrf.mxu1 }
 0x32c   :  { %v3913_v27 = vpop.f32.mrf.mxu0  ;;  %4382 = vst [vmem:[#allocation8 + $0x2d0] sm:$0xff] %v3754_v14  ;;  %v3756_v10 = vadd.f32 %v3755_v15, %v6506_v2 }
 0x32d   :  { %v3757_v36 = vpop.f32.mrf.mxu1 }
 0x32e   :  { %v6685_v32 = vpop.f32.mrf.mxu0  ;;  %4383 = vst [vmem:[#allocation8 + $0x2d8] sm:$0xff] %v3756_v10  ;;  %v3758_v6 = vadd.f32 %v3757_v36, %v6510_v1 }
 0x32f   :  { %v3759_v54 = vpop.f32.mrf.mxu1 }
 0x330   :  { %v3918_v30 = vpop.f32.mrf.mxu0  ;;  %4385 = vst [vmem:[#allocation8 + $0x2e8] sm:$0xff] %v3758_v6  ;;  %v3760_v38 = vadd.f32 %v3759_v54, %v6514_v52 }
 0x331   :  { %v3763_v42 = vpop.f32.mrf.mxu1 }
 0x332   :  { %v6689_v25 = vpop.f32.mrf.mxu0  ;;  %4386 = vst [vmem:[#allocation8 + $0x2f0] sm:$0xff] %v3760_v38  ;;  %v3764_v13 = vadd.f32 %v3763_v42, %v6517_v0 }
 0x333   :  { %v3765_v47 = vpop.f32.mrf.mxu1 }
 0x334   :  { %v3921_v44 = vpop.f32.mrf.mxu0  ;;  %4388 = vst [vmem:[#allocation8 + $0x300] sm:$0xff] %v3764_v13  ;;  %v3766_v2 = vadd.f32 %v3765_v47, %v6522_v3 }
 0x335   :  { %v3767_v51 = vpop.f32.mrf.mxu1 }
 0x336   :  { %v6693_v17 = vpop.f32.mrf.mxu0  ;;  %4389 = vst [vmem:[#allocation8 + $0x308] sm:$0xff] %v3766_v2  ;;  %v3768_v1 = vadd.f32 %v3767_v51, %v6526_v56 }
 0x337   :  { %v3769_v39 = vpop.f32.mrf.mxu1 }
 0x338   :  { %v3926_v53 = vpop.f32.mrf.mxu0  ;;  %4391 = vst [vmem:[#allocation8 + $0x318] sm:$0xff] %v3768_v1  ;;  %v3770_v52 = vadd.f32 %v3769_v39, %v6530_v60 }
 0x339   :  { %v3773_v14 = vpop.f32.mrf.mxu1 }
 0x33a   :  { %v6697_v15 = vpop.f32.mrf.mxu0  ;;  %4392 = vst [vmem:[#allocation8 + $0x320] sm:$0xff] %v3770_v52  ;;  %v3774_v0 = vadd.f32 %v3773_v14, %v6533_v16 }
 0x33b   :  { %v3775_v27 = vpop.f32.mrf.mxu1 }
 0x33c   :  { %v3929_v10 = vpop.f32.mrf.mxu0  ;;  %4394 = vst [vmem:[#allocation8 + $0x330] sm:$0xff] %v3774_v0  ;;  %v3776_v3 = vadd.f32 %v3775_v27, %v6538_v29 }
 0x33d   :  { %v3777_v36 = vpop.f32.mrf.mxu1 }
 0x33e   :  { %v6701_v6 = vpop.f32.mrf.mxu0  ;;  %4395 = vst [vmem:[#allocation8 + $0x338] sm:$0xff] %v3776_v3  ;;  %v3778_v56 = vadd.f32 %v3777_v36, %v6542_v34 }
 0x33f   :  { %v3779_v54 = vpop.f32.mrf.mxu1 }
 0x340   :  { %v3934_v30 = vpop.f32.mrf.mxu0  ;;  %4397 = vst [vmem:[#allocation8 + $0x348] sm:$0xff] %v3778_v56  ;;  %v3780_v60 = vadd.f32 %v3779_v54, %v6546_v5 }
 0x341   :  { %v3783_v38 = vpop.f32.mrf.mxu1 }
 0x342   :  { %v6705_v42 = vpop.f32.mrf.mxu0  ;;  %4398 = vst [vmem:[#allocation8 + $0x350] sm:$0xff] %v3780_v60  ;;  %v3784_v16 = vadd.f32 %v3783_v38, %v6549_v35 }
 0x343   :  { %v3785_v13 = vpop.f32.mrf.mxu1 }
 0x344   :  { %v3937_v47 = vpop.f32.mrf.mxu0  ;;  %4400 = vst [vmem:[#allocation8 + $0x360] sm:$0xff] %v3784_v16  ;;  %v3786_v29 = vadd.f32 %v3785_v13, %v6554_v61 }
 0x345   :  { %v3787_v44 = vpop.f32.mrf.mxu1 }
 0x346   :  { %v6709_v2 = vpop.f32.mrf.mxu0  ;;  %4401 = vst [vmem:[#allocation8 + $0x368] sm:$0xff] %v3786_v29  ;;  %v3788_v34 = vadd.f32 %v3787_v44, %v6558_v50 }
 0x347   :  { %v3789_v51 = vpop.f32.mrf.mxu1 }
 0x348   :  { %v3942_v1 = vpop.f32.mrf.mxu0  ;;  %4403 = vst [vmem:[#allocation8 + $0x378] sm:$0xff] %v3788_v34  ;;  %v3790_v5 = vadd.f32 %v3789_v51, %v6562_v41 }
 0x349   :  { %v3793_v39 = vpop.f32.mrf.mxu1 }
 0x34a   :  { %v6713_v53 = vpop.f32.mrf.mxu0  ;;  %4404 = vst [vmem:[#allocation8 + $0x380] sm:$0xff] %v3790_v5  ;;  %v3794_v35 = vadd.f32 %v3793_v39, %v6565_v18 }
 0x34b   :  { %v3795_v52 = vpop.f32.mrf.mxu1 }
 0x34c   :  { %v3945_v14 = vpop.f32.mrf.mxu0  ;;  %4406 = vst [vmem:[#allocation8 + $0x390] sm:$0xff] %v3794_v35  ;;  %v3796_v61 = vadd.f32 %v3795_v52, %v6570_v58 }
 0x34d   :  { %v3797_v0 = vpop.f32.mrf.mxu1 }
 0x34e   :  { %v6717_v27 = vpop.f32.mrf.mxu0  ;;  %4407 = vst [vmem:[#allocation8 + $0x398] sm:$0xff] %v3796_v61  ;;  %v3798_v50 = vadd.f32 %v3797_v0, %v6574_v26 }
 0x34f   :  { %v3799_v10 = vpop.f32.mrf.mxu1 }
 0x350   :  { %v3950_v3 = vpop.f32.mrf.mxu0  ;;  %4409 = vst [vmem:[#allocation8 + $0x3a8] sm:$0xff] %v3798_v50  ;;  %v3800_v41 = vadd.f32 %v3799_v10, %v6578_v8 }
 0x351   :  { %v3803_v36 = vpop.f32.mrf.mxu1 }
 0x352   :  { %v6721_v56 = vpop.f32.mrf.mxu0  ;;  %4410 = vst [vmem:[#allocation8 + $0x3b0] sm:$0xff] %v3800_v41  ;;  %v3804_v18 = vadd.f32 %v3803_v36, %v6581_v28 }
 0x353   :  { %v3805_v54 = vpop.f32.mrf.mxu1 }
 0x354   :  { %v3953_v30 = vpop.f32.mrf.mxu0  ;;  %4412 = vst [vmem:[#allocation8 + $0x3c0] sm:$0xff] %v3804_v18  ;;  %v3806_v58 = vadd.f32 %v3805_v54, %v6586_v59 }
 0x355   :  { %v3807_v60 = vpop.f32.mrf.mxu1 }
 0x356   :  { %v6725_v38 = vpop.f32.mrf.mxu0  ;;  %4413 = vst [vmem:[#allocation8 + $0x3c8] sm:$0xff] %v3806_v58  ;;  %v3808_v26 = vadd.f32 %v3807_v60, %v6590_v55 }
 0x357   :  { %v3809_v16 = vpop.f32.mrf.mxu1 }
 0x358   :  { %v3958_v13 = vpop.f32.mrf.mxu0  ;;  %4415 = vst [vmem:[#allocation8 + $0x3d8] sm:$0xff] %v3808_v26  ;;  %v3810_v8 = vadd.f32 %v3809_v16, %v6594_v46 }
 0x359   :  { %v3813_v47 = vpop.f32.mrf.mxu1 }
 0x35a   :  { %v6729_v29 = vpop.f32.mrf.mxu0  ;;  %4416 = vst [vmem:[#allocation8 + $0x3e0] sm:$0xff] %v3810_v8  ;;  %v3814_v28 = vadd.f32 %v3813_v47, %v6597_v24 }
 0x35b   :  { %v3815_v44 = vpop.f32.mrf.mxu1 }
 0x35c   :  { %v3961_v34 = vpop.f32.mrf.mxu0  ;;  %4418 = vst [vmem:[#allocation8 + $0x3f0] sm:$0xff] %v3814_v28  ;;  %v3816_v59 = vadd.f32 %v3815_v44, %v6602_v9 }
 0x35d   :  { %v3817_v51 = vpop.f32.mrf.mxu1 }
 0x35e   :  { %v6733_v1 = vpop.f32.mrf.mxu0  ;;  %4419 = vst [vmem:[#allocation8 + $0x3f8] sm:$0xff] %v3816_v59  ;;  %v3818_v55 = vadd.f32 %v3817_v51, %v6606_v49 }
 0x35f   :  { %v3819_v5 = vpop.f32.mrf.mxu1 }
 0x360   :  { %v3966_v39 = vpop.f32.mrf.mxu0  ;;  %4421 = vst [vmem:[#allocation8 + $0x408] sm:$0xff] %v3818_v55  ;;  %v3820_v46 = vadd.f32 %v3819_v5, %v6610_v11 }
 0x361   :  { %v3823_v35 = vpop.f32.mrf.mxu1 }
 0x362   :  { %v6737_v52 = vpop.f32.mrf.mxu0  ;;  %4422 = vst [vmem:[#allocation8 + $0x410] sm:$0xff] %v3820_v46  ;;  %v3824_v24 = vadd.f32 %v3823_v35, %v6613_v43 }
 0x363   :  { %v3825_v14 = vpop.f32.mrf.mxu1 }
 0x364   :  { %v3969_v61 = vpop.f32.mrf.mxu0  ;;  %4424 = vst [vmem:[#allocation8 + $0x420] sm:$0xff] %v3824_v24  ;;  %v3826_v9 = vadd.f32 %v3825_v14, %v6618_v33 }
 0x365   :  { %v3827_v0 = vpop.f32.mrf.mxu1 }
 0x366   :  { %v6741_v50 = vpop.f32.mrf.mxu0  ;;  %4425 = vst [vmem:[#allocation8 + $0x428] sm:$0xff] %v3826_v9  ;;  %v3828_v49 = vadd.f32 %v3827_v0, %v6622_v21 }
 0x367   :  { %v3829_v10 = vpop.f32.mrf.mxu1 }
 0x368   :  { %v3974_v3 = vpop.f32.mrf.mxu0  ;;  %4427 = vst [vmem:[#allocation8 + $0x438] sm:$0xff] %v3828_v49  ;;  %v3830_v11 = vadd.f32 %v3829_v10, %v6626_v40 }
 0x369   :  { %v3833_v41 = vpop.f32.mrf.mxu1 }
 0x36a   :  { %v6745_v36 = vpop.f32.mrf.mxu0  ;;  %4428 = vst [vmem:[#allocation8 + $0x440] sm:$0xff] %v3830_v11  ;;  %v3834_v43 = vadd.f32 %v3833_v41, %v6629_v48 }
 0x36b   :  { %v3835_v18 = vpop.f32.mrf.mxu1 }
 0x36c   :  { %v3977_v54 = vpop.f32.mrf.mxu0  ;;  %4430 = vst [vmem:[#allocation8 + $0x450] sm:$0xff] %v3834_v43  ;;  %v3836_v33 = vadd.f32 %v3835_v18, %v6633_v63 }
 0x36d   :  { %v3837_v30 = vpop.f32.mrf.mxu1 }
 0x36e   :  { %v6749_v58 = vpop.f32.mrf.mxu0  ;;  %4431 = vst [vmem:[#allocation8 + $0x458] sm:$0xff] %v3836_v33  ;;  %v3838_v21 = vadd.f32 %v3837_v30, %v6637_v19 }
 0x36f   :  { %v3839_v60 = vpop.f32.mrf.mxu1 }
 0x370   :  { %v3982_v26 = vpop.f32.mrf.mxu0  ;;  %4433 = vst [vmem:[#allocation8 + $0x468] sm:$0xff] %v3838_v21  ;;  %v3840_v40 = vadd.f32 %v3839_v60, %v6641_v23 }
 0x371   :  { %v4816_v16 = vpop.f32.mrf.mxu1 }
 0x372   :  { %v6753_v13 = vpop.f32.mrf.mxu0  ;;  %4434 = vst [vmem:[#allocation8 + $0x470] sm:$0xff] %v3840_v40  ;;  %v4110_v48 = vadd.f32 %v4816_v16, %v6653_v62 }
 0x373   :  { %v4101_v8 = vpop.f32.mrf.mxu1 }
 0x374   :  { %v3985_v47 = vpop.f32.mrf.mxu0  ;;  %4300 = vst [vmem:[#allocation8 + $0x40] sm:$0xff] %v4110_v48  ;;  %v4102_v63 = vadd.f32 %v4101_v8, %v6644_v37 }
 0x375   :  { %v4817_v28 = vpop.f32.mrf.mxu1 }
 0x376   :  { %v6757_v44 = vpop.f32.mrf.mxu0  ;;  %4294 = vst [vmem:[#allocation8 + $0x10] sm:$0xff] %v4102_v63  ;;  %v4113_v19 = vadd.f32 %v4817_v28, %v6657_v4 }
 0x377   :  { %v4104_v34 = vpop.f32.mrf.mxu1 }
 0x378   :  { %v3990_v59 = vpop.f32.mrf.mxu0  ;;  %4303 = vst [vmem:[#allocation8 + $0x58] sm:$0xff] %v4113_v19  ;;  %v4105_v23 = vadd.f32 %v4104_v34, %v6649_v12 }
 0x379   :  { %v4820_v51 = vpop.f32.mrf.mxu1 }
 0x37a   :  { %v6761_v55 = vpop.f32.mrf.mxu0  ;;  %4297 = vst [vmem:[#allocation8 + $0x28] sm:$0xff] %v4105_v23  ;;  %v4126_v62 = vadd.f32 %v4820_v51, %v6669_v20 }
 0x37b   :  { %v4117_v5 = vpop.f32.mrf.mxu1 }
 0x37c   :  { %v3993_v39 = vpop.f32.mrf.mxu0  ;;  %4312 = vst [vmem:[#allocation8 + $0xa0] sm:$0xff] %v4126_v62  ;;  %v4118_v37 = vadd.f32 %v4117_v5, %v6661_v22 }
 0x37d   :  { %v4821_v46 = vpop.f32.mrf.mxu1 }
 0x37e   :  { %v6765_v35 = vpop.f32.mrf.mxu0  ;;  %4306 = vst [vmem:[#allocation8 + $0x70] sm:$0xff] %v4118_v37  ;;  %v4129_v4 = vadd.f32 %v4821_v46, %v6673_v31 }
 0x37f   :  { %v4120_v24 = vpop.f32.mrf.mxu1 }
 0x380   :  { %v3998_v14 = vpop.f32.mrf.mxu0  ;;  %4315 = vst [vmem:[#allocation8 + $0xb8] sm:$0xff] %v4129_v4  ;;  %v4121_v12 = vadd.f32 %v4120_v24, %v6665_v7 }
 0x381   :  { %v4824_v61 = vpop.f32.mrf.mxu1 }
 0x382   :  { %v6769_v9 = vpop.f32.mrf.mxu0  ;;  %4309 = vst [vmem:[#allocation8 + $0x88] sm:$0xff] %v4121_v12  ;;  %v4142_v20 = vadd.f32 %v4824_v61, %v6685_v32 }
 0x383   :  { %v4133_v0 = vpop.f32.mrf.mxu1 }
 0x384   :  { %v4001_v49 = vpop.f32.mrf.mxu0  ;;  %4324 = vst [vmem:[#allocation8 + $0x100] sm:$0xff] %v4142_v20  ;;  %v4134_v22 = vadd.f32 %v4133_v0, %v6677_v57 }
 0x385   :  { %v4825_v10 = vpop.f32.mrf.mxu1 }
 0x386   :  { %v6773_v3 = vpop.f32.mrf.mxu0  ;;  %4318 = vst [vmem:[#allocation8 + $0xd0] sm:$0xff] %v4134_v22  ;;  %v4145_v31 = vadd.f32 %v4825_v10, %v6689_v25 }
 0x387   :  { %v4136_v11 = vpop.f32.mrf.mxu1 }
 0x388   :  { %v4006_v41 = vpop.f32.mrf.mxu0  ;;  %4327 = vst [vmem:[#allocation8 + $0x118] sm:$0xff] %v4145_v31  ;;  %v4137_v7 = vadd.f32 %v4136_v11, %v6681_v45 }
 0x389   :  { %v4828_v43 = vpop.f32.mrf.mxu1 }
 0x38a   :  { %v6777_v18 = vpop.f32.mrf.mxu0  ;;  %4321 = vst [vmem:[#allocation8 + $0xe8] sm:$0xff] %v4137_v7  ;;  %v4158_v32 = vadd.f32 %v4828_v43, %v6701_v6 }
 0x38b   :  { %v4149_v54 = vpop.f32.mrf.mxu1 }
 0x38c   :  { %v4009_v33 = vpop.f32.mrf.mxu0  ;;  %4336 = vst [vmem:[#allocation8 + $0x160] sm:$0xff] %v4158_v32  ;;  %v4150_v57 = vadd.f32 %v4149_v54, %v6693_v17 }
 0x38d   :  { %v4829_v30 = vpop.f32.mrf.mxu1 }
 0x38e   :  { %v6781_v21 = vpop.f32.mrf.mxu0  ;;  %4330 = vst [vmem:[#allocation8 + $0x130] sm:$0xff] %v4150_v57  ;;  %v4161_v25 = vadd.f32 %v4829_v30, %v6705_v42 }
 0x38f   :  { %v4152_v60 = vpop.f32.mrf.mxu1 }
 0x390   :  { %v4014_v26 = vpop.f32.mrf.mxu0  ;;  %4339 = vst [vmem:[#allocation8 + $0x178] sm:$0xff] %v4161_v25  ;;  %v4153_v45 = vadd.f32 %v4152_v60, %v6697_v15 }
 0x391   :  { %v4832_v40 = vpop.f32.mrf.mxu1 }
 0x392   :  { %v6785_v16 = vpop.f32.mrf.mxu0  ;;  %4333 = vst [vmem:[#allocation8 + $0x148] sm:$0xff] %v4153_v45  ;;  %v4174_v6 = vadd.f32 %v4832_v40, %v6717_v27 }
 0x393   :  { %v4165_v48 = vpop.f32.mrf.mxu1 }
 0x394   :  { %v4017_v8 = vpop.f32.mrf.mxu0  ;;  %4348 = vst [vmem:[#allocation8 + $0x1c0] sm:$0xff] %v4174_v6  ;;  %v4166_v17 = vadd.f32 %v4165_v48, %v6709_v2 }
 0x395   :  { %v4833_v47 = vpop.f32.mrf.mxu1 }
 0x396   :  { %v6789_v63 = vpop.f32.mrf.mxu0  ;;  %4342 = vst [vmem:[#allocation8 + $0x190] sm:$0xff] %v4166_v17  ;;  %v4177_v42 = vadd.f32 %v4833_v47, %v6721_v56 }
 0x397   :  { %v4168_v28 = vpop.f32.mrf.mxu1 }
 0x398   :  { %v4022_v19 = vpop.f32.mrf.mxu0  ;;  %4351 = vst [vmem:[#allocation8 + $0x1d8] sm:$0xff] %v4177_v42  ;;  %v4169_v15 = vadd.f32 %v4168_v28, %v6713_v53 }
 0x399   :  { %v4836_v34 = vpop.f32.mrf.mxu1 }
 0x39a   :  { %v6793_v59 = vpop.f32.mrf.mxu0  ;;  %4345 = vst [vmem:[#allocation8 + $0x1a8] sm:$0xff] %v4169_v15  ;;  %v4190_v27 = vadd.f32 %v4836_v34, %v6733_v1 }
 0x39b   :  { %v4181_v23 = vpop.f32.mrf.mxu1 }
 0x39c   :  { %v4025_v51 = vpop.f32.mrf.mxu0  ;;  %4360 = vst [vmem:[#allocation8 + $0x220] sm:$0xff] %v4190_v27  ;;  %v4182_v2 = vadd.f32 %v4181_v23, %v6725_v38 }
 0x39d   :  { %v4837_v62 = vpop.f32.mrf.mxu1 }
 0x39e   :  { %v4028_v5 = vpop.f32.mrf.mxu0  ;;  %4354 = vst [vmem:[#allocation8 + $0x1f0] sm:$0xff] %v4182_v2  ;;  %v4193_v56 = vadd.f32 %v4837_v62, %v6737_v52 }
 0x39f   :  { %v4184_v39 = vpop.f32.mrf.mxu1 }
 0x3a0   :  { %v4030_v37 = vpop.f32.mrf.mxu0  ;;  %4363 = vst [vmem:[#allocation8 + $0x238] sm:$0xff] %v4193_v56  ;;  %v4185_v53 = vadd.f32 %v4184_v39, %v6729_v29 }
 0x3a1   :  { %v4840_v46 = vpop.f32.mrf.mxu1 }
 0x3a2   :  { %v4031_v4 = vpop.f32.mrf.mxu0  ;;  %4357 = vst [vmem:[#allocation8 + $0x208] sm:$0xff] %v4185_v53  ;;  %v4206_v1 = vadd.f32 %v4840_v46, %v6749_v58 }
 0x3a3   :  { %v4197_v24 = vpop.f32.mrf.mxu1 }
 0x3a4   :  { %v4033_v14 = vpop.f32.mrf.mxu0  ;;  %4372 = vst [vmem:[#allocation8 + $0x280] sm:$0xff] %v4206_v1  ;;  %v4198_v38 = vadd.f32 %v4197_v24, %v6741_v50 }
 0x3a5   :  { %v4841_v12 = vpop.f32.mrf.mxu1 }
 0x3a6   :  { %v4036_v61 = vpop.f32.mrf.mxu0  ;;  %4366 = vst [vmem:[#allocation8 + $0x250] sm:$0xff] %v4198_v38  ;;  %v4209_v52 = vadd.f32 %v4841_v12, %v6753_v13 }
 0x3a7   :  { %v4200_v20 = vpop.f32.mrf.mxu1 }
 0x3a8   :  { %v4038_v0 = vpop.f32.mrf.mxu0  ;;  %4375 = vst [vmem:[#allocation8 + $0x298] sm:$0xff] %v4209_v52  ;;  %v4201_v29 = vadd.f32 %v4200_v20, %v6745_v36 }
 0x3a9   :  { %v4844_v49 = vpop.f32.mrf.mxu1 }
 0x3aa   :  { %v4039_v22 = vpop.f32.mrf.mxu0  ;;  %4369 = vst [vmem:[#allocation8 + $0x268] sm:$0xff] %v4201_v29  ;;  %v4222_v58 = vadd.f32 %v4844_v49, %v6765_v35 }
 0x3ab   :  { %v4213_v10 = vpop.f32.mrf.mxu1 }
 0x3ac   :  { %v4041_v31 = vpop.f32.mrf.mxu0  ;;  %4384 = vst [vmem:[#allocation8 + $0x2e0] sm:$0xff] %v4222_v58  ;;  %v4214_v50 = vadd.f32 %v4213_v10, %v6757_v44 }
 0x3ad   :  { %v4845_v11 = vpop.f32.mrf.mxu1 }
 0x3ae   :  { %v4044_v41 = vpop.f32.mrf.mxu0  ;;  %4378 = vst [vmem:[#allocation8 + $0x2b0] sm:$0xff] %v4214_v50  ;;  %v4225_v13 = vadd.f32 %v4845_v11, %v6769_v9 }
 0x3af   :  { %v4216_v7 = vpop.f32.mrf.mxu1 }
 0x3b0   :  { %v4046_v43 = vpop.f32.mrf.mxu0  ;;  %4387 = vst [vmem:[#allocation8 + $0x2f8] sm:$0xff] %v4225_v13  ;;  %v4217_v36 = vadd.f32 %v4216_v7, %v6761_v55 }
 0x3b1   :  { %v4848_v32 = vpop.f32.mrf.mxu1 }
 0x3b2   :  { %v4047_v54 = vpop.f32.mrf.mxu0  ;;  %4381 = vst [vmem:[#allocation8 + $0x2c8] sm:$0xff] %v4217_v36  ;;  %v4238_v35 = vadd.f32 %v4848_v32, %v6781_v21 }
 0x3b3   :  { %v4229_v33 = vpop.f32.mrf.mxu1 }
 0x3b4   :  { %v4049_v57 = vpop.f32.mrf.mxu0  ;;  %4396 = vst [vmem:[#allocation8 + $0x340] sm:$0xff] %v4238_v35  ;;  %v4230_v44 = vadd.f32 %v4229_v33, %v6773_v3 }
 0x3b5   :  { %v4849_v30 = vpop.f32.mrf.mxu1 }
 0x3b6   :  { %v4052_v25 = vpop.f32.mrf.mxu0  ;;  %4390 = vst [vmem:[#allocation8 + $0x310] sm:$0xff] %v4230_v44  ;;  %v4241_v9 = vadd.f32 %v4849_v30, %v6785_v16 }
 0x3b7   :  { %v4232_v60 = vpop.f32.mrf.mxu1 }
 0x3b8   :  { %v4054_v26 = vpop.f32.mrf.mxu0  ;;  %4399 = vst [vmem:[#allocation8 + $0x358] sm:$0xff] %v4241_v9  ;;  %v4233_v55 = vadd.f32 %v4232_v60, %v6777_v18 }
 0x3b9   :  { %v4852_v45 = vpop.f32.mrf.mxu1 }
 0x3ba   :  { %v4055_v40 = vpop.f32.mrf.mxu0  ;;  %4393 = vst [vmem:[#allocation8 + $0x328] sm:$0xff] %v4233_v55  ;;  %v4254_v6 = vadd.f32 %v4852_v45, %v4028_v5 }
 0x3bb   :  { %v4245_v21 = vpop.f32.mrf.mxu1 }
 0x3bc   :  { %v4057_v48 = vpop.f32.mrf.mxu0  ;;  %4408 = vst [vmem:[#allocation8 + $0x3a0] sm:$0xff] %v4254_v6  ;;  %v4246_v8 = vadd.f32 %v4245_v21, %v6789_v63 }
 0x3bd   :  { %v4853_v3 = vpop.f32.mrf.mxu1 }
 0x3be   :  { %v4060_v17 = vpop.f32.mrf.mxu0  ;;  %4402 = vst [vmem:[#allocation8 + $0x370] sm:$0xff] %v4246_v8  ;;  %v4257_v47 = vadd.f32 %v4853_v3, %v4031_v4 }
 0x3bf   :  { %v4248_v42 = vpop.f32.mrf.mxu1 }
 0x3c0   :  { %v4062_v16 = vpop.f32.mrf.mxu0  ;;  %4411 = vst [vmem:[#allocation8 + $0x3b8] sm:$0xff] %v4257_v47  ;;  %v4249_v28 = vadd.f32 %v4248_v42, %v6793_v59 }
 0x3c1   :  { %v4856_v19 = vpop.f32.mrf.mxu1 }
 0x3c2   :  { %v4063_v18 = vpop.f32.mrf.mxu0  ;;  %4405 = vst [vmem:[#allocation8 + $0x388] sm:$0xff] %v4249_v28  ;;  %v4270_v15 = vadd.f32 %v4856_v19, %v4044_v41 }
 0x3c3   :  { %v4261_v34 = vpop.f32.mrf.mxu1 }
 0x3c4   :  { %v4065_v27 = vpop.f32.mrf.mxu0  ;;  %4420 = vst [vmem:[#allocation8 + $0x400] sm:$0xff] %v4270_v15  ;;  %v4262_v23 = vadd.f32 %v4261_v34, %v4036_v61 }
 0x3c5   :  { %v4857_v51 = vpop.f32.mrf.mxu1 }
 0x3c6   :  { %4414 = vst [vmem:[#allocation8 + $0x3d0] sm:$0xff] %v4262_v23  ;;  %v4273_v63 = vadd.f32 %v4857_v51, %v4047_v54 }
 0x3c7   :  { %v4264_v2 = vpop.f32.mrf.mxu1 }
 0x3c8   :  { %4423 = vst [vmem:[#allocation8 + $0x418] sm:$0xff] %v4273_v63  ;;  %v4265_v62 = vadd.f32 %v4264_v2, %v4039_v22 }
 0x3c9   :  { %v4860_v5 = vpop.f32.mrf.mxu1 }
 0x3ca   :  { %4417 = vst [vmem:[#allocation8 + $0x3e8] sm:$0xff] %v4265_v62  ;;  %v4286_v56 = vadd.f32 %v4860_v5, %v4060_v17 }
 0x3cb   :  { %v4277_v39 = vpop.f32.mrf.mxu1 }
 0x3cc   :  { %4432 = vst [vmem:[#allocation8 + $0x460] sm:$0xff] %v4286_v56  ;;  %v4278_v59 = vadd.f32 %v4277_v39, %v4052_v25 }
 0x3cd   :  { %v4861_v37 = vpop.f32.mrf.mxu1 }
 0x3ce   :  { %4426 = vst [vmem:[#allocation8 + $0x430] sm:$0xff] %v4278_v59  ;;  %v4289_v53 = vadd.f32 %v4861_v37, %v4063_v18 }
 0x3cf   :  { %v4280_v46 = vpop.f32.mrf.mxu1 }
 0x3d0   :  { %4435 = vst [vmem:[#allocation8 + $0x478] sm:$0xff] %v4289_v53  ;;  %v4281_v4 = vadd.f32 %v4280_v46, %v4055_v40 }
 0x3d2   :  { %4429 = vst [vmem:[#allocation8 + $0x448] sm:$0xff] %v4281_v4 }
 0x3d3   :  { %5232 = shalt.err (!%p5229_p5)
}
 0x3d4   :  { %s5254_s29 = smov 384   ;;  %s5255_s30 = smov 24  }
 0x3d5   :  { %4447 = dma.vmem_to_hbm [thread:$0]  %s4442_s2, 18432, %s6819_s3, [#allocation4], %s5254_s29, %s5254_s29, %s5255_s30  }
 0x3d6   :  { %5245 = dma.done.wait [#allocation4], 18432  }
 0x3d7   :  { %5246 = vsyncadd [#allocation4], 4294948864 }
 0x3d8   :  { %4451 = vsyncpa [#allocation3], 1 }
 0x3d9   :  { %4452 = vsyncpa [#allocation6], 1 }
 0x3da   :  { %4453 = vsyncpa [#allocation4], 1 }

</bundles_post_ra>
